<compile_context>
chip_gen: v7x
topology: tpu7x:2x2x1
jax: 0.10.0
libtpu: 0.0.40
codegen_flags: <defaults>
</compile_context>

<pallas_src>
import functools
import math

import numpy as np
import jax
import jax.numpy as jnp
from jax.experimental import pallas as pl
from jax.experimental.pallas import tpu as pltpu

LANE = 128                      # vreg lane width / MXU column width
VMEM_LIMIT = 32 * 1024 * 1024   # safe on v5e/v6e (128 MiB) and v7x (64 MiB)


def _round_up(x, m):
    return ((x + m - 1) // m) * m


# ---------------------------------------------------------------------------
# Pallas kernels
# ---------------------------------------------------------------------------
def _matmul_kernel(x_ref, w_ref, b_ref, o_ref, *, apply_relu6, use_bf16):
    """(tm, Cin) x (Cin, Cout) + bias, optional ReLU6 on the input."""
    x = x_ref[...].astype(jnp.float32)
    if apply_relu6:
        x = jnp.clip(x, 0.0, 6.0)
    w = w_ref[...].astype(jnp.float32)
    if use_bf16:                       # bf16 MXU operands, f32 accumulation
        x = x.astype(jnp.bfloat16)
        w = w.astype(jnp.bfloat16)
    y = jnp.dot(x, w, preferred_element_type=jnp.float32)
    o_ref[...] = (y + b_ref[...]).astype(o_ref.dtype)


def pointwise_conv(x2d, w, b=None, apply_relu6=False, *, use_bf16=True,
                   tile_m=1024):
    """1x1 conv (optionally preceded by ReLU6) as a row-tiled matmul.

    x2d: (N, Cin), w: (Cin, Cout).  Caller pads Cout to a 128 multiple for
    lane-dense stores; the kernel itself is correct for any Cout.
    """
    N, Cin = x2d.shape
    Cout = w.shape[1]
    tm = min(tile_m, _round_up(max(N, 1), 8))
    Np = _round_up(N, tm)
    if Np != N:
        x2d = jnp.pad(x2d, ((0, Np - N), (0, 0)))
    if b is None:
        b = jnp.zeros((Cout,), jnp.float32)
    b2 = b.reshape(1, Cout).astype(jnp.float32)

    cost = pl.CostEstimate(
        flops=2 * Np * Cin * Cout, transcendentals=0,
        bytes_accessed=4 * (Np * Cin + Cin * Cout + Np * Cout))

    out = pl.pallas_call(
        functools.partial(_matmul_kernel, apply_relu6=apply_relu6,
                          use_bf16=use_bf16),
        out_shape=jax.ShapeDtypeStruct((Np, Cout), jnp.float32),
        grid=(Np // tm,),
        in_specs=[pl.BlockSpec((tm, Cin), lambda i: (i, 0)),
                  pl.BlockSpec((Cin, Cout), lambda i: (0, 0)),
                  pl.BlockSpec((1, Cout), lambda i: (0, 0))],
        out_specs=pl.BlockSpec((tm, Cout), lambda i: (i, 0)),
        compiler_params=pltpu.CompilerParams(
            dimension_semantics=("parallel",),
            vmem_limit_bytes=VMEM_LIMIT),
        cost_estimate=cost,
    )(x2d.astype(jnp.float32), w.astype(jnp.float32), b2)
    return out if Np == N else out[:N]


def _gap_kernel(x_ref, o_ref, *, inv_n):
    x = x_ref[0]                                        # (H*W, C)
    o_ref[0] = jnp.sum(x, axis=0, keepdims=True) * inv_n


def global_avg_pool(x_nhwc):
    """F.adaptive_avg_pool2d(x, 1): per-batch spatial mean -> (B, 1, C)."""
    B, H, W, C = x_nhwc.shape
    x3 = x_nhwc.reshape(B, H * W, C)
    return pl.pallas_call(
        functools.partial(_gap_kernel, inv_n=1.0 / (H * W)),
        out_shape=jax.ShapeDtypeStruct((B, 1, C), jnp.float32),
        grid=(B,),
        in_specs=[pl.BlockSpec((1, H * W, C), lambda b: (b, 0, 0))],
        out_specs=pl.BlockSpec((1, 1, C), lambda b: (b, 0, 0)),
        compiler_params=pltpu.CompilerParams(
            dimension_semantics=("parallel",),
            vmem_limit_bytes=VMEM_LIMIT),
    )(x3.astype(jnp.float32))


def _make_stage_kernel(branch_modes, out_rows, dpad, has_fc):
    """Fused decoder stage: sum_b upsample(conv_b(relu6(feat_b))) + BN shift,
    optionally followed by the final ReLU6 + fc_conv epilogue."""

    def kernel(*refs):
        out_ref = refs[-1]
        pos = 0
        acc = jnp.zeros((out_rows, dpad), jnp.float32)
        for mode in branch_modes:
            f_ref, w_ref = refs[pos], refs[pos + 1]
            pos += 2
            x = jnp.clip(f_ref[0].astype(jnp.float32), 0.0, 6.0)   # ReLU6
            y = jnp.dot(x.astype(jnp.bfloat16),
                        w_ref[...].astype(jnp.bfloat16),
                        preferred_element_type=jnp.float32)        # (s, dpad)
            if mode == "mat":                                      # bilinear
                u_ref = refs[pos]
                pos += 1
                y = jnp.dot(u_ref[...], y, preferred_element_type=jnp.float32)
            # "same": s == out_rows; "bcast": (1, dpad) broadcasts over rows
            acc = acc + y
        shift_ref = refs[pos]
        pos += 1
        out = acc + shift_ref[...]                # eval-mode BN shift (folded)
        if has_fc:                                # fused final ReLU6 + fc_conv
            fcw_ref, fcb_ref = refs[pos], refs[pos + 1]
            out = jnp.clip(out, 0.0, 6.0)
            out = jnp.dot(out.astype(jnp.bfloat16),
                          fcw_ref[...].astype(jnp.bfloat16),
                          preferred_element_type=jnp.float32) + fcb_ref[...]
        out_ref[0] = out.astype(out_ref.dtype)

    return kernel


def _interp_matrix(n_out, n_in):
    """Separable bilinear interp matrix (align_corners=True), numpy f32."""
    if n_in == n_out:
        return np.eye(n_out, dtype=np.float32)
    M = np.zeros((n_out, n_in), dtype=np.float32)
    if n_in == 1 or n_out == 1:
        M[:, 0] = 1.0            # degenerate cases: broadcast / pick index 0
        return M
    src = np.arange(n_out, dtype=np.float64) * (n_in - 1) / (n_out - 1)
    lo = np.clip(np.floor(src).astype(np.int64), 0, n_in - 2)
    frac = (src - lo).astype(np.float32)
    M[np.arange(n_out), lo] = 1.0 - frac
    M[np.arange(n_out), lo + 1] = frac
    return M


def decoder_stage(branches, shift, out_hw, fc=None):
    """One fused Decoder stage as a single pallas_call, grid over batch.

    branches: list of (feat (B,h,w,Cpad), weight (Cpad, Dpad)) with the BN
    scale already folded into the weights.  fc = (fc_w, fc_b) fuses the final
    ReLU6 + fc_conv into the same kernel (last stage only).
    """
    # TODO(synk): for large spatial sizes, add a second (row-tiled) grid axis
    # over out_rows; for this model's resolutions a per-batch block fits VMEM.
    Ht, Wt = out_hw
    out_rows = Ht * Wt
    B = branches[0][0].shape[0]
    dpad = branches[0][1].shape[1]

    modes, operands, in_specs = [], [], []
    for feat, w in branches:
        _, h, wd, c = feat.shape
        s = h * wd
        operands.append(feat.reshape(B, s, c).astype(jnp.float32))
        in_specs.append(pl.BlockSpec((1, s, c), lambda b: (b, 0, 0)))
        operands.append(w.astype(jnp.float32))
        in_specs.append(pl.BlockSpec(w.shape, lambda b: (0, 0)))
        if (h, wd) == (Ht, Wt):
            modes.append("same")
        elif s == 1:
            modes.append("bcast")
        else:
            modes.append("mat")
            U = np.kron(_interp_matrix(Ht, h), _interp_matrix(Wt, wd))
            operands.append(jnp.asarray(U, jnp.float32))
            in_specs.append(pl.BlockSpec(U.shape, lambda b: (0, 0)))

    operands.append(shift.reshape(1, dpad).astype(jnp.float32))
    in_specs.append(pl.BlockSpec((1, dpad), lambda b: (0, 0)))

    out_cols = dpad
    if fc is not None:
        fc_w, fc_b = fc
        out_cols = fc_w.shape[1]
        operands.append(fc_w.astype(jnp.float32))
        in_specs.append(pl.BlockSpec(fc_w.shape, lambda b: (0, 0)))
        operands.append(fc_b.reshape(1, out_cols).astype(jnp.float32))
        in_specs.append(pl.BlockSpec((1, out_cols), lambda b: (0, 0)))

    kernel = _make_stage_kernel(tuple(modes), out_rows, dpad, fc is not None)
    return pl.pallas_call(
        kernel,
        out_shape=jax.ShapeDtypeStruct((B, out_rows, out_cols), jnp.float32),
        grid=(B,),
        in_specs=in_specs,
        out_specs=pl.BlockSpec((1, out_rows, out_cols), lambda b: (b, 0, 0)),
        compiler_params=pltpu.CompilerParams(
            dimension_semantics=("parallel",),
            vmem_limit_bytes=VMEM_LIMIT),
    )(*operands)


# ---------------------------------------------------------------------------
# Plain-JAX glue
# ---------------------------------------------------------------------------
def avg_pool2(x):
    B, H, W, C = x.shape
    return x.reshape(B, H // 2, 2, W // 2, 2, C).mean(axis=(2, 4))


# ---------------------------------------------------------------------------
# Parameter init (kaiming_normal fan_out; BN eval: gamma=1, beta=0,
# running mean=0 / var=1  ->  scale = 1/sqrt(1+eps), shift = 0)
# ---------------------------------------------------------------------------
def init_params(key, mask, backbone_channels, depth, num_classes, in_channels):
    keys = iter(jax.random.split(key, 256))

    def kaiming(cin, cout):
        std = math.sqrt(2.0 / cout)        # fan_out = cout * 1 * 1
        return jax.random.normal(next(keys), (cin, cout), jnp.float32) * std

    params = {}
    chain = [in_channels] + list(backbone_channels)
    params["bb_w"] = [kaiming(chain[i], chain[i + 1])
                      for i in range(len(backbone_channels))]

    down_channels = list(backbone_channels)[::-1]
    up_channels = down_channels[:1] + [depth] * (len(down_channels) - 1)

    params["down_w"], params["up_w"] = [], []
    params["bn_scale"], params["bn_shift"] = [], []
    eps = 1e-5
    for idx in range(len(down_channels)):
        params["down_w"].append(
            [kaiming(down_channels[j], depth) if mask[idx, j, 0] else None
             for j in range(idx + 1)])
        params["up_w"].append(
            [kaiming(up_channels[j], depth) if mask[idx, j, 1] else None
             for j in range(idx + 1)])
        params["bn_scale"].append(
            jnp.full((depth,), 1.0 / math.sqrt(1.0 + eps), jnp.float32))
        params["bn_shift"].append(jnp.zeros((depth,), jnp.float32))

    params["fc_w"] = kaiming(depth, num_classes)
    params["fc_b"] = jnp.zeros((num_classes,), jnp.float32)
    return params


def prepare_inference_params(params, depth, num_classes, in_channels,
                             lane=LANE):
    """One-time prep: fold eval-mode BN into decoder conv weights and zero-pad
    every weight to a lane-dense (multiple of 128) output width."""
    dpad = _round_up(depth, lane)
    prep = {}

    bb, prev_pad = [], in_channels
    for w in params["bb_w"]:
        cin, cout = w.shape
        cout_pad = _round_up(cout, lane)
        bb.append(jnp.zeros((prev_pad, cout_pad), jnp.float32)
                  .at[:cin, :cout].set(w))
        prev_pad = cout_pad
    prep["bb_w"] = bb

    def fold_pad(w, scale):
        if w is None:
            return None
        cin, cout = w.shape
        wf = w * scale[None, :]                         # BN scale folded in
        return (jnp.zeros((_round_up(cin, lane), dpad), jnp.float32)
                .at[:cin, :cout].set(wf))

    prep["down_w"], prep["up_w"], prep["bn_shift"] = [], [], []
    for idx in range(len(params["down_w"])):
        sc, sh = params["bn_scale"][idx], params["bn_shift"][idx]
        prep["down_w"].append([fold_pad(w, sc) for w in params["down_w"][idx]])
        prep["up_w"].append([fold_pad(w, sc) for w in params["up_w"][idx]])
        prep["bn_shift"].append(
            jnp.zeros((dpad,), jnp.float32).at[:depth].set(sh))

    ncpad = _round_up(num_classes, lane)
    prep["fc_w"] = (jnp.zeros((dpad, ncpad), jnp.float32)
                    .at[:depth, :num_classes].set(params["fc_w"]))
    prep["fc_b"] = (jnp.zeros((ncpad,), jnp.float32)
                    .at[:num_classes].set(params["fc_b"]))
    return prep


# ---------------------------------------------------------------------------
# Forward pass
# ---------------------------------------------------------------------------
def sparse_mask_forward(x_nchw, prep, mask, depth, num_classes):
    dpad = _round_up(depth, LANE)
    x = jnp.transpose(x_nchw, (0, 2, 3, 1)).astype(jnp.float32)   # NCHW->NHWC

    # --- backbone ---
    # TODO(synk): get_backbone() is not defined in the reference; using a
    # synthetic stack of (2x2 avg-pool -> 1x1 conv) stages that honours the
    # same multi-scale output contract (list of progressively deeper maps).
    feats, h = [], x
    for w_bb in prep["bb_w"]:
        h = avg_pool2(h)
        B, H, W, C = h.shape
        h = pointwise_conv(h.reshape(B * H * W, C), w_bb).reshape(B, H, W, -1)
        feats.append(h)

    down = feats[::-1]                         # deepest (smallest) first
    B = x.shape[0]
    gap = global_avg_pool(down[0])             # (B, 1, Cpad)
    up = [gap.reshape(B, 1, 1, gap.shape[-1])]

    n = len(down)
    y = None
    for idx in range(n):
        Ht, Wt = down[idx].shape[1], down[idx].shape[2]
        is_last = idx == n - 1
        has_branch = bool(np.any(mask[idx, : idx + 1]))
        if not has_branch:
            # Decoder 'none' branch (returns 0); keep shape for downstream use.
            x_dec = jnp.zeros((B, Ht, Wt, dpad), jnp.float32)
            if is_last:
                y = pointwise_conv(x_dec.reshape(-1, dpad), prep["fc_w"],
                                   b=prep["fc_b"], apply_relu6=True
                                   ).reshape(B, Ht, Wt, -1)
        else:
            branches = []
            for j in range(idx + 1):
                if mask[idx, j, 0]:
                    branches.append((down[j], prep["down_w"][idx][j]))
                if mask[idx, j, 1]:
                    branches.append((up[j], prep["up_w"][idx][j]))
            out = decoder_stage(
                branches, prep["bn_shift"][idx], (Ht, Wt),
                fc=(prep["fc_w"], prep["fc_b"]) if is_last else None)
            if is_last:
                y = out.reshape(B, Ht, Wt, -1)
            else:
                x_dec = out.reshape(B, Ht, Wt, dpad)
        if idx < n - 1:
            up.append(x_dec)

    y = y[..., :num_classes]                   # drop lane padding
    return jnp.transpose(y, (0, 3, 1, 2))      # back to NCHW


# ---------------------------------------------------------------------------
if __name__ == "__main__":
    key = jax.random.PRNGKey(0)
    kx, kp = jax.random.split(key)

    depth = 16
    num_classes = 5
    in_channels = 3
    backbone_channels = (8, 16, 32)            # 3 stages: 16->8->4->2 spatial
    n_stages = len(backbone_channels)

    # mask[idx, j] = (use_down_branch, use_up_branch)
    mask = np.ones((n_stages, n_stages, 2), dtype=np.int32)

    x = jax.random.normal(kx, (2, in_channels, 16, 16), jnp.float32)

    params = init_params(kp, mask, backbone_channels, depth, num_classes,
                         in_channels)
    prep = prepare_inference_params(params, depth, num_classes, in_channels)

    fwd = jax.jit(functools.partial(sparse_mask_forward, mask=mask,
                                    depth=depth, num_classes=num_classes))
    out = jax.block_until_ready(fwd(x, prep))

    assert out.shape == (2, num_classes, 8, 8), out.shape
    assert bool(jnp.all(jnp.isfinite(out)))
    print("KERNEL_OK")
</pallas_src>

<mosaic_0001>
module attributes {stable_mosaic.version = 11 : i64} {
  func.func @_matmul_kernel(%arg0: i32, %arg1: memref<128x3xf32, #tpu.memory_space<vmem>>, %arg2: memref<3x128xf32, #tpu.memory_space<vmem>>, %arg3: memref<1x128xf32, #tpu.memory_space<vmem>>, %arg4: memref<128x128xf32, #tpu.memory_space<vmem>>) attributes {dimension_semantics = [#tpu.dimension_semantics<parallel>], iteration_bounds = array<i64: 1>, scalar_prefetch = 0 : i64, scratch_operands = 0 : i64, tpu.core_type = #tpu.core_type<tc>, window_params = [{transform_indices = @transform_0, window_bounds = array<i64: 128, 3>}, {pipeline_mode = #tpu.pipeline_mode<synchronous>, transform_indices = @transform_1, window_bounds = array<i64: 3, 128>}, {pipeline_mode = #tpu.pipeline_mode<synchronous>, transform_indices = @transform_2, window_bounds = array<i64: 1, 128>}, {transform_indices = @transform_3, window_bounds = array<i64: 128, 128>}]} {
    %c0 = arith.constant 0 : index
    %c0_0 = arith.constant 0 : index
    %0 = vector.load %arg1[%c0, %c0_0] : memref<128x3xf32, #tpu.memory_space<vmem>>, vector<128x3xf32>
    %c0_1 = arith.constant 0 : index
    %c0_2 = arith.constant 0 : index
    %1 = vector.load %arg2[%c0_1, %c0_2] : memref<3x128xf32, #tpu.memory_space<vmem>>, vector<3x128xf32>
    %2 = arith.truncf %0 : vector<128x3xf32> to vector<128x3xbf16>
    %3 = arith.truncf %1 : vector<3x128xf32> to vector<3x128xbf16>
    %cst = arith.constant dense<0.000000e+00> : vector<128x128xf32>
    %4 = tpu.matmul %2, %3, %cst {dimension_numbers = #tpu.dot_dimension_numbers<[1], [0], [0], [1], [0, 0, 1, 1], [], []>} : vector<128x3xbf16>, vector<3x128xbf16>, vector<128x128xf32> -> vector<128x128xf32>
    %c0_3 = arith.constant 0 : index
    %c0_4 = arith.constant 0 : index
    %5 = vector.load %arg3[%c0_3, %c0_4] : memref<1x128xf32, #tpu.memory_space<vmem>>, vector<1x128xf32>
    %6 = vector.broadcast %5 : vector<1x128xf32> to vector<128x128xf32>
    %7 = arith.addf %4, %6 : vector<128x128xf32>
    %c0_5 = arith.constant 0 : index
    %c0_6 = arith.constant 0 : index
    %8 = vector.load %arg4[%c0_5, %c0_6] : memref<128x128xf32, #tpu.memory_space<vmem>>, vector<128x128xf32>
    tpu.vector_store %arg4[%c0_5, %c0_6], %7 {strides = array<i32>} : memref<128x128xf32, #tpu.memory_space<vmem>>, vector<128x128xf32>,
    return
  }
  func.func @transform_0(%arg0: i32) -> (i32, i32) {
    %c0_i32 = arith.constant 0 : i32
    %c0_i32_0 = arith.constant 0 : i32
    return %arg0, %c0_i32 : i32, i32
  }
  func.func @transform_1(%arg0: i32) -> (i32, i32) {
    %c0_i32 = arith.constant 0 : i32
    %c0_i32_0 = arith.constant 0 : i32
    %c0_i32_1 = arith.constant 0 : i32
    return %c0_i32, %c0_i32_0 : i32, i32
  }
  func.func @transform_2(%arg0: i32) -> (i32, i32) {
    %c0_i32 = arith.constant 0 : i32
    %c0_i32_0 = arith.constant 0 : i32
    %c0_i32_1 = arith.constant 0 : i32
    return %c0_i32, %c0_i32_0 : i32, i32
  }
  func.func @transform_3(%arg0: i32) -> (i32, i32) {
    %c0_i32 = arith.constant 0 : i32
    %c0_i32_0 = arith.constant 0 : i32
    return %arg0, %c0_i32 : i32, i32
  }
}

module attributes {stable_mosaic.version = 11 : i64} {
  func.func @_matmul_kernel(%arg0: i32, %arg1: memref<32x128xf32, #tpu.memory_space<vmem>>, %arg2: memref<128x128xf32, #tpu.memory_space<vmem>>, %arg3: memref<1x128xf32, #tpu.memory_space<vmem>>, %arg4: memref<32x128xf32, #tpu.memory_space<vmem>>) attributes {dimension_semantics = [#tpu.dimension_semantics<parallel>], iteration_bounds = array<i64: 1>, scalar_prefetch = 0 : i64, scratch_operands = 0 : i64, tpu.core_type = #tpu.core_type<tc>, window_params = [{transform_indices = @transform_0, window_bounds = array<i64: 32, 128>}, {pipeline_mode = #tpu.pipeline_mode<synchronous>, transform_indices = @transform_1, window_bounds = array<i64: 128, 128>}, {pipeline_mode = #tpu.pipeline_mode<synchronous>, transform_indices = @transform_2, window_bounds = array<i64: 1, 128>}, {transform_indices = @transform_3, window_bounds = array<i64: 32, 128>}]} {
    %c0 = arith.constant 0 : index
    %c0_0 = arith.constant 0 : index
    %0 = vector.load %arg1[%c0, %c0_0] : memref<32x128xf32, #tpu.memory_space<vmem>>, vector<32x128xf32>
    %c0_1 = arith.constant 0 : index
    %c0_2 = arith.constant 0 : index
    %1 = vector.load %arg2[%c0_1, %c0_2] : memref<128x128xf32, #tpu.memory_space<vmem>>, vector<128x128xf32>
    %2 = arith.truncf %0 : vector<32x128xf32> to vector<32x128xbf16>
    %3 = arith.truncf %1 : vector<128x128xf32> to vector<128x128xbf16>
    %cst = arith.constant dense<0.000000e+00> : vector<32x128xf32>
    %4 = tpu.matmul %2, %3, %cst {dimension_numbers = #tpu.dot_dimension_numbers<[1], [0], [0], [1], [0, 0, 1, 1], [], []>} : vector<32x128xbf16>, vector<128x128xbf16>, vector<32x128xf32> -> vector<32x128xf32>
    %c0_3 = arith.constant 0 : index
    %c0_4 = arith.constant 0 : index
    %5 = vector.load %arg3[%c0_3, %c0_4] : memref<1x128xf32, #tpu.memory_space<vmem>>, vector<1x128xf32>
    %6 = vector.broadcast %5 : vector<1x128xf32> to vector<32x128xf32>
    %7 = arith.addf %4, %6 : vector<32x128xf32>
    %c0_5 = arith.constant 0 : index
    %c0_6 = arith.constant 0 : index
    %8 = vector.load %arg4[%c0_5, %c0_6] : memref<32x128xf32, #tpu.memory_space<vmem>>, vector<32x128xf32>
    tpu.vector_store %arg4[%c0_5, %c0_6], %7 {strides = array<i32>} : memref<32x128xf32, #tpu.memory_space<vmem>>, vector<32x128xf32>,
    return
  }
  func.func @transform_0(%arg0: i32) -> (i32, i32) {
    %c0_i32 = arith.constant 0 : i32
    %c0_i32_0 = arith.constant 0 : i32
    return %arg0, %c0_i32 : i32, i32
  }
  func.func @transform_1(%arg0: i32) -> (i32, i32) {
    %c0_i32 = arith.constant 0 : i32
    %c0_i32_0 = arith.constant 0 : i32
    %c0_i32_1 = arith.constant 0 : i32
    return %c0_i32, %c0_i32_0 : i32, i32
  }
  func.func @transform_2(%arg0: i32) -> (i32, i32) {
    %c0_i32 = arith.constant 0 : i32
    %c0_i32_0 = arith.constant 0 : i32
    %c0_i32_1 = arith.constant 0 : i32
    return %c0_i32, %c0_i32_0 : i32, i32
  }
  func.func @transform_3(%arg0: i32) -> (i32, i32) {
    %c0_i32 = arith.constant 0 : i32
    %c0_i32_0 = arith.constant 0 : i32
    return %arg0, %c0_i32 : i32, i32
  }
}

module attributes {stable_mosaic.version = 11 : i64} {
  func.func @_gap_kernel(%arg0: i32, %arg1: memref<1x4x128xf32, #tpu.memory_space<vmem>>, %arg2: memref<1x1x128xf32, #tpu.memory_space<vmem>>) attributes {dimension_semantics = [#tpu.dimension_semantics<parallel>], iteration_bounds = array<i64: 2>, scalar_prefetch = 0 : i64, scratch_operands = 0 : i64, tpu.core_type = #tpu.core_type<tc>, window_params = [{transform_indices = @transform_0, window_bounds = array<i64: 1, 4, 128>}, {transform_indices = @transform_1, window_bounds = array<i64: 1, 1, 128>}]} {
    %c0 = arith.constant 0 : index
    %c0_0 = arith.constant 0 : index
    %c0_1 = arith.constant 0 : index
    %0 = vector.load %arg1[%c0, %c0_0, %c0_1] : memref<1x4x128xf32, #tpu.memory_space<vmem>>, vector<1x4x128xf32>
    %1 = vector.shape_cast %0 : vector<1x4x128xf32> to vector<4x128xf32>
    %cst = arith.constant dense<0.000000e+00> : vector<128xf32>
    %2 = vector.multi_reduction <add>, %1, %cst [0] : vector<4x128xf32> to vector<128xf32>
    %3 = vector.shape_cast %2 : vector<128xf32> to vector<1x128xf32>
    %cst_2 = arith.constant 2.500000e-01 : f32
    %4 = vector.broadcast %cst_2 : f32 to vector<1x128xf32>
    %5 = arith.mulf %3, %4 : vector<1x128xf32>
    %c0_3 = arith.constant 0 : index
    %c0_4 = arith.constant 0 : index
    %c0_5 = arith.constant 0 : index
    %6 = vector.load %arg2[%c0_3, %c0_4, %c0_5] : memref<1x1x128xf32, #tpu.memory_space<vmem>>, vector<1x1x128xf32>
    %7 = vector.shape_cast %6 : vector<1x1x128xf32> to vector<1x128xf32>
    %8 = vector.shape_cast %5 : vector<1x128xf32> to vector<1x1x128xf32>
    tpu.vector_store %arg2[%c0_3, %c0_4, %c0_5], %8 {strides = array<i32>} : memref<1x1x128xf32, #tpu.memory_space<vmem>>, vector<1x1x128xf32>,
    return
  }
  func.func @transform_0(%arg0: i32) -> (i32, i32, i32) {
    %c0_i32 = arith.constant 0 : i32
    %c0_i32_0 = arith.constant 0 : i32
    %c0_i32_1 = arith.constant 0 : i32
    return %arg0, %c0_i32, %c0_i32_0 : i32, i32, i32
  }
  func.func @transform_1(%arg0: i32) -> (i32, i32, i32) {
    %c0_i32 = arith.constant 0 : i32
    %c0_i32_0 = arith.constant 0 : i32
    %c0_i32_1 = arith.constant 0 : i32
    return %arg0, %c0_i32, %c0_i32_0 : i32, i32, i32
  }
}

module attributes {stable_mosaic.version = 11 : i64} {
  func.func @_matmul_kernel(%arg0: i32, %arg1: memref<8x128xf32, #tpu.memory_space<vmem>>, %arg2: memref<128x128xf32, #tpu.memory_space<vmem>>, %arg3: memref<1x128xf32, #tpu.memory_space<vmem>>, %arg4: memref<8x128xf32, #tpu.memory_space<vmem>>) attributes {dimension_semantics = [#tpu.dimension_semantics<parallel>], iteration_bounds = array<i64: 1>, scalar_prefetch = 0 : i64, scratch_operands = 0 : i64, tpu.core_type = #tpu.core_type<tc>, window_params = [{transform_indices = @transform_0, window_bounds = array<i64: 8, 128>}, {pipeline_mode = #tpu.pipeline_mode<synchronous>, transform_indices = @transform_1, window_bounds = array<i64: 128, 128>}, {pipeline_mode = #tpu.pipeline_mode<synchronous>, transform_indices = @transform_2, window_bounds = array<i64: 1, 128>}, {transform_indices = @transform_3, window_bounds = array<i64: 8, 128>}]} {
    %c0 = arith.constant 0 : index
    %c0_0 = arith.constant 0 : index
    %0 = vector.load %arg1[%c0, %c0_0] : memref<8x128xf32, #tpu.memory_space<vmem>>, vector<8x128xf32>
    %c0_1 = arith.constant 0 : index
    %c0_2 = arith.constant 0 : index
    %1 = vector.load %arg2[%c0_1, %c0_2] : memref<128x128xf32, #tpu.memory_space<vmem>>, vector<128x128xf32>
    %2 = arith.truncf %0 : vector<8x128xf32> to vector<8x128xbf16>
    %3 = arith.truncf %1 : vector<128x128xf32> to vector<128x128xbf16>
    %cst = arith.constant dense<0.000000e+00> : vector<8x128xf32>
    %4 = tpu.matmul %2, %3, %cst {dimension_numbers = #tpu.dot_dimension_numbers<[1], [0], [0], [1], [0, 0, 1, 1], [], []>} : vector<8x128xbf16>, vector<128x128xbf16>, vector<8x128xf32> -> vector<8x128xf32>
    %c0_3 = arith.constant 0 : index
    %c0_4 = arith.constant 0 : index
    %5 = vector.load %arg3[%c0_3, %c0_4] : memref<1x128xf32, #tpu.memory_space<vmem>>, vector<1x128xf32>
    %6 = vector.broadcast %5 : vector<1x128xf32> to vector<8x128xf32>
    %7 = arith.addf %4, %6 : vector<8x128xf32>
    %c0_5 = arith.constant 0 : index
    %c0_6 = arith.constant 0 : index
    %8 = vector.load %arg4[%c0_5, %c0_6] : memref<8x128xf32, #tpu.memory_space<vmem>>, vector<8x128xf32>
    tpu.vector_store %arg4[%c0_5, %c0_6], %7 {strides = array<i32>} : memref<8x128xf32, #tpu.memory_space<vmem>>, vector<8x128xf32>,
    return
  }
  func.func @transform_0(%arg0: i32) -> (i32, i32) {
    %c0_i32 = arith.constant 0 : i32
    %c0_i32_0 = arith.constant 0 : i32
    return %arg0, %c0_i32 : i32, i32
  }
  func.func @transform_1(%arg0: i32) -> (i32, i32) {
    %c0_i32 = arith.constant 0 : i32
    %c0_i32_0 = arith.constant 0 : i32
    %c0_i32_1 = arith.constant 0 : i32
    return %c0_i32, %c0_i32_0 : i32, i32
  }
  func.func @transform_2(%arg0: i32) -> (i32, i32) {
    %c0_i32 = arith.constant 0 : i32
    %c0_i32_0 = arith.constant 0 : i32
    %c0_i32_1 = arith.constant 0 : i32
    return %c0_i32, %c0_i32_0 : i32, i32
  }
  func.func @transform_3(%arg0: i32) -> (i32, i32) {
    %c0_i32 = arith.constant 0 : i32
    %c0_i32_0 = arith.constant 0 : i32
    return %arg0, %c0_i32 : i32, i32
  }
}

module attributes {stable_mosaic.version = 11 : i64} {
  func.func @kernel(%arg0: i32, %arg1: memref<1x4x128xf32, #tpu.memory_space<vmem>>, %arg2: memref<128x128xf32, #tpu.memory_space<vmem>>, %arg3: memref<1x1x128xf32, #tpu.memory_space<vmem>>, %arg4: memref<128x128xf32, #tpu.memory_space<vmem>>, %arg5: memref<1x128xf32, #tpu.memory_space<vmem>>, %arg6: memref<1x4x128xf32, #tpu.memory_space<vmem>>) attributes {dimension_semantics = [#tpu.dimension_semantics<parallel>], iteration_bounds = array<i64: 2>, scalar_prefetch = 0 : i64, scratch_operands = 0 : i64, tpu.core_type = #tpu.core_type<tc>, window_params = [{transform_indices = @transform_0, window_bounds = array<i64: 1, 4, 128>}, {pipeline_mode = #tpu.pipeline_mode<synchronous>, transform_indices = @transform_1, window_bounds = array<i64: 128, 128>}, {transform_indices = @transform_2, window_bounds = array<i64: 1, 1, 128>}, {pipeline_mode = #tpu.pipeline_mode<synchronous>, transform_indices = @transform_3, window_bounds = array<i64: 128, 128>}, {pipeline_mode = #tpu.pipeline_mode<synchronous>, transform_indices = @transform_4, window_bounds = array<i64: 1, 128>}, {transform_indices = @transform_5, window_bounds = array<i64: 1, 4, 128>}]} {
    %cst = arith.constant 0.000000e+00 : f32
    %0 = vector.broadcast %cst : f32 to vector<4x128xf32>
    %c0 = arith.constant 0 : index
    %c0_0 = arith.constant 0 : index
    %c0_1 = arith.constant 0 : index
    %1 = vector.load %arg1[%c0, %c0_0, %c0_1] : memref<1x4x128xf32, #tpu.memory_space<vmem>>, vector<1x4x128xf32>
    %2 = vector.shape_cast %1 : vector<1x4x128xf32> to vector<4x128xf32>
    %cst_2 = arith.constant 0.000000e+00 : f32
    %cst_3 = arith.constant 6.000000e+00 : f32
    %3 = vector.broadcast %cst_2 : f32 to vector<4x128xf32>
    %4 = arith.maximumf %3, %2 : vector<4x128xf32>
    %5 = vector.broadcast %cst_3 : f32 to vector<4x128xf32>
    %6 = arith.minimumf %5, %4 : vector<4x128xf32>
    %7 = arith.truncf %6 : vector<4x128xf32> to vector<4x128xbf16>
    %c0_4 = arith.constant 0 : index
    %c0_5 = arith.constant 0 : index
    %8 = vector.load %arg2[%c0_4, %c0_5] : memref<128x128xf32, #tpu.memory_space<vmem>>, vector<128x128xf32>
    %9 = arith.truncf %8 : vector<128x128xf32> to vector<128x128xbf16>
    %cst_6 = arith.constant dense<0.000000e+00> : vector<4x128xf32>
    %10 = tpu.matmul %7, %9, %cst_6 {dimension_numbers = #tpu.dot_dimension_numbers<[1], [0], [0], [1], [0, 0, 1, 1], [], []>} : vector<4x128xbf16>, vector<128x128xbf16>, vector<4x128xf32> -> vector<4x128xf32>
    %11 = arith.addf %0, %10 : vector<4x128xf32>
    %c0_7 = arith.constant 0 : index
    %c0_8 = arith.constant 0 : index
    %c0_9 = arith.constant 0 : index
    %12 = vector.load %arg3[%c0_7, %c0_8, %c0_9] : memref<1x1x128xf32, #tpu.memory_space<vmem>>, vector<1x1x128xf32>
    %13 = vector.shape_cast %12 : vector<1x1x128xf32> to vector<1x128xf32>
    %cst_10 = arith.constant 0.000000e+00 : f32
    %cst_11 = arith.constant 6.000000e+00 : f32
    %14 = vector.broadcast %cst_10 : f32 to vector<1x128xf32>
    %15 = arith.maximumf %14, %13 : vector<1x128xf32>
    %16 = vector.broadcast %cst_11 : f32 to vector<1x128xf32>
    %17 = arith.minimumf %16, %15 : vector<1x128xf32>
    %18 = arith.truncf %17 : vector<1x128xf32> to vector<1x128xbf16>
    %c0_12 = arith.constant 0 : index
    %c0_13 = arith.constant 0 : index
    %19 = vector.load %arg4[%c0_12, %c0_13] : memref<128x128xf32, #tpu.memory_space<vmem>>, vector<128x128xf32>
    %20 = arith.truncf %19 : vector<128x128xf32> to vector<128x128xbf16>
    %cst_14 = arith.constant dense<0.000000e+00> : vector<1x128xf32>
    %21 = tpu.matmul %18, %20, %cst_14 {dimension_numbers = #tpu.dot_dimension_numbers<[1], [0], [0], [1], [0, 0, 1, 1], [], []>} : vector<1x128xbf16>, vector<128x128xbf16>, vector<1x128xf32> -> vector<1x128xf32>
    %22 = vector.broadcast %21 : vector<1x128xf32> to vector<4x128xf32>
    %23 = arith.addf %11, %22 : vector<4x128xf32>
    %c0_15 = arith.constant 0 : index
    %c0_16 = arith.constant 0 : index
    %24 = vector.load %arg5[%c0_15, %c0_16] : memref<1x128xf32, #tpu.memory_space<vmem>>, vector<1x128xf32>
    %25 = vector.broadcast %24 : vector<1x128xf32> to vector<4x128xf32>
    %26 = arith.addf %23, %25 : vector<4x128xf32>
    %c0_17 = arith.constant 0 : index
    %c0_18 = arith.constant 0 : index
    %c0_19 = arith.constant 0 : index
    %27 = vector.load %arg6[%c0_17, %c0_18, %c0_19] : memref<1x4x128xf32, #tpu.memory_space<vmem>>, vector<1x4x128xf32>
    %28 = vector.shape_cast %27 : vector<1x4x128xf32> to vector<4x128xf32>
    %29 = vector.shape_cast %26 : vector<4x128xf32> to vector<1x4x128xf32>
    tpu.vector_store %arg6[%c0_17, %c0_18, %c0_19], %29 {strides = array<i32>} : memref<1x4x128xf32, #tpu.memory_space<vmem>>, vector<1x4x128xf32>,
    return
  }
  func.func @transform_0(%arg0: i32) -> (i32, i32, i32) {
    %c0_i32 = arith.constant 0 : i32
    %c0_i32_0 = arith.constant 0 : i32
    %c0_i32_1 = arith.constant 0 : i32
    return %arg0, %c0_i32, %c0_i32_0 : i32, i32, i32
  }
  func.func @transform_1(%arg0: i32) -> (i32, i32) {
    %c0_i32 = arith.constant 0 : i32
    %c0_i32_0 = arith.constant 0 : i32
    %c0_i32_1 = arith.constant 0 : i32
    return %c0_i32, %c0_i32_0 : i32, i32
  }
  func.func @transform_2(%arg0: i32) -> (i32, i32, i32) {
    %c0_i32 = arith.constant 0 : i32
    %c0_i32_0 = arith.constant 0 : i32
    %c0_i32_1 = arith.constant 0 : i32
    return %arg0, %c0_i32, %c0_i32_0 : i32, i32, i32
  }
  func.func @transform_3(%arg0: i32) -> (i32, i32) {
    %c0_i32 = arith.constant 0 : i32
    %c0_i32_0 = arith.constant 0 : i32
    %c0_i32_1 = arith.constant 0 : i32
    return %c0_i32, %c0_i32_0 : i32, i32
  }
  func.func @transform_4(%arg0: i32) -> (i32, i32) {
    %c0_i32 = arith.constant 0 : i32
    %c0_i32_0 = arith.constant 0 : i32
    %c0_i32_1 = arith.constant 0 : i32
    return %c0_i32, %c0_i32_0 : i32, i32
  }
  func.func @transform_5(%arg0: i32) -> (i32, i32, i32) {
    %c0_i32 = arith.constant 0 : i32
    %c0_i32_0 = arith.constant 0 : i32
    %c0_i32_1 = arith.constant 0 : i32
    return %arg0, %c0_i32, %c0_i32_0 : i32, i32, i32
  }
}

module attributes {stable_mosaic.version = 11 : i64} {
  func.func @kernel(%arg0: i32, %arg1: memref<1x4x128xf32, #tpu.memory_space<vmem>>, %arg2: memref<128x128xf32, #tpu.memory_space<vmem>>, %arg3: memref<16x4xf32, #tpu.memory_space<vmem>>, %arg4: memref<1x1x128xf32, #tpu.memory_space<vmem>>, %arg5: memref<128x128xf32, #tpu.memory_space<vmem>>, %arg6: memref<1x16x128xf32, #tpu.memory_space<vmem>>, %arg7: memref<128x128xf32, #tpu.memory_space<vmem>>, %arg8: memref<1x4x128xf32, #tpu.memory_space<vmem>>, %arg9: memref<128x128xf32, #tpu.memory_space<vmem>>, %arg10: memref<16x4xf32, #tpu.memory_space<vmem>>, %arg11: memref<1x128xf32, #tpu.memory_space<vmem>>, %arg12: memref<1x16x128xf32, #tpu.memory_space<vmem>>) attributes {dimension_semantics = [#tpu.dimension_semantics<parallel>], iteration_bounds = array<i64: 2>, scalar_prefetch = 0 : i64, scratch_operands = 0 : i64, tpu.core_type = #tpu.core_type<tc>, window_params = [{transform_indices = @transform_0, window_bounds = array<i64: 1, 4, 128>}, {pipeline_mode = #tpu.pipeline_mode<synchronous>, transform_indices = @transform_1, window_bounds = array<i64: 128, 128>}, {pipeline_mode = #tpu.pipeline_mode<synchronous>, transform_indices = @transform_2, window_bounds = array<i64: 16, 4>}, {transform_indices = @transform_3, window_bounds = array<i64: 1, 1, 128>}, {pipeline_mode = #tpu.pipeline_mode<synchronous>, transform_indices = @transform_4, window_bounds = array<i64: 128, 128>}, {transform_indices = @transform_5, window_bounds = array<i64: 1, 16, 128>}, {pipeline_mode = #tpu.pipeline_mode<synchronous>, transform_indices = @transform_6, window_bounds = array<i64: 128, 128>}, {transform_indices = @transform_7, window_bounds = array<i64: 1, 4, 128>}, {pipeline_mode = #tpu.pipeline_mode<synchronous>, transform_indices = @transform_8, window_bounds = array<i64: 128, 128>}, {pipeline_mode = #tpu.pipeline_mode<synchronous>, transform_indices = @transform_9, window_bounds = array<i64: 16, 4>}, {pipeline_mode = #tpu.pipeline_mode<synchronous>, transform_indices = @transform_10, window_bounds = array<i64: 1, 128>}, {transform_indices = @transform_11, window_bounds = array<i64: 1, 16, 128>}]} {
    %cst = arith.constant 0.000000e+00 : f32
    %0 = vector.broadcast %cst : f32 to vector<16x128xf32>
    %c0 = arith.constant 0 : index
    %c0_0 = arith.constant 0 : index
    %c0_1 = arith.constant 0 : index
    %1 = vector.load %arg1[%c0, %c0_0, %c0_1] : memref<1x4x128xf32, #tpu.memory_space<vmem>>, vector<1x4x128xf32>
    %2 = vector.shape_cast %1 : vector<1x4x128xf32> to vector<4x128xf32>
    %cst_2 = arith.constant 0.000000e+00 : f32
    %cst_3 = arith.constant 6.000000e+00 : f32
    %3 = vector.broadcast %cst_2 : f32 to vector<4x128xf32>
    %4 = arith.maximumf %3, %2 : vector<4x128xf32>
    %5 = vector.broadcast %cst_3 : f32 to vector<4x128xf32>
    %6 = arith.minimumf %5, %4 : vector<4x128xf32>
    %7 = arith.truncf %6 : vector<4x128xf32> to vector<4x128xbf16>
    %c0_4 = arith.constant 0 : index
    %c0_5 = arith.constant 0 : index
    %8 = vector.load %arg2[%c0_4, %c0_5] : memref<128x128xf32, #tpu.memory_space<vmem>>, vector<128x128xf32>
    %9 = arith.truncf %8 : vector<128x128xf32> to vector<128x128xbf16>
    %cst_6 = arith.constant dense<0.000000e+00> : vector<4x128xf32>
    %10 = tpu.matmul %7, %9, %cst_6 {dimension_numbers = #tpu.dot_dimension_numbers<[1], [0], [0], [1], [0, 0, 1, 1], [], []>} : vector<4x128xbf16>, vector<128x128xbf16>, vector<4x128xf32> -> vector<4x128xf32>
    %c0_7 = arith.constant 0 : index
    %c0_8 = arith.constant 0 : index
    %11 = vector.load %arg3[%c0_7, %c0_8] : memref<16x4xf32, #tpu.memory_space<vmem>>, vector<16x4xf32>
    %cst_9 = arith.constant dense<0.000000e+00> : vector<16x128xf32>
    %12 = tpu.matmul %11, %10, %cst_9 {dimension_numbers = #tpu.dot_dimension_numbers<[1], [0], [0], [1], [0, 0, 1, 1], [], []>} : vector<16x4xf32>, vector<4x128xf32>, vector<16x128xf32> -> vector<16x128xf32>
    %13 = arith.addf %0, %12 : vector<16x128xf32>
    %c0_10 = arith.constant 0 : index
    %c0_11 = arith.constant 0 : index
    %c0_12 = arith.constant 0 : index
    %14 = vector.load %arg4[%c0_10, %c0_11, %c0_12] : memref<1x1x128xf32, #tpu.memory_space<vmem>>, vector<1x1x128xf32>
    %15 = vector.shape_cast %14 : vector<1x1x128xf32> to vector<1x128xf32>
    %cst_13 = arith.constant 0.000000e+00 : f32
    %cst_14 = arith.constant 6.000000e+00 : f32
    %16 = vector.broadcast %cst_13 : f32 to vector<1x128xf32>
    %17 = arith.maximumf %16, %15 : vector<1x128xf32>
    %18 = vector.broadcast %cst_14 : f32 to vector<1x128xf32>
    %19 = arith.minimumf %18, %17 : vector<1x128xf32>
    %20 = arith.truncf %19 : vector<1x128xf32> to vector<1x128xbf16>
    %c0_15 = arith.constant 0 : index
    %c0_16 = arith.constant 0 : index
    %21 = vector.load %arg5[%c0_15, %c0_16] : memref<128x128xf32, #tpu.memory_space<vmem>>, vector<128x128xf32>
    %22 = arith.truncf %21 : vector<128x128xf32> to vector<128x128xbf16>
    %cst_17 = arith.constant dense<0.000000e+00> : vector<1x128xf32>
    %23 = tpu.matmul %20, %22, %cst_17 {dimension_numbers = #tpu.dot_dimension_numbers<[1], [0], [0], [1], [0, 0, 1, 1], [], []>} : vector<1x128xbf16>, vector<128x128xbf16>, vector<1x128xf32> -> vector<1x128xf32>
    %24 = vector.broadcast %23 : vector<1x128xf32> to vector<16x128xf32>
    %25 = arith.addf %13, %24 : vector<16x128xf32>
    %c0_18 = arith.constant 0 : index
    %c0_19 = arith.constant 0 : index
    %c0_20 = arith.constant 0 : index
    %26 = vector.load %arg6[%c0_18, %c0_19, %c0_20] : memref<1x16x128xf32, #tpu.memory_space<vmem>>, vector<1x16x128xf32>
    %27 = vector.shape_cast %26 : vector<1x16x128xf32> to vector<16x128xf32>
    %cst_21 = arith.constant 0.000000e+00 : f32
    %cst_22 = arith.constant 6.000000e+00 : f32
    %28 = vector.broadcast %cst_21 : f32 to vector<16x128xf32>
    %29 = arith.maximumf %28, %27 : vector<16x128xf32>
    %30 = vector.broadcast %cst_22 : f32 to vector<16x128xf32>
    %31 = arith.minimumf %30, %29 : vector<16x128xf32>
    %32 = arith.truncf %31 : vector<16x128xf32> to vector<16x128xbf16>
    %c0_23 = arith.constant 0 : index
    %c0_24 = arith.constant 0 : index
    %33 = vector.load %arg7[%c0_23, %c0_24] : memref<128x128xf32, #tpu.memory_space<vmem>>, vector<128x128xf32>
    %34 = arith.truncf %33 : vector<128x128xf32> to vector<128x128xbf16>
    %cst_25 = arith.constant dense<0.000000e+00> : vector<16x128xf32>
    %35 = tpu.matmul %32, %34, %cst_25 {dimension_numbers = #tpu.dot_dimension_numbers<[1], [0], [0], [1], [0, 0, 1, 1], [], []>} : vector<16x128xbf16>, vector<128x128xbf16>, vector<16x128xf32> -> vector<16x128xf32>
    %36 = arith.addf %25, %35 : vector<16x128xf32>
    %c0_26 = arith.constant 0 : index
    %c0_27 = arith.constant 0 : index
    %c0_28 = arith.constant 0 : index
    %37 = vector.load %arg8[%c0_26, %c0_27, %c0_28] : memref<1x4x128xf32, #tpu.memory_space<vmem>>, vector<1x4x128xf32>
    %38 = vector.shape_cast %37 : vector<1x4x128xf32> to vector<4x128xf32>
    %cst_29 = arith.constant 0.000000e+00 : f32
    %cst_30 = arith.constant 6.000000e+00 : f32
    %39 = vector.broadcast %cst_29 : f32 to vector<4x128xf32>
    %40 = arith.maximumf %39, %38 : vector<4x128xf32>
    %41 = vector.broadcast %cst_30 : f32 to vector<4x128xf32>
    %42 = arith.minimumf %41, %40 : vector<4x128xf32>
    %43 = arith.truncf %42 : vector<4x128xf32> to vector<4x128xbf16>
    %c0_31 = arith.constant 0 : index
    %c0_32 = arith.constant 0 : index
    %44 = vector.load %arg9[%c0_31, %c0_32] : memref<128x128xf32, #tpu.memory_space<vmem>>, vector<128x128xf32>
    %45 = arith.truncf %44 : vector<128x128xf32> to vector<128x128xbf16>
    %cst_33 = arith.constant dense<0.000000e+00> : vector<4x128xf32>
    %46 = tpu.matmul %43, %45, %cst_33 {dimension_numbers = #tpu.dot_dimension_numbers<[1], [0], [0], [1], [0, 0, 1, 1], [], []>} : vector<4x128xbf16>, vector<128x128xbf16>, vector<4x128xf32> -> vector<4x128xf32>
    %c0_34 = arith.constant 0 : index
    %c0_35 = arith.constant 0 : index
    %47 = vector.load %arg10[%c0_34, %c0_35] : memref<16x4xf32, #tpu.memory_space<vmem>>, vector<16x4xf32>
    %cst_36 = arith.constant dense<0.000000e+00> : vector<16x128xf32>
    %48 = tpu.matmul %47, %46, %cst_36 {dimension_numbers = #tpu.dot_dimension_numbers<[1], [0], [0], [1], [0, 0, 1, 1], [], []>} : vector<16x4xf32>, vector<4x128xf32>, vector<16x128xf32> -> vector<16x128xf32>
    %49 = arith.addf %36, %48 : vector<16x128xf32>
    %c0_37 = arith.constant 0 : index
    %c0_38 = arith.constant 0 : index
    %50 = vector.load %arg11[%c0_37, %c0_38] : memref<1x128xf32, #tpu.memory_space<vmem>>, vector<1x128xf32>
    %51 = vector.broadcast %50 : vector<1x128xf32> to vector<16x128xf32>
    %52 = arith.addf %49, %51 : vector<16x128xf32>
    %c0_39 = arith.constant 0 : index
    %c0_40 = arith.constant 0 : index
    %c0_41 = arith.constant 0 : index
    %53 = vector.load %arg12[%c0_39, %c0_40, %c0_41] : memref<1x16x128xf32, #tpu.memory_space<vmem>>, vector<1x16x128xf32>
    %54 = vector.shape_cast %53 : vector<1x16x128xf32> to vector<16x128xf32>
    %55 = vector.shape_cast %52 : vector<16x128xf32> to vector<1x16x128xf32>
    tpu.vector_store %arg12[%c0_39, %c0_40, %c0_41], %55 {strides = array<i32>} : memref<1x16x128xf32, #tpu.memory_space<vmem>>, vector<1x16x128xf32>,
    return
  }
  func.func @transform_0(%arg0: i32) -> (i32, i32, i32) {
    %c0_i32 = arith.constant 0 : i32
    %c0_i32_0 = arith.constant 0 : i32
    %c0_i32_1 = arith.constant 0 : i32
    return %arg0, %c0_i32, %c0_i32_0 : i32, i32, i32
  }
  func.func @transform_1(%arg0: i32) -> (i32, i32) {
    %c0_i32 = arith.constant 0 : i32
    %c0_i32_0 = arith.constant 0 : i32
    %c0_i32_1 = arith.constant 0 : i32
    return %c0_i32, %c0_i32_0 : i32, i32
  }
  func.func @transform_2(%arg0: i32) -> (i32, i32) {
    %c0_i32 = arith.constant 0 : i32
    %c0_i32_0 = arith.constant 0 : i32
    %c0_i32_1 = arith.constant 0 : i32
    return %c0_i32, %c0_i32_0 : i32, i32
  }
  func.func @transform_3(%arg0: i32) -> (i32, i32, i32) {
    %c0_i32 = arith.constant 0 : i32
    %c0_i32_0 = arith.constant 0 : i32
    %c0_i32_1 = arith.constant 0 : i32
    return %arg0, %c0_i32, %c0_i32_0 : i32, i32, i32
  }
  func.func @transform_4(%arg0: i32) -> (i32, i32) {
    %c0_i32 = arith.constant 0 : i32
    %c0_i32_0 = arith.constant 0 : i32
    %c0_i32_1 = arith.constant 0 : i32
    return %c0_i32, %c0_i32_0 : i32, i32
  }
  func.func @transform_5(%arg0: i32) -> (i32, i32, i32) {
    %c0_i32 = arith.constant 0 : i32
    %c0_i32_0 = arith.constant 0 : i32
    %c0_i32_1 = arith.constant 0 : i32
    return %arg0, %c0_i32, %c0_i32_0 : i32, i32, i32
  }
  func.func @transform_6(%arg0: i32) -> (i32, i32) {
    %c0_i32 = arith.constant 0 : i32
    %c0_i32_0 = arith.constant 0 : i32
    %c0_i32_1 = arith.constant 0 : i32
    return %c0_i32, %c0_i32_0 : i32, i32
  }
  func.func @transform_7(%arg0: i32) -> (i32, i32, i32) {
    %c0_i32 = arith.constant 0 : i32
    %c0_i32_0 = arith.constant 0 : i32
    %c0_i32_1 = arith.constant 0 : i32
    return %arg0, %c0_i32, %c0_i32_0 : i32, i32, i32
  }
  func.func @transform_8(%arg0: i32) -> (i32, i32) {
    %c0_i32 = arith.constant 0 : i32
    %c0_i32_0 = arith.constant 0 : i32
    %c0_i32_1 = arith.constant 0 : i32
    return %c0_i32, %c0_i32_0 : i32, i32
  }
  func.func @transform_9(%arg0: i32) -> (i32, i32) {
    %c0_i32 = arith.constant 0 : i32
    %c0_i32_0 = arith.constant 0 : i32
    %c0_i32_1 = arith.constant 0 : i32
    return %c0_i32, %c0_i32_0 : i32, i32
  }
  func.func @transform_10(%arg0: i32) -> (i32, i32) {
    %c0_i32 = arith.constant 0 : i32
    %c0_i32_0 = arith.constant 0 : i32
    %c0_i32_1 = arith.constant 0 : i32
    return %c0_i32, %c0_i32_0 : i32, i32
  }
  func.func @transform_11(%arg0: i32) -> (i32, i32, i32) {
    %c0_i32 = arith.constant 0 : i32
    %c0_i32_0 = arith.constant 0 : i32
    %c0_i32_1 = arith.constant 0 : i32
    return %arg0, %c0_i32, %c0_i32_0 : i32, i32, i32
  }
}

module attributes {stable_mosaic.version = 11 : i64} {
  func.func @kernel(%arg0: i32, %arg1: memref<1x4x128xf32, #tpu.memory_space<vmem>>, %arg2: memref<128x128xf32, #tpu.memory_space<vmem>>, %arg3: memref<64x4xf32, #tpu.memory_space<vmem>>, %arg4: memref<1x1x128xf32, #tpu.memory_space<vmem>>, %arg5: memref<128x128xf32, #tpu.memory_space<vmem>>, %arg6: memref<1x16x128xf32, #tpu.memory_space<vmem>>, %arg7: memref<128x128xf32, #tpu.memory_space<vmem>>, %arg8: memref<64x16xf32, #tpu.memory_space<vmem>>, %arg9: memref<1x4x128xf32, #tpu.memory_space<vmem>>, %arg10: memref<128x128xf32, #tpu.memory_space<vmem>>, %arg11: memref<64x4xf32, #tpu.memory_space<vmem>>, %arg12: memref<1x64x128xf32, #tpu.memory_space<vmem>>, %arg13: memref<128x128xf32, #tpu.memory_space<vmem>>, %arg14: memref<1x16x128xf32, #tpu.memory_space<vmem>>, %arg15: memref<128x128xf32, #tpu.memory_space<vmem>>, %arg16: memref<64x16xf32, #tpu.memory_space<vmem>>, %arg17: memref<1x128xf32, #tpu.memory_space<vmem>>, %arg18: memref<128x128xf32, #tpu.memory_space<vmem>>, %arg19: memref<1x128xf32, #tpu.memory_space<vmem>>, %arg20: memref<1x64x128xf32, #tpu.memory_space<vmem>>) attributes {dimension_semantics = [#tpu.dimension_semantics<parallel>], iteration_bounds = array<i64: 2>, scalar_prefetch = 0 : i64, scratch_operands = 0 : i64, tpu.core_type = #tpu.core_type<tc>, window_params = [{transform_indices = @transform_0, window_bounds = array<i64: 1, 4, 128>}, {pipeline_mode = #tpu.pipeline_mode<synchronous>, transform_indices = @transform_1, window_bounds = array<i64: 128, 128>}, {pipeline_mode = #tpu.pipeline_mode<synchronous>, transform_indices = @transform_2, window_bounds = array<i64: 64, 4>}, {transform_indices = @transform_3, window_bounds = array<i64: 1, 1, 128>}, {pipeline_mode = #tpu.pipeline_mode<synchronous>, transform_indices = @transform_4, window_bounds = array<i64: 128, 128>}, {transform_indices = @transform_5, window_bounds = array<i64: 1, 16, 128>}, {pipeline_mode = #tpu.pipeline_mode<synchronous>, transform_indices = @transform_6, window_bounds = array<i64: 128, 128>}, {pipeline_mode = #tpu.pipeline_mode<synchronous>, transform_indices = @transform_7, window_bounds = array<i64: 64, 16>}, {transform_indices = @transform_8, window_bounds = array<i64: 1, 4, 128>}, {pipeline_mode = #tpu.pipeline_mode<synchronous>, transform_indices = @transform_9, window_bounds = array<i64: 128, 128>}, {pipeline_mode = #tpu.pipeline_mode<synchronous>, transform_indices = @transform_10, window_bounds = array<i64: 64, 4>}, {transform_indices = @transform_11, window_bounds = array<i64: 1, 64, 128>}, {pipeline_mode = #tpu.pipeline_mode<synchronous>, transform_indices = @transform_12, window_bounds = array<i64: 128, 128>}, {transform_indices = @transform_13, window_bounds = array<i64: 1, 16, 128>}, {pipeline_mode = #tpu.pipeline_mode<synchronous>, transform_indices = @transform_14, window_bounds = array<i64: 128, 128>}, {pipeline_mode = #tpu.pipeline_mode<synchronous>, transform_indices = @transform_15, window_bounds = array<i64: 64, 16>}, {pipeline_mode = #tpu.pipeline_mode<synchronous>, transform_indices = @transform_16, window_bounds = array<i64: 1, 128>}, {pipeline_mode = #tpu.pipeline_mode<synchronous>, transform_indices = @transform_17, window_bounds = array<i64: 128, 128>}, {pipeline_mode = #tpu.pipeline_mode<synchronous>, transform_indices = @transform_18, window_bounds = array<i64: 1, 128>}, {transform_indices = @transform_19, window_bounds = array<i64: 1, 64, 128>}]} {
    %cst = arith.constant 0.000000e+00 : f32
    %0 = vector.broadcast %cst : f32 to vector<64x128xf32>
    %c0 = arith.constant 0 : index
    %c0_0 = arith.constant 0 : index
    %c0_1 = arith.constant 0 : index
    %1 = vector.load %arg1[%c0, %c0_0, %c0_1] : memref<1x4x128xf32, #tpu.memory_space<vmem>>, vector<1x4x128xf32>
    %2 = vector.shape_cast %1 : vector<1x4x128xf32> to vector<4x128xf32>
    %cst_2 = arith.constant 0.000000e+00 : f32
    %cst_3 = arith.constant 6.000000e+00 : f32
    %3 = vector.broadcast %cst_2 : f32 to vector<4x128xf32>
    %4 = arith.maximumf %3, %2 : vector<4x128xf32>
    %5 = vector.broadcast %cst_3 : f32 to vector<4x128xf32>
    %6 = arith.minimumf %5, %4 : vector<4x128xf32>
    %7 = arith.truncf %6 : vector<4x128xf32> to vector<4x128xbf16>
    %c0_4 = arith.constant 0 : index
    %c0_5 = arith.constant 0 : index
    %8 = vector.load %arg2[%c0_4, %c0_5] : memref<128x128xf32, #tpu.memory_space<vmem>>, vector<128x128xf32>
    %9 = arith.truncf %8 : vector<128x128xf32> to vector<128x128xbf16>
    %cst_6 = arith.constant dense<0.000000e+00> : vector<4x128xf32>
    %10 = tpu.matmul %7, %9, %cst_6 {dimension_numbers = #tpu.dot_dimension_numbers<[1], [0], [0], [1], [0, 0, 1, 1], [], []>} : vector<4x128xbf16>, vector<128x128xbf16>, vector<4x128xf32> -> vector<4x128xf32>
    %c0_7 = arith.constant 0 : index
    %c0_8 = arith.constant 0 : index
    %11 = vector.load %arg3[%c0_7, %c0_8] : memref<64x4xf32, #tpu.memory_space<vmem>>, vector<64x4xf32>
    %cst_9 = arith.constant dense<0.000000e+00> : vector<64x128xf32>
    %12 = tpu.matmul %11, %10, %cst_9 {dimension_numbers = #tpu.dot_dimension_numbers<[1], [0], [0], [1], [0, 0, 1, 1], [], []>} : vector<64x4xf32>, vector<4x128xf32>, vector<64x128xf32> -> vector<64x128xf32>
    %13 = arith.addf %0, %12 : vector<64x128xf32>
    %c0_10 = arith.constant 0 : index
    %c0_11 = arith.constant 0 : index
    %c0_12 = arith.constant 0 : index
    %14 = vector.load %arg4[%c0_10, %c0_11, %c0_12] : memref<1x1x128xf32, #tpu.memory_space<vmem>>, vector<1x1x128xf32>
    %15 = vector.shape_cast %14 : vector<1x1x128xf32> to vector<1x128xf32>
    %cst_13 = arith.constant 0.000000e+00 : f32
    %cst_14 = arith.constant 6.000000e+00 : f32
    %16 = vector.broadcast %cst_13 : f32 to vector<1x128xf32>
    %17 = arith.maximumf %16, %15 : vector<1x128xf32>
    %18 = vector.broadcast %cst_14 : f32 to vector<1x128xf32>
    %19 = arith.minimumf %18, %17 : vector<1x128xf32>
    %20 = arith.truncf %19 : vector<1x128xf32> to vector<1x128xbf16>
    %c0_15 = arith.constant 0 : index
    %c0_16 = arith.constant 0 : index
    %21 = vector.load %arg5[%c0_15, %c0_16] : memref<128x128xf32, #tpu.memory_space<vmem>>, vector<128x128xf32>
    %22 = arith.truncf %21 : vector<128x128xf32> to vector<128x128xbf16>
    %cst_17 = arith.constant dense<0.000000e+00> : vector<1x128xf32>
    %23 = tpu.matmul %20, %22, %cst_17 {dimension_numbers = #tpu.dot_dimension_numbers<[1], [0], [0], [1], [0, 0, 1, 1], [], []>} : vector<1x128xbf16>, vector<128x128xbf16>, vector<1x128xf32> -> vector<1x128xf32>
    %24 = vector.broadcast %23 : vector<1x128xf32> to vector<64x128xf32>
    %25 = arith.addf %13, %24 : vector<64x128xf32>
    %c0_18 = arith.constant 0 : index
    %c0_19 = arith.constant 0 : index
    %c0_20 = arith.constant 0 : index
    %26 = vector.load %arg6[%c0_18, %c0_19, %c0_20] : memref<1x16x128xf32, #tpu.memory_space<vmem>>, vector<1x16x128xf32>
    %27 = vector.shape_cast %26 : vector<1x16x128xf32> to vector<16x128xf32>
    %cst_21 = arith.constant 0.000000e+00 : f32
    %cst_22 = arith.constant 6.000000e+00 : f32
    %28 = vector.broadcast %cst_21 : f32 to vector<16x128xf32>
    %29 = arith.maximumf %28, %27 : vector<16x128xf32>
    %30 = vector.broadcast %cst_22 : f32 to vector<16x128xf32>
    %31 = arith.minimumf %30, %29 : vector<16x128xf32>
    %32 = arith.truncf %31 : vector<16x128xf32> to vector<16x128xbf16>
    %c0_23 = arith.constant 0 : index
    %c0_24 = arith.constant 0 : index
    %33 = vector.load %arg7[%c0_23, %c0_24] : memref<128x128xf32, #tpu.memory_space<vmem>>, vector<128x128xf32>
    %34 = arith.truncf %33 : vector<128x128xf32> to vector<128x128xbf16>
    %cst_25 = arith.constant dense<0.000000e+00> : vector<16x128xf32>
    %35 = tpu.matmul %32, %34, %cst_25 {dimension_numbers = #tpu.dot_dimension_numbers<[1], [0], [0], [1], [0, 0, 1, 1], [], []>} : vector<16x128xbf16>, vector<128x128xbf16>, vector<16x128xf32> -> vector<16x128xf32>
    %c0_26 = arith.constant 0 : index
    %c0_27 = arith.constant 0 : index
    %36 = vector.load %arg8[%c0_26, %c0_27] : memref<64x16xf32, #tpu.memory_space<vmem>>, vector<64x16xf32>
    %cst_28 = arith.constant dense<0.000000e+00> : vector<64x128xf32>
    %37 = tpu.matmul %36, %35, %cst_28 {dimension_numbers = #tpu.dot_dimension_numbers<[1], [0], [0], [1], [0, 0, 1, 1], [], []>} : vector<64x16xf32>, vector<16x128xf32>, vector<64x128xf32> -> vector<64x128xf32>
    %38 = arith.addf %25, %37 : vector<64x128xf32>
    %c0_29 = arith.constant 0 : index
    %c0_30 = arith.constant 0 : index
    %c0_31 = arith.constant 0 : index
    %39 = vector.load %arg9[%c0_29, %c0_30, %c0_31] : memref<1x4x128xf32, #tpu.memory_space<vmem>>, vector<1x4x128xf32>
    %40 = vector.shape_cast %39 : vector<1x4x128xf32> to vector<4x128xf32>
    %cst_32 = arith.constant 0.000000e+00 : f32
    %cst_33 = arith.constant 6.000000e+00 : f32
    %41 = vector.broadcast %cst_32 : f32 to vector<4x128xf32>
    %42 = arith.maximumf %41, %40 : vector<4x128xf32>
    %43 = vector.broadcast %cst_33 : f32 to vector<4x128xf32>
    %44 = arith.minimumf %43, %42 : vector<4x128xf32>
    %45 = arith.truncf %44 : vector<4x128xf32> to vector<4x128xbf16>
    %c0_34 = arith.constant 0 : index
    %c0_35 = arith.constant 0 : index
    %46 = vector.load %arg10[%c0_34, %c0_35] : memref<128x128xf32, #tpu.memory_space<vmem>>, vector<128x128xf32>
    %47 = arith.truncf %46 : vector<128x128xf32> to vector<128x128xbf16>
    %cst_36 = arith.constant dense<0.000000e+00> : vector<4x128xf32>
    %48 = tpu.matmul %45, %47, %cst_36 {dimension_numbers = #tpu.dot_dimension_numbers<[1], [0], [0], [1], [0, 0, 1, 1], [], []>} : vector<4x128xbf16>, vector<128x128xbf16>, vector<4x128xf32> -> vector<4x128xf32>
    %c0_37 = arith.constant 0 : index
    %c0_38 = arith.constant 0 : index
    %49 = vector.load %arg11[%c0_37, %c0_38] : memref<64x4xf32, #tpu.memory_space<vmem>>, vector<64x4xf32>
    %cst_39 = arith.constant dense<0.000000e+00> : vector<64x128xf32>
    %50 = tpu.matmul %49, %48, %cst_39 {dimension_numbers = #tpu.dot_dimension_numbers<[1], [0], [0], [1], [0, 0, 1, 1], [], []>} : vector<64x4xf32>, vector<4x128xf32>, vector<64x128xf32> -> vector<64x128xf32>
    %51 = arith.addf %38, %50 : vector<64x128xf32>
    %c0_40 = arith.constant 0 : index
    %c0_41 = arith.constant 0 : index
    %c0_42 = arith.constant 0 : index
    %52 = vector.load %arg12[%c0_40, %c0_41, %c0_42] : memref<1x64x128xf32, #tpu.memory_space<vmem>>, vector<1x64x128xf32>
    %53 = vector.shape_cast %52 : vector<1x64x128xf32> to vector<64x128xf32>
    %cst_43 = arith.constant 0.000000e+00 : f32
    %cst_44 = arith.constant 6.000000e+00 : f32
    %54 = vector.broadcast %cst_43 : f32 to vector<64x128xf32>
    %55 = arith.maximumf %54, %53 : vector<64x128xf32>
    %56 = vector.broadcast %cst_44 : f32 to vector<64x128xf32>
    %57 = arith.minimumf %56, %55 : vector<64x128xf32>
    %58 = arith.truncf %57 : vector<64x128xf32> to vector<64x128xbf16>
    %c0_45 = arith.constant 0 : index
    %c0_46 = arith.constant 0 : index
    %59 = vector.load %arg13[%c0_45, %c0_46] : memref<128x128xf32, #tpu.memory_space<vmem>>, vector<128x128xf32>
    %60 = arith.truncf %59 : vector<128x128xf32> to vector<128x128xbf16>
    %cst_47 = arith.constant dense<0.000000e+00> : vector<64x128xf32>
    %61 = tpu.matmul %58, %60, %cst_47 {dimension_numbers = #tpu.dot_dimension_numbers<[1], [0], [0], [1], [0, 0, 1, 1], [], []>} : vector<64x128xbf16>, vector<128x128xbf16>, vector<64x128xf32> -> vector<64x128xf32>
    %62 = arith.addf %51, %61 : vector<64x128xf32>
    %c0_48 = arith.constant 0 : index
    %c0_49 = arith.constant 0 : index
    %c0_50 = arith.constant 0 : index
    %63 = vector.load %arg14[%c0_48, %c0_49, %c0_50] : memref<1x16x128xf32, #tpu.memory_space<vmem>>, vector<1x16x128xf32>
    %64 = vector.shape_cast %63 : vector<1x16x128xf32> to vector<16x128xf32>
    %cst_51 = arith.constant 0.000000e+00 : f32
    %cst_52 = arith.constant 6.000000e+00 : f32
    %65 = vector.broadcast %cst_51 : f32 to vector<16x128xf32>
    %66 = arith.maximumf %65, %64 : vector<16x128xf32>
    %67 = vector.broadcast %cst_52 : f32 to vector<16x128xf32>
    %68 = arith.minimumf %67, %66 : vector<16x128xf32>
    %69 = arith.truncf %68 : vector<16x128xf32> to vector<16x128xbf16>
    %c0_53 = arith.constant 0 : index
    %c0_54 = arith.constant 0 : index
    %70 = vector.load %arg15[%c0_53, %c0_54] : memref<128x128xf32, #tpu.memory_space<vmem>>, vector<128x128xf32>
    %71 = arith.truncf %70 : vector<128x128xf32> to vector<128x128xbf16>
    %cst_55 = arith.constant dense<0.000000e+00> : vector<16x128xf32>
    %72 = tpu.matmul %69, %71, %cst_55 {dimension_numbers = #tpu.dot_dimension_numbers<[1], [0], [0], [1], [0, 0, 1, 1], [], []>} : vector<16x128xbf16>, vector<128x128xbf16>, vector<16x128xf32> -> vector<16x128xf32>
    %c0_56 = arith.constant 0 : index
    %c0_57 = arith.constant 0 : index
    %73 = vector.load %arg16[%c0_56, %c0_57] : memref<64x16xf32, #tpu.memory_space<vmem>>, vector<64x16xf32>
    %cst_58 = arith.constant dense<0.000000e+00> : vector<64x128xf32>
    %74 = tpu.matmul %73, %72, %cst_58 {dimension_numbers = #tpu.dot_dimension_numbers<[1], [0], [0], [1], [0, 0, 1, 1], [], []>} : vector<64x16xf32>, vector<16x128xf32>, vector<64x128xf32> -> vector<64x128xf32>
    %75 = arith.addf %62, %74 : vector<64x128xf32>
    %c0_59 = arith.constant 0 : index
    %c0_60 = arith.constant 0 : index
    %76 = vector.load %arg17[%c0_59, %c0_60] : memref<1x128xf32, #tpu.memory_space<vmem>>, vector<1x128xf32>
    %77 = vector.broadcast %76 : vector<1x128xf32> to vector<64x128xf32>
    %78 = arith.addf %75, %77 : vector<64x128xf32>
    %cst_61 = arith.constant 0.000000e+00 : f32
    %cst_62 = arith.constant 6.000000e+00 : f32
    %79 = vector.broadcast %cst_61 : f32 to vector<64x128xf32>
    %80 = arith.maximumf %79, %78 : vector<64x128xf32>
    %81 = vector.broadcast %cst_62 : f32 to vector<64x128xf32>
    %82 = arith.minimumf %81, %80 : vector<64x128xf32>
    %83 = arith.truncf %82 : vector<64x128xf32> to vector<64x128xbf16>
    %c0_63 = arith.constant 0 : index
    %c0_64 = arith.constant 0 : index
    %84 = vector.load %arg18[%c0_63, %c0_64] : memref<128x128xf32, #tpu.memory_space<vmem>>, vector<128x128xf32>
    %85 = arith.truncf %84 : vector<128x128xf32> to vector<128x128xbf16>
    %cst_65 = arith.constant dense<0.000000e+00> : vector<64x128xf32>
    %86 = tpu.matmul %83, %85, %cst_65 {dimension_numbers = #tpu.dot_dimension_numbers<[1], [0], [0], [1], [0, 0, 1, 1], [], []>} : vector<64x128xbf16>, vector<128x128xbf16>, vector<64x128xf32> -> vector<64x128xf32>
    %c0_66 = arith.constant 0 : index
    %c0_67 = arith.constant 0 : index
    %87 = vector.load %arg19[%c0_66, %c0_67] : memref<1x128xf32, #tpu.memory_space<vmem>>, vector<1x128xf32>
    %88 = vector.broadcast %87 : vector<1x128xf32> to vector<64x128xf32>
    %89 = arith.addf %86, %88 : vector<64x128xf32>
    %c0_68 = arith.constant 0 : index
    %c0_69 = arith.constant 0 : index
    %c0_70 = arith.constant 0 : index
    %90 = vector.load %arg20[%c0_68, %c0_69, %c0_70] : memref<1x64x128xf32, #tpu.memory_space<vmem>>, vector<1x64x128xf32>
    %91 = vector.shape_cast %90 : vector<1x64x128xf32> to vector<64x128xf32>
    %92 = vector.shape_cast %89 : vector<64x128xf32> to vector<1x64x128xf32>
    tpu.vector_store %arg20[%c0_68, %c0_69, %c0_70], %92 {strides = array<i32>} : memref<1x64x128xf32, #tpu.memory_space<vmem>>, vector<1x64x128xf32>,
    return
  }
  func.func @transform_0(%arg0: i32) -> (i32, i32, i32) {
    %c0_i32 = arith.constant 0 : i32
    %c0_i32_0 = arith.constant 0 : i32
    %c0_i32_1 = arith.constant 0 : i32
    return %arg0, %c0_i32, %c0_i32_0 : i32, i32, i32
  }
  func.func @transform_1(%arg0: i32) -> (i32, i32) {
    %c0_i32 = arith.constant 0 : i32
    %c0_i32_0 = arith.constant 0 : i32
    %c0_i32_1 = arith.constant 0 : i32
    return %c0_i32, %c0_i32_0 : i32, i32
  }
  func.func @transform_2(%arg0: i32) -> (i32, i32) {
    %c0_i32 = arith.constant 0 : i32
    %c0_i32_0 = arith.constant 0 : i32
    %c0_i32_1 = arith.constant 0 : i32
    return %c0_i32, %c0_i32_0 : i32, i32
  }
  func.func @transform_3(%arg0: i32) -> (i32, i32, i32) {
    %c0_i32 = arith.constant 0 : i32
    %c0_i32_0 = arith.constant 0 : i32
    %c0_i32_1 = arith.constant 0 : i32
    return %arg0, %c0_i32, %c0_i32_0 : i32, i32, i32
  }
  func.func @transform_4(%arg0: i32) -> (i32, i32) {
    %c0_i32 = arith.constant 0 : i32
    %c0_i32_0 = arith.constant 0 : i32
    %c0_i32_1 = arith.constant 0 : i32
    return %c0_i32, %c0_i32_0 : i32, i32
  }
  func.func @transform_5(%arg0: i32) -> (i32, i32, i32) {
    %c0_i32 = arith.constant 0 : i32
    %c0_i32_0 = arith.constant 0 : i32
    %c0_i32_1 = arith.constant 0 : i32
    return %arg0, %c0_i32, %c0_i32_0 : i32, i32, i32
  }
  func.func @transform_6(%arg0: i32) -> (i32, i32) {
    %c0_i32 = arith.constant 0 : i32
    %c0_i32_0 = arith.constant 0 : i32
    %c0_i32_1 = arith.constant 0 : i32
    return %c0_i32, %c0_i32_0 : i32, i32
  }
  func.func @transform_7(%arg0: i32) -> (i32, i32) {
    %c0_i32 = arith.constant 0 : i32
    %c0_i32_0 = arith.constant 0 : i32
    %c0_i32_1 = arith.constant 0 : i32
    return %c0_i32, %c0_i32_0 : i32, i32
  }
  func.func @transform_8(%arg0: i32) -> (i32, i32, i32) {
    %c0_i32 = arith.constant 0 : i32
    %c0_i32_0 = arith.constant 0 : i32
    %c0_i32_1 = arith.constant 0 : i32
    return %arg0, %c0_i32, %c0_i32_0 : i32, i32, i32
  }
  func.func @transform_9(%arg0: i32) -> (i32, i32) {
    %c0_i32 = arith.constant 0 : i32
    %c0_i32_0 = arith.constant 0 : i32
    %c0_i32_1 = arith.constant 0 : i32
    return %c0_i32, %c0_i32_0 : i32, i32
  }
  func.func @transform_10(%arg0: i32) -> (i32, i32) {
    %c0_i32 = arith.constant 0 : i32
    %c0_i32_0 = arith.constant 0 : i32
    %c0_i32_1 = arith.constant 0 : i32
    return %c0_i32, %c0_i32_0 : i32, i32
  }
  func.func @transform_11(%arg0: i32) -> (i32, i32, i32) {
    %c0_i32 = arith.constant 0 : i32
    %c0_i32_0 = arith.constant 0 : i32
    %c0_i32_1 = arith.constant 0 : i32
    return %arg0, %c0_i32, %c0_i32_0 : i32, i32, i32
  }
  func.func @transform_12(%arg0: i32) -> (i32, i32) {
    %c0_i32 = arith.constant 0 : i32
    %c0_i32_0 = arith.constant 0 : i32
    %c0_i32_1 = arith.constant 0 : i32
    return %c0_i32, %c0_i32_0 : i32, i32
  }
  func.func @transform_13(%arg0: i32) -> (i32, i32, i32) {
    %c0_i32 = arith.constant 0 : i32
    %c0_i32_0 = arith.constant 0 : i32
    %c0_i32_1 = arith.constant 0 : i32
    return %arg0, %c0_i32, %c0_i32_0 : i32, i32, i32
  }
  func.func @transform_14(%arg0: i32) -> (i32, i32) {
    %c0_i32 = arith.constant 0 : i32
    %c0_i32_0 = arith.constant 0 : i32
    %c0_i32_1 = arith.constant 0 : i32
    return %c0_i32, %c0_i32_0 : i32, i32
  }
  func.func @transform_15(%arg0: i32) -> (i32, i32) {
    %c0_i32 = arith.constant 0 : i32
    %c0_i32_0 = arith.constant 0 : i32
    %c0_i32_1 = arith.constant 0 : i32
    return %c0_i32, %c0_i32_0 : i32, i32
  }
  func.func @transform_16(%arg0: i32) -> (i32, i32) {
    %c0_i32 = arith.constant 0 : i32
    %c0_i32_0 = arith.constant 0 : i32
    %c0_i32_1 = arith.constant 0 : i32
    return %c0_i32, %c0_i32_0 : i32, i32
  }
  func.func @transform_17(%arg0: i32) -> (i32, i32) {
    %c0_i32 = arith.constant 0 : i32
    %c0_i32_0 = arith.constant 0 : i32
    %c0_i32_1 = arith.constant 0 : i32
    return %c0_i32, %c0_i32_0 : i32, i32
  }
  func.func @transform_18(%arg0: i32) -> (i32, i32) {
    %c0_i32 = arith.constant 0 : i32
    %c0_i32_0 = arith.constant 0 : i32
    %c0_i32_1 = arith.constant 0 : i32
    return %c0_i32, %c0_i32_0 : i32, i32
  }
  func.func @transform_19(%arg0: i32) -> (i32, i32, i32) {
    %c0_i32 = arith.constant 0 : i32
    %c0_i32_0 = arith.constant 0 : i32
    %c0_i32_1 = arith.constant 0 : i32
    return %arg0, %c0_i32, %c0_i32_0 : i32, i32, i32
  }
}

</mosaic_0001>

<bundles_post_ra>
// kernel: sparse_mask_forward.7
= control target key start
LH: loop header
LB: loop body
LE: loop exit
PB: predicated region body
PF: predicated region fallthrough
CT: control target
= control target key end

     0   :  { %vm73_vm0 = vcmask 1040384   ;;  %vm74_vm1 = vcmask 1041408   ;;  %v236_v1 = vmov 65535   ;;  %vm48_vm2 = vcmask 23552   ;;  %s367_s1 = inlined_call_operand.vmem [shape: f32[3,128], index: 1, kind: input, shape index: {}]   ;;  %s368_s0 = inlined_call_operand.vmem [shape: f32[128,3], index: 0, kind: input, shape index: {}]   ;;  %s369_s2 = inlined_call_operand.vmem [shape: f32[1,128], index: 2, kind: input, shape index: {}]   ;;  %s370_s3 = inlined_call_operand.vmem [shape: f32[128,128], index: 3, kind: output, shape index: {}]  }
   0x1   :  { %v31_v0 = vld [vmem:[%s367_s1] sm:$0x7]  ;;  %v75_v2 = vsel %vm73_vm0, 4294967295, %v236_v1  ;;  %v16_v4 = vld [vmem:[%s368_s0 + $0x8] sm:$0xff]  ;;  %v17_v10 = vld [vmem:[%s368_s0 + $0x10] sm:$0xff] }
   0x2   :  { %v15_v3 = vld [vmem:[%s368_s0] sm:$0xff]  ;;  %v40_v5 = vpack.c.bf16 %v31_v0, %v31_v0  ;;  %v76_v6 = vsel %vm74_vm1, %v75_v2, 0  ;;  %v24_v9 = vld [vmem:[%s368_s0 + $0x48] sm:$0xff]  ;;  %v18_v12 = vld [vmem:[%s368_s0 + $0x18] sm:$0xff] }
   0x3   :  { %v32_v7 = vpack.c.bf16 %v16_v4, %v15_v3  ;;  %v23_v8 = vld [vmem:[%s368_s0 + $0x40] sm:$0xff]  ;;  %v25_v13 = vld [vmem:[%s368_s0 + $0x50] sm:$0xff]  ;;  %v26_v14 = vld [vmem:[%s368_s0 + $0x58] sm:$0xff]  ;;  %v33_v20 = vpack.c.bf16 %v18_v12, %v17_v10 }
   0x4   :  { %v36_v11 = vpack.c.bf16 %v24_v9, %v23_v8  ;;  %v78_v15 = vand.u32 %v76_v6, %v40_v5  ;;  %v19_v16 = vld [vmem:[%s368_s0 + $0x20] sm:$0xff]  ;;  %v20_v17 = vld [vmem:[%s368_s0 + $0x28] sm:$0xff]  ;;  %v37_v21 = vpack.c.bf16 %v26_v14, %v25_v13  ;;  %v21_v24 = vld [vmem:[%s368_s0 + $0x30] sm:$0xff] }
   0x5   :  { %217 = vmatprep.mubr.msk.bf16.mxu0 %vm48_vm2, %v32_v7  ;;  %v27_v18 = vld [vmem:[%s368_s0 + $0x60] sm:$0xff]  ;;  %v28_v19 = vld [vmem:[%s368_s0 + $0x68] sm:$0xff]  ;;  %v34_v22 = vpack.c.bf16 %v20_v17, %v19_v16  ;;  %v22_v25 = vld [vmem:[%s368_s0 + $0x38] sm:$0xff] }
   0x6   :  { %225 = vmatprep.mubr.msk.bf16.mxu1 %vm48_vm2, %v36_v11  ;;  %215 = vmatprep.subr.bf16.mxu0 %v78_v15  ;;  %v38_v23 = vpack.c.bf16 %v28_v19, %v27_v18  ;;  %v29_v26 = vld [vmem:[%s368_s0 + $0x70] sm:$0xff]  ;;  %v30_v27 = vld [vmem:[%s368_s0 + $0x78] sm:$0xff]  ;;  %v35_v28 = vpack.c.bf16 %v22_v25, %v21_v24  ;;  %v197_v30 = vld [vmem:[%s369_s2] ss:$0 sm:$0xff] }
   0x7   :  { %233 = vmatprep.subr.bf16.mxu1 %v78_v15  ;;  %216 = vmatpush3.bf16.msra.mxu0 %v78_v15  ;;  %v39_v29 = vpack.c.bf16 %v30_v27, %v29_v26 }
   0x8   :  { %234 = vmatpush3.bf16.msra.mxu1 %v78_v15 }
   0xa   :  { %218 = vmatmul.mubr.msk.bf16.vlgmr.msra.gmra.mrb[0].mxu0 %vm48_vm2, %v33_v20 }
   0xb   :  { %226 = vmatmul.mubr.msk.bf16.vlgmr.msra.gmra.mrb[0].mxu1 %vm48_vm2, %v37_v21  ;;  %221 = vmatprep.mubr.msk.bf16.mxu0 %vm48_vm2, %v34_v22 }
   0xc   :  { %229 = vmatprep.mubr.msk.bf16.mxu1 %vm48_vm2, %v38_v23 }
  0x12   :  { %222 = vmatmul.mubr.msk.bf16.gmra.mrb[4].mxu0 %vm48_vm2, %v35_v28 }
  0x13   :  { %230 = vmatmul.mubr.msk.bf16.gmra.mrb[4].mxu1 %vm48_vm2, %v39_v29 }
  0xdd   :  { %v219_v31 = vpop.f32.mrb[0].mxu0 }
  0xde   :  { %v227_v32 = vpop.f32.mrb[0].mxu1  ;;  %v123_v33 = vadd.f32 %v219_v31, %v197_v30  ;;  %v114_v35 = vpop.f32.mrb[1].mxu0 }
  0xdf   :  { %v155_v34 = vadd.f32 %v227_v32, %v197_v30  ;;  %v146_v36 = vpop.f32.mrb[1].mxu1  ;;  %v115_v37 = vadd.f32 %v197_v30, %v114_v35  ;;  %v220_v39 = vpop.f32.mrb[2].mxu0 }
  0xe0   :  { %v147_v38 = vadd.f32 %v197_v30, %v146_v36  ;;  %v228_v40 = vpop.f32.mrb[2].mxu1  ;;  %179 = vst [vmem:[%s370_s3 + $0x10] sm:$0xff] %v123_v33  ;;  %v126_v41 = vadd.f32 %v220_v39, %v197_v30  ;;  %v117_v43 = vpop.f32.mrb[3].mxu0 }
  0xe1   :  { %187 = vst [vmem:[%s370_s3 + $0x50] sm:$0xff] %v155_v34  ;;  %v158_v42 = vadd.f32 %v228_v40, %v197_v30  ;;  %v149_v44 = vpop.f32.mrb[3].mxu1  ;;  %177 = vst [vmem:[%s370_s3] sm:$0xff] %v115_v37  ;;  %v118_v45 = vadd.f32 %v197_v30, %v117_v43 }
  0xe2   :  { %185 = vst [vmem:[%s370_s3 + $0x40] sm:$0xff] %v147_v38  ;;  %v150_v46 = vadd.f32 %v197_v30, %v149_v44  ;;  %180 = vst [vmem:[%s370_s3 + $0x18] sm:$0xff] %v126_v41 }
  0xe3   :  { %188 = vst [vmem:[%s370_s3 + $0x58] sm:$0xff] %v158_v42  ;;  %178 = vst [vmem:[%s370_s3 + $0x8] sm:$0xff] %v118_v45 }
  0xe4   :  { %186 = vst [vmem:[%s370_s3 + $0x48] sm:$0xff] %v150_v46 }
  0xe5   :  { %v223_v47 = vpop.f32.mrb[4].mxu0 }
  0xe6   :  { %v231_v48 = vpop.f32.mrb[4].mxu1  ;;  %v139_v49 = vadd.f32 %v223_v47, %v197_v30  ;;  %v130_v51 = vpop.f32.mrb[5].mxu0 }
  0xe7   :  { %v171_v50 = vadd.f32 %v231_v48, %v197_v30  ;;  %v162_v52 = vpop.f32.mrb[5].mxu1  ;;  %v131_v53 = vadd.f32 %v197_v30, %v130_v51  ;;  %v224_v55 = vpop.f32.mrb[6].mxu0 }
  0xe8   :  { %v163_v54 = vadd.f32 %v197_v30, %v162_v52  ;;  %v232_v56 = vpop.f32.mrb[6].mxu1  ;;  %183 = vst [vmem:[%s370_s3 + $0x30] sm:$0xff] %v139_v49  ;;  %v142_v57 = vadd.f32 %v224_v55, %v197_v30  ;;  %v133_v59 = vpop.f32.mrb[7].mxu0 }
  0xe9   :  { %191 = vst [vmem:[%s370_s3 + $0x70] sm:$0xff] %v171_v50  ;;  %v174_v58 = vadd.f32 %v232_v56, %v197_v30  ;;  %v165_v60 = vpop.f32.mrb[7].mxu1  ;;  %181 = vst [vmem:[%s370_s3 + $0x20] sm:$0xff] %v131_v53  ;;  %v134_v61 = vadd.f32 %v197_v30, %v133_v59 }
  0xea   :  { %189 = vst [vmem:[%s370_s3 + $0x60] sm:$0xff] %v163_v54  ;;  %v166_v62 = vadd.f32 %v197_v30, %v165_v60  ;;  %184 = vst [vmem:[%s370_s3 + $0x38] sm:$0xff] %v142_v57 }
  0xeb   :  { %192 = vst [vmem:[%s370_s3 + $0x78] sm:$0xff] %v174_v58  ;;  %182 = vst [vmem:[%s370_s3 + $0x28] sm:$0xff] %v134_v61 }
  0xec   :  { %190 = vst [vmem:[%s370_s3 + $0x68] sm:$0xff] %v166_v62 }

// kernel: sparse_mask_forward.8
= control target key start
LH: loop header
LB: loop body
LE: loop exit
PB: predicated region body
PF: predicated region fallthrough
CT: control target
= control target key end

     0   :  { %s235_s1 = inlined_call_operand.vmem [shape: f32[128,128], index: 1, kind: input, shape index: {}]   ;;  %s236_s0 = inlined_call_operand.vmem [shape: f32[32,128], index: 0, kind: input, shape index: {}]   ;;  %s237_s2 = inlined_call_operand.vmem [shape: f32[1,128], index: 2, kind: input, shape index: {}]   ;;  %s238_s3 = inlined_call_operand.vmem [shape: f32[32,128], index: 3, kind: output, shape index: {}]  }
   0x1   :  { %v19_v0 = vld [vmem:[%s235_s1] sm:$0xff]  ;;  %v20_v1 = vld [vmem:[%s235_s1 + $0x8] sm:$0xff]  ;;  %v21_v2 = vld [vmem:[%s235_s1 + $0x10] sm:$0xff] }
   0x2   :  { %v37_v3 = vpack.c.bf16 %v20_v1, %v19_v0  ;;  %v22_v4 = vld [vmem:[%s235_s1 + $0x18] sm:$0xff]  ;;  %v23_v6 = vld [vmem:[%s235_s1 + $0x20] sm:$0xff]  ;;  %v24_v7 = vld [vmem:[%s235_s1 + $0x28] sm:$0xff] }
   0x3   :  { %v38_v5 = vpack.c.bf16 %v22_v4, %v21_v2  ;;  %v39_v8 = vpack.c.bf16 %v24_v7, %v23_v6  ;;  %v15_v9 = vld [vmem:[%s236_s0] sm:$0xff]  ;;  %v16_v10 = vld [vmem:[%s236_s0 + $0x8] sm:$0xff]  ;;  %v25_v11 = vld [vmem:[%s235_s1 + $0x30] sm:$0xff] }
   0x4   :  { %120 = vmatprep.subr.bf16.mxu0 %v37_v3  ;;  %v26_v12 = vld [vmem:[%s235_s1 + $0x38] sm:$0xff]  ;;  %v35_v13 = vpack.c.bf16 %v16_v10, %v15_v9  ;;  %v27_v15 = vld [vmem:[%s235_s1 + $0x40] sm:$0xff]  ;;  %v28_v16 = vld [vmem:[%s235_s1 + $0x48] sm:$0xff] }
   0x5   :  { %121 = vmatpush3.bf16.msra.mxu0 %v37_v3  ;;  %v40_v14 = vpack.c.bf16 %v26_v12, %v25_v11  ;;  %v41_v17 = vpack.c.bf16 %v28_v16, %v27_v15  ;;  %v29_v18 = vld [vmem:[%s235_s1 + $0x50] sm:$0xff]  ;;  %v30_v19 = vld [vmem:[%s235_s1 + $0x58] sm:$0xff]  ;;  %v31_v21 = vld [vmem:[%s235_s1 + $0x60] sm:$0xff] }
   0x6   :  { %122 = vmatprep.subr.bf16.mxu0 %v38_v5  ;;  %136 = vmatprep.mubr.bf16.mxu0 %v35_v13  ;;  %v42_v20 = vpack.c.bf16 %v30_v19, %v29_v18  ;;  %v32_v22 = vld [vmem:[%s235_s1 + $0x68] sm:$0xff]  ;;  %v33_v24 = vld [vmem:[%s235_s1 + $0x70] sm:$0xff]  ;;  %v34_v25 = vld [vmem:[%s235_s1 + $0x78] sm:$0xff] }
   0x7   :  { %v43_v23 = vpack.c.bf16 %v32_v22, %v31_v21  ;;  %v44_v26 = vpack.c.bf16 %v34_v25, %v33_v24  ;;  %v17_v27 = vld [vmem:[%s236_s0 + $0x10] sm:$0xff]  ;;  %v18_v28 = vld [vmem:[%s236_s0 + $0x18] sm:$0xff]  ;;  %v109_v30 = vld [vmem:[%s237_s2] ss:$0 sm:$0xff] }
   0x8   :  { %v36_v29 = vpack.c.bf16 %v18_v28, %v17_v27 }
   0x9   :  { %123 = vmatpush3.bf16.msra.mxu0 %v38_v5 }
   0xa   :  { %124 = vmatprep.subr.bf16.mxu0 %v39_v8 }
   0xd   :  { %125 = vmatpush3.bf16.msra.mxu0 %v39_v8 }
   0xe   :  { %126 = vmatprep.subr.bf16.mxu0 %v40_v14 }
  0x11   :  { %127 = vmatpush3.bf16.msra.mxu0 %v40_v14 }
  0x12   :  { %128 = vmatprep.subr.bf16.mxu0 %v41_v17 }
  0x15   :  { %129 = vmatpush3.bf16.msra.mxu0 %v41_v17 }
  0x16   :  { %130 = vmatprep.subr.bf16.mxu0 %v42_v20 }
  0x19   :  { %131 = vmatpush3.bf16.msra.mxu0 %v42_v20 }
  0x1a   :  { %132 = vmatprep.subr.bf16.mxu0 %v43_v23 }
  0x1d   :  { %133 = vmatpush3.bf16.msra.mxu0 %v43_v23 }
  0x1e   :  { %134 = vmatprep.subr.bf16.mxu0 %v44_v26 }
  0x21   :  { %135 = vmatpush3.bf16.msra.mxu0 %v44_v26 }
  0x24   :  { %137 = vmatmul.mubr.bf16.vlgmr.msra.gmra.mrb[0].mxu0 %v36_v29 }
  0xf7   :  { %v138_v31 = vpop.f32.mrb[0].mxu0 }
  0xf8   :  { %v95_v32 = vadd.f32 %v138_v31, %v109_v30  ;;  %v86_v33 = vpop.f32.mrb[1].mxu0 }
  0xf9   :  { %v87_v34 = vadd.f32 %v109_v30, %v86_v33  ;;  %v139_v35 = vpop.f32.mrb[2].mxu0 }
  0xfa   :  { %103 = vst [vmem:[%s238_s3 + $0x10] sm:$0xff] %v95_v32  ;;  %v98_v36 = vadd.f32 %v139_v35, %v109_v30  ;;  %v89_v37 = vpop.f32.mrb[3].mxu0 }
  0xfb   :  { %101 = vst [vmem:[%s238_s3] sm:$0xff] %v87_v34  ;;  %v90_v38 = vadd.f32 %v109_v30, %v89_v37 }
  0xfc   :  { %104 = vst [vmem:[%s238_s3 + $0x18] sm:$0xff] %v98_v36 }
  0xfd   :  { %102 = vst [vmem:[%s238_s3 + $0x8] sm:$0xff] %v90_v38 }

// kernel: sparse_mask_forward.10
= control target key start
LH: loop header
LB: loop body
LE: loop exit
PB: predicated region body
PF: predicated region fallthrough
CT: control target
= control target key end

     0   :  { %s188_s6 = smov 0   ;;  %s208_s0 = inlined_call_operand.vmem [shape: f32[2,4,128], index: 0, kind: input, shape index: {}]   ;;  %s209_s1 = inlined_call_operand.vmem [shape: f32[2,1,128], index: 1, kind: output, shape index: {}]  }
   0x1 LB: > { %s168_s7 = sadd.s32 4294967295, %s190_s6   ;;  %p172_p0 = scmp.ge.s32.totalorder %s190_s6, 1  ;;  %s190_s6 = sphi %s188_s6, %s11_s6  }
   0x2   : > { %p86_p1 = scmp.lt.s32.totalorder %s190_s6, 3 }
   0x4   : > { %p87_p2 = pnand %p172_p0, %p86_p1 }
   0x5   : > { %p103_p3 = scmp.lt.s32.totalorder (!%p87_p2), %s168_s7, 1  ;;  %vm111_vm0 = vcmask (!%p87_p2), 1043456  }
   0x6   : > { %90 = sbr.rel (%p87_p2) target bundleno = 33 (0x21), region = 24 }
   0xd   : > { %s211_s7 = smov (!%p103_p3, %s168_s7), 1 }
   0xe   : > { %s173_s8 = sshll.u32 %s211_s7, 2  ;;  %s109_s14 = scalar_lea.vmem %s209_s1, %s211_s7 }
   0xf   : > { %s106_s11 = scalar_lea.vmem %s208_s0, %s173_s8 }
  0x10   : > { %v110_v0 = vld [vmem:[%s106_s11] sm:$0xf] }
  0x11   : > { %v112_v1 = vsel %vm111_vm0, %v110_v0, 0.0 }
  0x12   : > { %v113_v2 = vrot.slane %v112_v1, 4 }
  0x14   : > { %v114_v3 = vadd.f32 %v113_v2, %v112_v1 }
  0x16   : > { %v115_v4 = vrot.slane %v114_v3, 2 }
  0x18   : > { %v116_v5 = vadd.f32 %v115_v4, %v114_v3 }
  0x1a   : > { %v117_v6 = vrot.slane %v116_v5, 1 }
  0x1c   : > { %v118_v7 = vadd.f32 %v117_v6, %v116_v5 }
  0x1e   : > { %v119_v8 = vmul.f32 0.25, %v118_v7 }
  0x20   : > { %120 = vst [vmem:[%s109_s14] sm:$0x1] %v119_v8 }
  0x21 PF: > { %s11_s6 = sadd.s32 1, %s190_s6  }
  0x22   : > { %p8_p4 = scmp.ge.s32.totalorder %s11_s6, 4  }
  0x24   :  { %10 = sbr.rel (!%p8_p4) target bundleno = 1 (0x1), region = 54 }

// kernel: sparse_mask_forward.9
= control target key start
LH: loop header
LB: loop body
LE: loop exit
PB: predicated region body
PF: predicated region fallthrough
CT: control target
= control target key end

     0   :  { %v125_v0 = vmov 0.0   ;;  %vm126_vm0 = vmmov 0   ;;  %s204_s1 = inlined_call_operand.vmem [shape: f32[128,128], index: 1, kind: input, shape index: {}]   ;;  %s205_s0 = inlined_call_operand.vmem [shape: f32[8,128], index: 0, kind: input, shape index: {}]   ;;  %s206_s2 = inlined_call_operand.vmem [shape: f32[1,128], index: 2, kind: input, shape index: {}]   ;;  %s207_s3 = inlined_call_operand.vmem [shape: f32[8,128], index: 3, kind: output, shape index: {}]  }
   0x1   :  { %103 = vmatprep.subr.bf16.mxu0 %v125_v0  ;;  %v16_v1 = vld [vmem:[%s204_s1] sm:$0xff]  ;;  %v17_v2 = vld [vmem:[%s204_s1 + $0x8] sm:$0xff]  ;;  %v18_v3 = vld [vmem:[%s204_s1 + $0x10] sm:$0xff]  ;;  %119 = vmatprep.mubr.msk.bf16.mxu0 %vm126_vm0, %v125_v0 }
   0x2   :  { %v33_v4 = vpack.c.bf16 %v17_v2, %v16_v1  ;;  %v19_v5 = vld [vmem:[%s204_s1 + $0x18] sm:$0xff]  ;;  %v20_v7 = vld [vmem:[%s204_s1 + $0x20] sm:$0xff]  ;;  %v21_v8 = vld [vmem:[%s204_s1 + $0x28] sm:$0xff] }
   0x3   :  { %v34_v6 = vpack.c.bf16 %v19_v5, %v18_v3  ;;  %v35_v9 = vpack.c.bf16 %v21_v8, %v20_v7  ;;  %v22_v10 = vld [vmem:[%s204_s1 + $0x30] sm:$0xff]  ;;  %v23_v11 = vld [vmem:[%s204_s1 + $0x38] sm:$0xff]  ;;  %v24_v13 = vld [vmem:[%s204_s1 + $0x40] sm:$0xff] }
   0x4   :  { %104 = vmatpush3.bf16.msra.mxu0 %v33_v4  ;;  %v36_v12 = vpack.c.bf16 %v23_v11, %v22_v10  ;;  %v25_v14 = vld [vmem:[%s204_s1 + $0x48] sm:$0xff]  ;;  %v26_v16 = vld [vmem:[%s204_s1 + $0x50] sm:$0xff]  ;;  %v27_v17 = vld [vmem:[%s204_s1 + $0x58] sm:$0xff] }
   0x5   :  { %105 = vmatprep.subr.bf16.mxu0 %v125_v0  ;;  %v37_v15 = vpack.c.bf16 %v25_v14, %v24_v13  ;;  %v38_v18 = vpack.c.bf16 %v27_v17, %v26_v16  ;;  %v28_v19 = vld [vmem:[%s204_s1 + $0x60] sm:$0xff]  ;;  %v29_v20 = vld [vmem:[%s204_s1 + $0x68] sm:$0xff]  ;;  %v30_v22 = vld [vmem:[%s204_s1 + $0x70] sm:$0xff] }
   0x6   :  { %v39_v21 = vpack.c.bf16 %v29_v20, %v28_v19  ;;  %v31_v23 = vld [vmem:[%s204_s1 + $0x78] sm:$0xff]  ;;  %v15_v25 = vld [vmem:[%s205_s0] sm:$0xff] }
   0x7   :  { %v40_v24 = vpack.c.bf16 %v31_v23, %v30_v22  ;;  %v32_v26 = vpack.c.bf16 %v15_v25, %v15_v25  ;;  %v93_v27 = vld [vmem:[%s206_s2] ss:$0 sm:$0xff] }
   0x8   :  { %106 = vmatpush3.bf16.msra.mxu0 %v34_v6 }
   0x9   :  { %107 = vmatprep.subr.bf16.mxu0 %v125_v0 }
   0xc   :  { %108 = vmatpush3.bf16.msra.mxu0 %v35_v9 }
   0xd   :  { %109 = vmatprep.subr.bf16.mxu0 %v125_v0 }
  0x10   :  { %110 = vmatpush3.bf16.msra.mxu0 %v36_v12 }
  0x11   :  { %111 = vmatprep.subr.bf16.mxu0 %v125_v0 }
  0x14   :  { %112 = vmatpush3.bf16.msra.mxu0 %v37_v15 }
  0x15   :  { %113 = vmatprep.subr.bf16.mxu0 %v125_v0 }
  0x18   :  { %114 = vmatpush3.bf16.msra.mxu0 %v38_v18 }
  0x19   :  { %115 = vmatprep.subr.bf16.mxu0 %v125_v0 }
  0x1c   :  { %116 = vmatpush3.bf16.msra.mxu0 %v39_v21 }
  0x1d   :  { %117 = vmatprep.subr.bf16.mxu0 %v125_v0 }
  0x20   :  { %118 = vmatpush3.bf16.msra.mxu0 %v40_v24 }
  0x23   :  { %120 = vmatmul.mubr.bf16.vlgmr.msra.gmra.mrb[0].mxu0 %v32_v26 }
  0xf6   :  { %v82_v28 = vpop.f32.mrb[0].mxu0 }
  0xf7   :  { %v83_v29 = vadd.f32 %v93_v27, %v82_v28  ;;  %v121_v30 = vpop.f32.mrb[1].mxu0 }
  0xf8   :  { %v85_v31 = vpop.f32.mrb[2].mxu0 }
  0xf9   :  { %88 = vst [vmem:[%s207_s3] sm:$0xff] %v83_v29  ;;  %v122_v32 = vpop.f32.mrb[3].mxu0 }

// kernel: sparse_mask_forward.11
= control target key start
LH: loop header
LB: loop body
LE: loop exit
PB: predicated region body
PF: predicated region fallthrough
CT: control target
= control target key end

     0   :  { %s564_s18 = smov 0   ;;  %s713_s0 = inlined_call_operand.vmem [shape: f32[2,4,128], index: 0, kind: input, shape index: {}]   ;;  %s714_s1 = inlined_call_operand.vmem [shape: f32[128,128], index: 1, kind: input, shape index: {}]   ;;  %s715_s2 = inlined_call_operand.vmem [shape: f32[2,1,128], index: 2, kind: input, shape index: {}]   ;;  %s716_s3 = inlined_call_operand.vmem [shape: f32[128,128], index: 3, kind: input, shape index: {}]   ;;  %s717_s4 = inlined_call_operand.vmem [shape: f32[1,128], index: 4, kind: input, shape index: {}]   ;;  %s718_s5 = inlined_call_operand.vmem [shape: f32[2,4,128], index: 5, kind: output, shape index: {}]  }
   0x1 LB: > { %s446_s19 = sadd.s32 4294967295, %s530_s18   ;;  %p450_p0 = scmp.ge.s32.totalorder %s530_s18, 1  ;;  %s530_s18 = sphi %s564_s18, %s15_s18  }
   0x2   : > { %p194_p1 = scmp.lt.s32.totalorder %s530_s18, 3 }
   0x4   : > { %p195_p2 = pnand %p450_p0, %p194_p1 }
   0x5   : > { %v267_v0 = vld [vmem:[%s716_s3] sm:$0xff] (!%p195_p2)  ;;  %v268_v1 = vld [vmem:[%s716_s3 + $0x8] sm:$0xff] (!%p195_p2)  ;;  %v532_v3 = vmov (!%p195_p2), 0.0   ;;  %v269_v6 = vld [vmem:[%s716_s3 + $0x10] sm:$0xff] (!%p195_p2)  ;;  %vm533_vm0 = vmmov (!%p195_p2), 0   ;;  %p223_p3 = scmp.lt.s32.totalorder (!%p195_p2), %s446_s19, 1  ;;  %v331_v57 = vlaneseq (!%p195_p2) }
   0x6   : > { %198 = sbr.rel (%p195_p2) target bundleno = 258 (0x102), region = 40  ;;  %v239_v2 = vld [vmem:[%s714_s1] sm:$0xff] (!%p195_p2)  ;;  %474 = vmatprep.subr.bf16.mxu0 (!%p195_p2), %v532_v3  ;;  %494 = vmatprep.subr.bf16.mxu1 (!%p195_p2), %v532_v3  ;;  %v283_v4 = vpack.c.bf16 (!%p195_p2), %v268_v1, %v267_v0  ;;  %v240_v5 = vld [vmem:[%s714_s1 + $0x8] sm:$0xff] (!%p195_p2)  ;;  %v270_v7 = vld [vmem:[%s716_s3 + $0x18] sm:$0xff] (!%p195_p2) }
   0x7   : > { %v255_v8 = vpack.c.bf16 (!%p195_p2), %v240_v5, %v239_v2  ;;  %v241_v9 = vld [vmem:[%s714_s1 + $0x10] sm:$0xff] (!%p195_p2)  ;;  %v242_v10 = vld [vmem:[%s714_s1 + $0x18] sm:$0xff] (!%p195_p2)  ;;  %490 = vmatprep.mubr.msk.bf16.mxu0 (!%p195_p2), %vm533_vm0, %v532_v3  ;;  %510 = vmatprep.mubr.msk.bf16.mxu1 (!%p195_p2), %vm533_vm0, %v532_v3  ;;  %v284_v11 = vpack.c.bf16 (!%p195_p2), %v270_v7, %v269_v6  ;;  %v271_v13 = vld [vmem:[%s716_s3 + $0x20] sm:$0xff] (!%p195_p2)  ;;  %v332_v58 = vshrl.u32 (!%p195_p2), %v331_v57, 7 }
   0x8   : > { %475 = vmatpush3.bf16.msra.mxu0 (!%p195_p2), %v283_v4  ;;  %v256_v12 = vpack.c.bf16 (!%p195_p2), %v242_v10, %v241_v9  ;;  %v272_v14 = vld [vmem:[%s716_s3 + $0x28] sm:$0xff] (!%p195_p2)  ;;  %v243_v15 = vld [vmem:[%s714_s1 + $0x20] sm:$0xff] (!%p195_p2)  ;;  %v273_v19 = vld [vmem:[%s716_s3 + $0x30] sm:$0xff] (!%p195_p2) }
   0x9   : > { %495 = vmatpush3.bf16.msra.mxu1 (!%p195_p2), %v255_v8  ;;  %476 = vmatprep.subr.bf16.mxu0 (!%p195_p2), %v532_v3  ;;  %v244_v16 = vld [vmem:[%s714_s1 + $0x28] sm:$0xff] (!%p195_p2)  ;;  %v285_v17 = vpack.c.bf16 (!%p195_p2), %v272_v14, %v271_v13  ;;  %v274_v20 = vld [vmem:[%s716_s3 + $0x38] sm:$0xff] (!%p195_p2)  ;;  %v245_v21 = vld [vmem:[%s714_s1 + $0x30] sm:$0xff] (!%p195_p2)  ;;  %v333_v59 = vsub.s32 (!%p195_p2), 0, %v332_v58 }
   0xa   : > { %496 = vmatprep.subr.bf16.mxu1 (!%p195_p2), %v532_v3  ;;  %v257_v18 = vpack.c.bf16 (!%p195_p2), %v244_v16, %v243_v15  ;;  %v246_v22 = vld [vmem:[%s714_s1 + $0x38] sm:$0xff] (!%p195_p2)  ;;  %v286_v23 = vpack.c.bf16 (!%p195_p2), %v274_v20, %v273_v19  ;;  %v275_v25 = vld [vmem:[%s716_s3 + $0x40] sm:$0xff] (!%p195_p2)  ;;  %v276_v26 = vld [vmem:[%s716_s3 + $0x48] sm:$0xff] (!%p195_p2) }
   0xb   : > { %v258_v24 = vpack.c.bf16 (!%p195_p2), %v246_v22, %v245_v21  ;;  %v247_v27 = vld [vmem:[%s714_s1 + $0x40] sm:$0xff] (!%p195_p2)  ;;  %v248_v28 = vld [vmem:[%s714_s1 + $0x48] sm:$0xff] (!%p195_p2)  ;;  %v287_v29 = vpack.c.bf16 (!%p195_p2), %v276_v26, %v275_v25  ;;  %v277_v31 = vld [vmem:[%s716_s3 + $0x50] sm:$0xff] (!%p195_p2) }
   0xc   : > { %477 = vmatpush3.bf16.msra.mxu0 (!%p195_p2), %v284_v11  ;;  %v259_v30 = vpack.c.bf16 (!%p195_p2), %v248_v28, %v247_v27  ;;  %v278_v32 = vld [vmem:[%s716_s3 + $0x58] sm:$0xff] (!%p195_p2)  ;;  %v249_v33 = vld [vmem:[%s714_s1 + $0x50] sm:$0xff] (!%p195_p2)  ;;  %v279_v38 = vld [vmem:[%s716_s3 + $0x60] sm:$0xff] (!%p195_p2) }
   0xd   : > { %497 = vmatpush3.bf16.msra.mxu1 %v256_v12  ;;  %478 = vmatprep.subr.bf16.mxu0 %v532_v3  ;;  %s720_s19 = smov (!%p223_p3, %s446_s19), 1  ;;  %v250_v34 = vld [vmem:[%s714_s1 + $0x58] sm:$0xff]  ;;  %v288_v35 = vpack.c.bf16 %v278_v32, %v277_v31  ;;  %v280_v39 = vld [vmem:[%s716_s3 + $0x68] sm:$0xff]  ;;  %v251_v41 = vld [vmem:[%s714_s1 + $0x60] sm:$0xff] }
   0xe   : > { %498 = vmatprep.subr.bf16.mxu1 %v532_v3  ;;  %s451_s12 = sshll.u32 %s720_s19, 2  ;;  %s229_s21 = scalar_lea.vmem %s715_s2, %s720_s19  ;;  %v260_v37 = vpack.c.bf16 %v250_v34, %v249_v33  ;;  %v252_v42 = vld [vmem:[%s714_s1 + $0x68] sm:$0xff]  ;;  %v289_v44 = vpack.c.bf16 %v280_v39, %v279_v38  ;;  %v281_v47 = vld [vmem:[%s716_s3 + $0x70] sm:$0xff]  ;;  %v282_v48 = vld [vmem:[%s716_s3 + $0x78] sm:$0xff] }
   0xf   : > { %s226_s28 = scalar_lea.vmem %s713_s0, %s451_s12  ;;  %v263_v36 = vld [vmem:[%s229_s21] sm:$0x1]  ;;  %v261_v46 = vpack.c.bf16 %v252_v42, %v251_v41  ;;  %v253_v49 = vld [vmem:[%s714_s1 + $0x70] sm:$0xff]  ;;  %v254_v50 = vld [vmem:[%s714_s1 + $0x78] sm:$0xff]  ;;  %v290_v52 = vpack.c.bf16 %v282_v48, %v281_v47  ;;  %s233_s27 = scalar_lea.vmem %s718_s5, %s451_s12 }
  0x10   : > { %479 = vmatpush3.bf16.msra.mxu0 %v285_v17  ;;  %v235_v40 = vld [vmem:[%s226_s28] sm:$0xf]  ;;  %v264_v43 = vmax.f32 %v263_v36, 0.0  ;;  %v262_v54 = vpack.c.bf16 %v254_v50, %v253_v49 }
  0x11   : > { %499 = vmatpush3.bf16.msra.mxu1 %v257_v18  ;;  %480 = vmatprep.subr.bf16.mxu0 %v532_v3  ;;  %v236_v45 = vmax.f32 %v235_v40, 0.0  ;;  %v453_v0 = vld [vmem:[%s717_s4] ss:$0 sm:$0xff] }
  0x12   : > { %500 = vmatprep.subr.bf16.mxu1 %v532_v3  ;;  %v265_v51 = vmin.f32 %v264_v43, 6.0 }
  0x13   : > { %v237_v53 = vmin.f32 %v236_v45, 6.0 }
  0x14   : > { %481 = vmatpush3.bf16.msra.mxu0 %v286_v23  ;;  %v266_v55 = vpack.c.bf16 %v265_v51, %v265_v51 }
  0x15   : > { %501 = vmatpush3.bf16.msra.mxu1 %v258_v24  ;;  %482 = vmatprep.subr.bf16.mxu0 %v532_v3  ;;  %v238_v56 = vpack.c.bf16 %v237_v53, %v237_v53 }
  0x16   : > { %502 = vmatprep.subr.bf16.mxu1 %v532_v3 }
  0x18   : > { %483 = vmatpush3.bf16.msra.mxu0 %v287_v29 }
  0x19   : > { %503 = vmatpush3.bf16.msra.mxu1 %v259_v30  ;;  %484 = vmatprep.subr.bf16.mxu0 %v532_v3 }
  0x1a   : > { %504 = vmatprep.subr.bf16.mxu1 %v532_v3 }
  0x1c   : > { %485 = vmatpush3.bf16.msra.mxu0 %v288_v35 }
  0x1d   : > { %505 = vmatpush3.bf16.msra.mxu1 %v260_v37  ;;  %486 = vmatprep.subr.bf16.mxu0 %v532_v3 }
  0x1e   : > { %506 = vmatprep.subr.bf16.mxu1 %v532_v3 }
  0x20   : > { %487 = vmatpush3.bf16.msra.mxu0 %v289_v44 }
  0x21   : > { %507 = vmatpush3.bf16.msra.mxu1 %v261_v46  ;;  %488 = vmatprep.subr.bf16.mxu0 %v532_v3 }
  0x22   : > { %508 = vmatprep.subr.bf16.mxu1 %v532_v3 }
  0x24   : > { %489 = vmatpush3.bf16.msra.mxu0 %v290_v52 }
  0x25   : > { %509 = vmatpush3.bf16.msra.mxu1 %v262_v54 }
  0x27   : > { %491 = vmatmul.mubr.bf16.vlgmr.msra.gmra.mrb[0].mxu0 %v266_v55 }
  0x28   : > { %511 = vmatmul.mubr.bf16.vlgmr.msra.gmra.mrb[0].mxu1 %v238_v56 }
  0xfa   : > { %v325_v60 = vpop.f32.mrb[0].mxu0 }
  0xfb   : > { %v334_v61 = vrot.slane %v325_v60, %v333_v59  ;;  %v369_v62 = vpop.f32.mrb[0].mxu1  ;;  %v492_v63 = vpop.f32.mrb[1].mxu0 }
  0xfc   : > { %v512_v1 = vpop.f32.mrb[1].mxu1  ;;  %v328_v2 = vpop.f32.mrb[2].mxu0 }
  0xfd   : > { %v370_v3 = vadd.f32 %v369_v62, %v334_v61  ;;  %v372_v4 = vpop.f32.mrb[2].mxu1  ;;  %v493_v5 = vpop.f32.mrb[3].mxu0 }
  0xfe   : > { %v513_v6 = vpop.f32.mrb[3].mxu1 }
  0xff   : > { %v382_v7 = vadd.f32 %v453_v0, %v370_v3 }
 0x101   : > { %383 = vst [vmem:[%s233_s27] sm:$0xf] %v382_v7 }
 0x102 PF: > { %s15_s18 = sadd.s32 1, %s530_s18  }
 0x103   : > { %p12_p4 = scmp.ge.s32.totalorder %s15_s18, 4  }
 0x105   :  { %14 = sbr.rel (!%p12_p4) target bundleno = 1 (0x1), region = 73 }

// kernel: sparse_mask_forward.12
= control target key start
LH: loop header
LB: loop body
LE: loop exit
PB: predicated region body
PF: predicated region fallthrough
CT: control target
= control target key end

     0   :  { %s1227_s17 = smov 0   ;;  %s1525_s0 = inlined_call_operand.vmem [shape: f32[2,4,128], index: 0, kind: input, shape index: {}]   ;;  %s1526_s1 = inlined_call_operand.vmem [shape: f32[128,128], index: 1, kind: input, shape index: {}]   ;;  %s1527_s2 = inlined_call_operand.vmem [shape: f32[16,4], index: 2, kind: input, shape index: {}, may-alias: {2,9}]   ;;  %s1528_s3 = inlined_call_operand.vmem [shape: f32[2,1,128], index: 3, kind: input, shape index: {}]   ;;  %s1529_s4 = inlined_call_operand.vmem [shape: f32[128,128], index: 4, kind: input, shape index: {}]   ;;  %s1530_s5 = inlined_call_operand.vmem [shape: f32[2,16,128], index: 5, kind: input, shape index: {}]   ;;  %s1531_s6 = inlined_call_operand.vmem [shape: f32[128,128], index: 6, kind: input, shape index: {}]   ;;  %s1532_s7 = inlined_call_operand.vmem [shape: f32[2,4,128], index: 7, kind: input, shape index: {}]   ;;  %s1533_s8 = inlined_call_operand.vmem [shape: f32[128,128], index: 8, kind: input, shape index: {}]   ;;  %s1534_s9 = inlined_call_operand.vmem [shape: f32[16,4], index: 9, kind: input, shape index: {}, may-alias: {2,9}]   ;;  %s1535_s10 = inlined_call_operand.vmem [shape: f32[1,128], index: 10, kind: input, shape index: {}]   ;;  %s1536_s11 = inlined_call_operand.vmem [shape: f32[2,16,128], index: 11, kind: output, shape index: {}]  }
   0x1 LB: > { %s993_s18 = sadd.s32 4294967295, %s1163_s17   ;;  %p997_p0 = scmp.ge.s32.totalorder %s1163_s17, 1  ;;  %s1163_s17 = sphi %s1227_s17, %s21_s17  }
   0x2   : > { %p363_p1 = scmp.lt.s32.totalorder %s1163_s17, 3 }
   0x4   : > { %p364_p2 = pnand %p997_p0, %p363_p1 }
   0x5   : > { %v440_v0 = vld [vmem:[%s1526_s1] sm:$0xff] (!%p364_p2)  ;;  %v441_v1 = vld [vmem:[%s1526_s1 + $0x8] sm:$0xff] (!%p364_p2)  ;;  %v442_v2 = vld [vmem:[%s1526_s1 + $0x10] sm:$0xff] (!%p364_p2)  ;;  %v1165_v3 = vmov (!%p364_p2), 0.0   ;;  %vm1166_vm0 = vmmov (!%p364_p2), 0   ;;  %p414_p3 = scmp.lt.s32.totalorder (!%p364_p2), %s993_s18, 1 }
   0x6   : > { %367 = sbr.rel (%p364_p2) target bundleno = 717 (0x2cd), region = 64  ;;  %1057 = vmatprep.subr.bf16.mxu0 (!%p364_p2), %v1165_v3  ;;  %v456_v4 = vpack.c.bf16 (!%p364_p2), %v441_v1, %v440_v0  ;;  %v443_v5 = vld [vmem:[%s1526_s1 + $0x18] sm:$0xff] (!%p364_p2)  ;;  %1073 = vmatprep.mubr.msk.bf16.mxu0 (!%p364_p2), %vm1166_vm0, %v1165_v3  ;;  %v444_v7 = vld [vmem:[%s1526_s1 + $0x20] sm:$0xff] (!%p364_p2)  ;;  %v445_v8 = vld [vmem:[%s1526_s1 + $0x28] sm:$0xff] (!%p364_p2)  ;;  %vm578_vm1 = vcmask (!%p364_p2), 31744   ;;  %vm585_vm2 = vcmask (!%p364_p2), 1043456  }
   0x7   : > { %1077 = vmatprep.subr.bf16.mxu1 (!%p364_p2), %v1165_v3  ;;  %1093 = vmatprep.mubr.msk.bf16.mxu1 (!%p364_p2), %vm1166_vm0, %v1165_v3  ;;  %v457_v6 = vpack.c.bf16 (!%p364_p2), %v443_v5, %v442_v2  ;;  %v510_v9 = vld [vmem:[%s1529_s4] sm:$0xff] (!%p364_p2)  ;;  %v511_v10 = vld [vmem:[%s1529_s4 + $0x8] sm:$0xff] (!%p364_p2)  ;;  %v512_v12 = vld [vmem:[%s1529_s4 + $0x10] sm:$0xff] (!%p364_p2)  ;;  %v458_v13 = vpack.c.bf16 (!%p364_p2), %v445_v8, %v444_v7 }
   0x8   : > { %1058 = vmatpush3.bf16.msra.mxu0 (!%p364_p2), %v456_v4  ;;  %v526_v11 = vpack.c.bf16 (!%p364_p2), %v511_v10, %v510_v9  ;;  %v513_v14 = vld [vmem:[%s1529_s4 + $0x18] sm:$0xff] (!%p364_p2)  ;;  %v446_v15 = vld [vmem:[%s1526_s1 + $0x30] sm:$0xff] (!%p364_p2)  ;;  %v514_v18 = vld [vmem:[%s1529_s4 + $0x20] sm:$0xff] (!%p364_p2) }
   0x9   : > { %1059 = vmatprep.subr.bf16.mxu0 (!%p364_p2), %v1165_v3  ;;  %v447_v16 = vld [vmem:[%s1526_s1 + $0x38] sm:$0xff] (!%p364_p2)  ;;  %v527_v17 = vpack.c.bf16 (!%p364_p2), %v513_v14, %v512_v12  ;;  %v515_v19 = vld [vmem:[%s1529_s4 + $0x28] sm:$0xff] (!%p364_p2)  ;;  %v448_v21 = vld [vmem:[%s1526_s1 + $0x40] sm:$0xff] (!%p364_p2) }
   0xa   : > { %1078 = vmatpush3.bf16.msra.mxu1 (!%p364_p2), %v526_v11  ;;  %v459_v20 = vpack.c.bf16 (!%p364_p2), %v447_v16, %v446_v15  ;;  %v449_v22 = vld [vmem:[%s1526_s1 + $0x48] sm:$0xff] (!%p364_p2)  ;;  %v528_v23 = vpack.c.bf16 (!%p364_p2), %v515_v19, %v514_v18  ;;  %v516_v24 = vld [vmem:[%s1529_s4 + $0x30] sm:$0xff] (!%p364_p2)  ;;  %v517_v25 = vld [vmem:[%s1529_s4 + $0x38] sm:$0xff] (!%p364_p2) }
   0xb   : > { %1079 = vmatprep.subr.bf16.mxu1 (!%p364_p2), %v1165_v3  ;;  %v460_v26 = vpack.c.bf16 (!%p364_p2), %v449_v22, %v448_v21  ;;  %v450_v27 = vld [vmem:[%s1526_s1 + $0x50] sm:$0xff] (!%p364_p2)  ;;  %v451_v28 = vld [vmem:[%s1526_s1 + $0x58] sm:$0xff] (!%p364_p2)  ;;  %v529_v29 = vpack.c.bf16 (!%p364_p2), %v517_v25, %v516_v24  ;;  %v518_v30 = vld [vmem:[%s1529_s4 + $0x40] sm:$0xff] (!%p364_p2) }
   0xc   : > { %1060 = vmatpush3.bf16.msra.mxu0 (!%p364_p2), %v457_v6  ;;  %v519_v31 = vld [vmem:[%s1529_s4 + $0x48] sm:$0xff] (!%p364_p2)  ;;  %v461_v32 = vpack.c.bf16 (!%p364_p2), %v451_v28, %v450_v27  ;;  %v452_v34 = vld [vmem:[%s1526_s1 + $0x60] sm:$0xff] (!%p364_p2)  ;;  %v520_v37 = vld [vmem:[%s1529_s4 + $0x50] sm:$0xff] (!%p364_p2) }
   0xd   : > { %1061 = vmatprep.subr.bf16.mxu0 %v1165_v3  ;;  %s1538_s18 = smov (!%p414_p3, %s993_s18), 1  ;;  %v453_v35 = vld [vmem:[%s1526_s1 + $0x68] sm:$0xff]  ;;  %v530_v36 = vpack.c.bf16 %v519_v31, %v518_v30  ;;  %v521_v38 = vld [vmem:[%s1529_s4 + $0x58] sm:$0xff]  ;;  %v454_v41 = vld [vmem:[%s1526_s1 + $0x70] sm:$0xff] }
   0xe   : > { %1080 = vmatpush3.bf16.msra.mxu1 %v527_v17  ;;  %s998_s15 = sshll.u32 %s1538_s18, 2  ;;  %s420_s27 = scalar_lea.vmem %s1528_s3, %s1538_s18  ;;  %v462_v40 = vpack.c.bf16 %v453_v35, %v452_v34  ;;  %v455_v42 = vld [vmem:[%s1526_s1 + $0x78] sm:$0xff]  ;;  %v531_v43 = vpack.c.bf16 %v521_v38, %v520_v37  ;;  %v522_v45 = vld [vmem:[%s1529_s4 + $0x60] sm:$0xff]  ;;  %v523_v46 = vld [vmem:[%s1529_s4 + $0x68] sm:$0xff] }
   0xf   : > { %1081 = vmatprep.subr.bf16.mxu1 %v1165_v3  ;;  %s417_s28 = scalar_lea.vmem %s1525_s0, %s998_s15  ;;  %v506_v44 = vld [vmem:[%s420_s27] sm:$0x1]  ;;  %v463_v48 = vpack.c.bf16 %v455_v42, %v454_v41  ;;  %v532_v50 = vpack.c.bf16 %v523_v46, %v522_v45  ;;  %v524_v51 = vld [vmem:[%s1529_s4 + $0x70] sm:$0xff]  ;;  %v525_v52 = vld [vmem:[%s1529_s4 + $0x78] sm:$0xff]  ;;  %s1013_s20 = sshll.u32 %s1538_s18, 4 }
  0x10   : > { %1062 = vmatpush3.bf16.msra.mxu0 %v458_v13  ;;  %v436_v33 = vld [vmem:[%s417_s28] sm:$0xf]  ;;  %v507_v49 = vmax.f32 %v506_v44, 0.0  ;;  %v533_v55 = vpack.c.bf16 %v525_v52, %v524_v51  ;;  %v672_v57 = vld [vmem:[%s1531_s6 + $0x8] sm:$0xff]  ;;  %v673_v60 = vld [vmem:[%s1531_s6 + $0x10] sm:$0xff]  ;;  %s425_s23 = scalar_lea.vmem %s1530_s5, %s1013_s20  ;;  %s429_s24 = scalar_lea.vmem %s1532_s7, %s998_s15 }
  0x11   : > { %1063 = vmatprep.subr.bf16.mxu0 %v1165_v3  ;;  %v437_v39 = vmax.f32 %v436_v33, 0.0  ;;  %v671_v56 = vld [vmem:[%s1531_s6] sm:$0xff]  ;;  %v674_v61 = vld [vmem:[%s1531_s6 + $0x18] sm:$0xff]  ;;  %v676_v0 = vld [vmem:[%s1531_s6 + $0x28] sm:$0xff]  ;;  %s434_s29 = scalar_lea.vmem %s1536_s11, %s1013_s20 }
  0x12   : > { %1082 = vmatpush3.bf16.msra.mxu1 %v528_v23  ;;  %v508_v54 = vmin.f32 %v507_v49, 6.0  ;;  %v687_v59 = vpack.c.bf16 %v672_v57, %v671_v56  ;;  %v688_v62 = vpack.c.bf16 %v674_v61, %v673_v60  ;;  %v675_v63 = vld [vmem:[%s1531_s6 + $0x20] sm:$0xff]  ;;  %v677_v2 = vld [vmem:[%s1531_s6 + $0x30] sm:$0xff]  ;;  %v678_v4 = vld [vmem:[%s1531_s6 + $0x38] sm:$0xff] }
  0x13   : > { %1083 = vmatprep.subr.bf16.mxu1 %v1165_v3  ;;  %v438_v47 = vmin.f32 %v437_v39, 6.0  ;;  %v689_v1 = vpack.c.bf16 %v676_v0, %v675_v63  ;;  %v690_v5 = vpack.c.bf16 %v678_v4, %v677_v2  ;;  %v679_v6 = vld [vmem:[%s1531_s6 + $0x40] sm:$0xff]  ;;  %v680_v7 = vld [vmem:[%s1531_s6 + $0x48] sm:$0xff]  ;;  %v681_v9 = vld [vmem:[%s1531_s6 + $0x50] sm:$0xff] }
  0x14   : > { %1064 = vmatpush3.bf16.msra.mxu0 %v459_v20  ;;  %v509_v58 = vpack.c.bf16 %v508_v54, %v508_v54  ;;  %v691_v8 = vpack.c.bf16 %v680_v7, %v679_v6  ;;  %v682_v10 = vld [vmem:[%s1531_s6 + $0x58] sm:$0xff]  ;;  %v683_v12 = vld [vmem:[%s1531_s6 + $0x60] sm:$0xff]  ;;  %v684_v13 = vld [vmem:[%s1531_s6 + $0x68] sm:$0xff] }
  0x15   : > { %1065 = vmatprep.subr.bf16.mxu0 %v1165_v3  ;;  %v439_v53 = vpack.c.bf16 %v438_v47, %v438_v47  ;;  %v692_v11 = vpack.c.bf16 %v682_v10, %v681_v9  ;;  %v693_v14 = vpack.c.bf16 %v684_v13, %v683_v12  ;;  %v664_v15 = vld [vmem:[%s425_s23] sm:$0xff]  ;;  %v665_v16 = vld [vmem:[%s425_s23 + $0x8] sm:$0xff]  ;;  %v685_v17 = vld [vmem:[%s1531_s6 + $0x70] sm:$0xff] }
  0x16   : > { %1084 = vmatpush3.bf16.msra.mxu1 %v529_v29  ;;  %v686_v18 = vld [vmem:[%s1531_s6 + $0x78] sm:$0xff]  ;;  %v666_v19 = vmax.f32 %v664_v15, 0.0  ;;  %v667_v20 = vmax.f32 %v665_v16, 0.0  ;;  %v504_v24 = vld [vmem:[%s1527_s2] sm:$0xff]  ;;  %v743_v27 = vld [vmem:[%s1533_s8 + $0x8] sm:$0xff] }
  0x17   : > { %1085 = vmatprep.subr.bf16.mxu1 %v1165_v3  ;;  %v694_v21 = vpack.c.bf16 %v686_v18, %v685_v17  ;;  %v505_v29 = vld [vmem:[%s1527_s2 + $0x8] sm:$0xff]  ;;  %v745_v33 = vld [vmem:[%s1533_s8 + $0x18] sm:$0xff]  ;;  %v746_v37 = vld [vmem:[%s1533_s8 + $0x20] sm:$0xff] }
  0x18   : > { %1066 = vmatpush3.bf16.msra.mxu0 %v460_v26  ;;  %v668_v22 = vmin.f32 %v666_v19, 6.0  ;;  %v669_v23 = vmin.f32 %v667_v20, 6.0  ;;  %v742_v26 = vld [vmem:[%s1533_s8] sm:$0xff]  ;;  %v747_v38 = vld [vmem:[%s1533_s8 + $0x28] sm:$0xff]  ;;  %v748_v44 = vld [vmem:[%s1533_s8 + $0x30] sm:$0xff] }
  0x19   : > { %1067 = vmatprep.subr.bf16.mxu0 %v1165_v3  ;;  %v758_v30 = vpack.c.bf16 %v743_v27, %v742_v26  ;;  %v760_v42 = vpack.c.bf16 %v747_v38, %v746_v37  ;;  %v749_v45 = vld [vmem:[%s1533_s8 + $0x38] sm:$0xff]  ;;  %v750_v47 = vld [vmem:[%s1533_s8 + $0x40] sm:$0xff]  ;;  %v807_v15 = vld [vmem:[%s1534_s9 + $0x8] sm:$0xff] }
  0x1a   : > { %1086 = vmatpush3.bf16.msra.mxu1 %v530_v36  ;;  %v670_v25 = vpack.c.bf16 %v669_v23, %v668_v22  ;;  %v761_v46 = vpack.c.bf16 %v749_v45, %v748_v44  ;;  %v753_v51 = vld [vmem:[%s1533_s8 + $0x58] sm:$0xff]  ;;  %v738_v52 = vld [vmem:[%s429_s24] sm:$0xf] }
  0x1b   : > { %1087 = vmatprep.subr.bf16.mxu1 %v1165_v3  ;;  %v754_v54 = vld [vmem:[%s1533_s8 + $0x60] sm:$0xff]  ;;  %v739_v56 = vmax.f32 %v738_v52, 0.0 }
  0x1c   : > { %1068 = vmatpush3.bf16.msra.mxu0 %v461_v32  ;;  %v744_v32 = vld [vmem:[%s1533_s8 + $0x10] sm:$0xff]  ;;  %v806_v4 = vld [vmem:[%s1534_s9] sm:$0xff] }
  0x1d   : > { %1069 = vmatprep.subr.bf16.mxu0 %v1165_v3  ;;  %v759_v36 = vpack.c.bf16 %v745_v33, %v744_v32  ;;  %v740_v60 = vmin.f32 %v739_v56, 6.0  ;;  %v1010_v20 = vld [vmem:[%s1535_s10] ss:$0 sm:$0xff] }
  0x1e   : > { %1088 = vmatpush3.bf16.msra.mxu1 %v531_v43 }
  0x1f   : > { %1089 = vmatprep.subr.bf16.mxu1 %v1165_v3 }
  0x20   : > { %1070 = vmatpush3.bf16.msra.mxu0 %v462_v40 }
  0x21   : > { %1071 = vmatprep.subr.bf16.mxu0 %v1165_v3 }
  0x22   : > { %1090 = vmatpush3.bf16.msra.mxu1 %v532_v50  ;;  %v752_v50 = vld [vmem:[%s1533_s8 + $0x50] sm:$0xff] }
  0x23   : > { %1091 = vmatprep.subr.bf16.mxu1 %v1165_v3 }
  0x24   : > { %1072 = vmatpush3.bf16.msra.mxu0 %v463_v48  ;;  %v751_v48 = vld [vmem:[%s1533_s8 + $0x48] sm:$0xff] }
  0x25   : > { %v762_v49 = vpack.c.bf16 %v751_v48, %v750_v47 }
  0x26   : > { %1092 = vmatpush3.bf16.msra.mxu1 %v533_v55  ;;  %v755_v55 = vld [vmem:[%s1533_s8 + $0x68] sm:$0xff] }
  0x27   : > { %1074 = vmatmul.mubr.bf16.vlgmr.msra.gmra.mrb[0].mxu0 %v439_v53  ;;  %1102 = vmatprep.subr.bf16.mxu1 %v1165_v3  ;;  %v763_v53 = vpack.c.bf16 %v753_v51, %v752_v50  ;;  %v764_v57 = vpack.c.bf16 %v755_v55, %v754_v54 }
  0x28   : > { %1099 = vmatprep.mubr.msk.f32.mxu0 %vm578_vm1, %v504_v24 }
  0x29   : > { %1094 = vmatmul.mubr.bf16.vlgmr.msra.gmra.mrb[0].mxu1 %v509_v58  ;;  %v756_v58 = vld [vmem:[%s1533_s8 + $0x70] sm:$0xff] }
  0x2a   : > { %1103 = vmatpush3.bf16.msra.mxu1 %v687_v59  ;;  %1118 = vmatprep.mubr.msk.bf16.mxu1 %vm1166_vm0, %v1165_v3  ;;  %v757_v59 = vld [vmem:[%s1533_s8 + $0x78] sm:$0xff] }
  0x2b   : > { %1104 = vmatprep.subr.bf16.mxu1 %v1165_v3  ;;  %v765_v61 = vpack.c.bf16 %v757_v59, %v756_v58 }
  0x2e   : > { %1105 = vmatpush3.bf16.msra.mxu1 %v688_v62  ;;  %v741_v62 = vpack.c.bf16 %v740_v60, %v740_v60 }
  0x2f   : > { %1106 = vmatprep.subr.bf16.mxu1 %v1165_v3 }
  0x32   : > { %1107 = vmatpush3.bf16.msra.mxu1 %v689_v1 }
  0x33   : > { %1108 = vmatprep.subr.bf16.mxu1 %v1165_v3 }
  0x36   : > { %1109 = vmatpush3.bf16.msra.mxu1 %v690_v5  ;;  %v574_v5 = vlaneseq }
  0x37   : > { %1110 = vmatprep.subr.bf16.mxu1 %v1165_v3 }
  0x38   : > { %v575_v6 = vshrl.u32 %v574_v5, 7 }
  0x3a   : > { %1111 = vmatpush3.bf16.msra.mxu1 %v691_v8  ;;  %v576_v7 = vsub.s32 0, %v575_v6 }
  0x3b   : > { %1112 = vmatprep.subr.bf16.mxu1 %v1165_v3 }
  0x3e   : > { %1113 = vmatpush3.bf16.msra.mxu1 %v692_v11 }
  0x3f   : > { %1114 = vmatprep.subr.bf16.mxu1 %v1165_v3 }
  0x42   : > { %1115 = vmatpush3.bf16.msra.mxu1 %v693_v14 }
  0x43   : > { %1116 = vmatprep.subr.bf16.mxu1 %v1165_v3 }
  0x46   : > { %1117 = vmatpush3.bf16.msra.mxu1 %v694_v21 }
  0x49   : > { %1119 = vmatmul.mubr.bf16.vlgmr.msra.gmra.mrb[4].mxu1 %v670_v25 }
  0x4a   : > { %1144 = vmatprep.mubr.msk.f32.mxu1 %vm578_vm1, %v806_v4 }
  0xfa   : > { %v498_v28 = vpop.f32.mrb[0].mxu0 }
  0xfb   : > { %v1075_v31 = vpop.f32.mrb[1].mxu0  ;;  %1097 = vmatprep.subr.msk.mxu0 %vm585_vm2, %v498_v28 }
  0xfc   : > { %v501_v34 = vpop.f32.mrb[2].mxu0  ;;  %1098 = vmatpush3.msk.msra.mxu0 %vm585_vm2, %v498_v28  ;;  %v568_v39 = vpop.f32.mrb[0].mxu1 }
  0xfd   : > { %v1076_v35 = vpop.f32.mrb[3].mxu0  ;;  %1100 = vmatmul.mubr.msk.f32.vlgmr.msra.gmra.mrb[4].mxu0 %vm578_vm1, %v505_v29  ;;  %1122 = vmatprep.subr.bf16.mxu0 %v1165_v3  ;;  %v1095_v40 = vpop.f32.mrb[1].mxu1  ;;  %v577_v8 = vrot.slane %v568_v39, %v576_v7 }
  0xfe   : > { %1123 = vmatpush3.bf16.msra.mxu0 %v758_v30  ;;  %1138 = vmatprep.mubr.msk.bf16.mxu0 %vm1166_vm0, %v1165_v3  ;;  %v571_v41 = vpop.f32.mrb[2].mxu1 }
  0xff   : > { %1124 = vmatprep.subr.bf16.mxu0 %v1165_v3  ;;  %v1096_v43 = vpop.f32.mrb[3].mxu1 }
 0x102   : > { %1125 = vmatpush3.bf16.msra.mxu0 %v759_v36 }
 0x103   : > { %1126 = vmatprep.subr.bf16.mxu0 %v1165_v3 }
 0x106   : > { %1127 = vmatpush3.bf16.msra.mxu0 %v760_v42 }
 0x107   : > { %1128 = vmatprep.subr.bf16.mxu0 %v1165_v3 }
 0x10a   : > { %1129 = vmatpush3.bf16.msra.mxu0 %v761_v46 }
 0x10b   : > { %1130 = vmatprep.subr.bf16.mxu0 %v1165_v3 }
 0x10e   : > { %1131 = vmatpush3.bf16.msra.mxu0 %v762_v49 }
 0x10f   : > { %1132 = vmatprep.subr.bf16.mxu0 %v1165_v3 }
 0x112   : > { %1133 = vmatpush3.bf16.msra.mxu0 %v763_v53 }
 0x113   : > { %1134 = vmatprep.subr.bf16.mxu0 %v1165_v3 }
 0x116   : > { %1135 = vmatpush3.bf16.msra.mxu0 %v764_v57 }
 0x117   : > { %1136 = vmatprep.subr.bf16.mxu0 %v1165_v3 }
 0x11a   : > { %1137 = vmatpush3.bf16.msra.mxu0 %v765_v61 }
 0x11c   : > { %v729_v63 = vpop.f32.mrb[4].mxu1 }
 0x11d   : > { %1139 = vmatmul.mubr.bf16.vlgmr.msra.gmra.mrb[8].mxu0 %v741_v62  ;;  %v1120_v0 = vpop.f32.mrb[5].mxu1 }
 0x11e   : > { %v732_v1 = vpop.f32.mrb[6].mxu1 }
 0x11f   : > { %v1121_v2 = vpop.f32.mrb[7].mxu1 }
 0x1d0   : > { %v1101_v9 = vpop.f32.mrb[4].mxu0 }
 0x1d1   : > { %v661_v10 = vadd.f32 %v1101_v9, %v577_v8  ;;  %v655_v3 = vpop.f32.mrb[5].mxu0 }
 0x1d2   : > { %v656_v11 = vadd.f32 %v655_v3, %v577_v8 }
 0x1d3   : > { %v737_v12 = vadd.f32 %v732_v1, %v661_v10 }
 0x1d4   : > { %v736_v13 = vadd.f32 %v729_v63, %v656_v11 }
 0x1f0   : > { %v800_v14 = vpop.f32.mrb[8].mxu0 }
 0x1f1   : > { %v1140_v16 = vpop.f32.mrb[9].mxu0  ;;  %1142 = vmatprep.subr.msk.mxu1 %vm585_vm2, %v800_v14 }
 0x1f2   : > { %v803_v17 = vpop.f32.mrb[10].mxu0  ;;  %1143 = vmatpush3.msk.msra.mxu1 %vm585_vm2, %v800_v14 }
 0x1f3   : > { %v1141_v18 = vpop.f32.mrb[11].mxu0  ;;  %1145 = vmatmul.mubr.msk.f32.vlgmr.msra.gmra.mrb[8].mxu1 %vm578_vm1, %v807_v15 }
 0x2c6   : > { %v1146_v19 = vpop.f32.mrb[8].mxu1 }
 0x2c7   : > { %v893_v21 = vadd.f32 %v1146_v19, %v737_v12  ;;  %v883_v22 = vpop.f32.mrb[9].mxu1 }
 0x2c8   : > { %v892_v23 = vadd.f32 %v883_v22, %v736_v13 }
 0x2c9   : > { %v902_v24 = vadd.f32 %v1010_v20, %v893_v21 }
 0x2ca   : > { %v901_v25 = vadd.f32 %v1010_v20, %v892_v23 }
 0x2cb   : > { %904 = vst [vmem:[%s434_s29 + $0x8] sm:$0xff] %v902_v24 }
 0x2cc   : > { %903 = vst [vmem:[%s434_s29] sm:$0xff] %v901_v25 }
 0x2cd PF: > { %s21_s17 = sadd.s32 1, %s1163_s17  }
 0x2ce   : > { %p18_p4 = scmp.ge.s32.totalorder %s21_s17, 4  }
 0x2d0   :  { %20 = sbr.rel (!%p18_p4) target bundleno = 1 (0x1), region = 103 }

// kernel: sparse_mask_forward.13
= control target key start
LH: loop header
LB: loop body
LE: loop exit
PB: predicated region body
PF: predicated region fallthrough
CT: control target
= control target key end

     0   :  { %s3130_s0 = inlined_call_operand.vmem [shape: f32[2,4,128], index: 0, kind: input, shape index: {}]   ;;  %s3131_s1 = inlined_call_operand.vmem [shape: f32[128,128], index: 1, kind: input, shape index: {}]   ;;  %s3132_s2 = inlined_call_operand.vmem [shape: f32[64,4], index: 2, kind: input, shape index: {}, may-alias: {2,10}]   ;;  %s3133_s3 = inlined_call_operand.vmem [shape: f32[2,1,128], index: 3, kind: input, shape index: {}]   ;;  %s3134_s4 = inlined_call_operand.vmem [shape: f32[128,128], index: 4, kind: input, shape index: {}]   ;;  %s3135_s5 = inlined_call_operand.vmem [shape: f32[2,16,128], index: 5, kind: input, shape index: {}]   ;;  %s3136_s6 = inlined_call_operand.vmem [shape: f32[128,128], index: 6, kind: input, shape index: {}]   ;;  %s3137_s7 = inlined_call_operand.vmem [shape: f32[64,16], index: 7, kind: input, shape index: {}, may-alias: {7,15}]   ;;  %s3138_s8 = inlined_call_operand.vmem [shape: f32[2,4,128], index: 8, kind: input, shape index: {}]   ;;  %s3139_s9 = inlined_call_operand.vmem [shape: f32[128,128], index: 9, kind: input, shape index: {}]   ;;  %s3140_s10 = inlined_call_operand.vmem [shape: f32[64,4], index: 10, kind: input, shape index: {}, may-alias: {2,10}]   ;;  %s3141_s11 = inlined_call_operand.vmem [shape: f32[2,64,128], index: 11, kind: input, shape index: {}]   ;;  %s3142_s12 = inlined_call_operand.vmem [shape: f32[128,128], index: 12, kind: input, shape index: {}]   ;;  %s3143_s13 = inlined_call_operand.vmem [shape: f32[2,16,128], index: 13, kind: input, shape index: {}]   ;;  %s3144_s14 = inlined_call_operand.vmem [shape: f32[128,128], index: 14, kind: input, shape index: {}]   ;;  %s3145_s15 = inlined_call_operand.vmem [shape: f32[64,16], index: 15, kind: input, shape index: {}, may-alias: {7,15}]   ;;  %s3146_s16 = inlined_call_operand.vmem [shape: f32[1,128], index: 16, kind: input, shape index: {}]   ;;  %s3147_s17 = inlined_call_operand.vmem [shape: f32[128,128], index: 17, kind: input, shape index: {}]   ;;  %s3148_s18 = inlined_call_operand.vmem [shape: f32[1,128], index: 18, kind: input, shape index: {}]   ;;  %s3149_s19 = inlined_call_operand.vmem [shape: f32[2,64,128], index: 19, kind: output, shape index: {}]  }
   0x1   :  { %3153 = sst [smem:[#allocation2_spill]] %s3130_s0  ;;  %s2525_s0 = smov 0  }
   0x2   :  { %3154 = sst [smem:[#allocation3_spill]] %s3131_s1 }
   0x3   :  { %3155 = sst [smem:[#allocation4_spill]] %s3132_s2 }
   0x4   :  { %3156 = sst [smem:[#allocation5_spill]] %s3133_s3 }
   0x5 LB: > { %s2001_s30 = sadd.s32 4294967295, %s2421_s0   ;;  %p2005_p0 = scmp.ge.s32.totalorder %s2421_s0, 1  ;;  %s2421_s0 = sphi %s2525_s0, %s29_s0  }
   0x6   : > { %p583_p1 = scmp.lt.s32.totalorder %s2421_s0, 3 }
   0x8   : > { %p584_p2 = pnand %p2005_p0, %p583_p1 }
   0x9   : > { %v772_v0 = vld [vmem:[%s3134_s4] sm:$0xff] (!%p584_p2)  ;;  %v773_v1 = vld [vmem:[%s3134_s4 + $0x8] sm:$0xff] (!%p584_p2)  ;;  %v774_v2 = vld [vmem:[%s3134_s4 + $0x10] sm:$0xff] (!%p584_p2)  ;;  %v2423_v3 = vmov (!%p584_p2), 0.0   ;;  %vm2424_vm0 = vmmov (!%p584_p2), 0   ;;  %s3157_s21 = sld [smem:[#allocation3_spill]] (!%p584_p2) }
   0xa   : > { %587 = sbr.rel (%p584_p2) target bundleno = 1246 (0x4de), region = 96  ;;  %2185 = vmatprep.subr.bf16.mxu1 (!%p584_p2), %v2423_v3  ;;  %v788_v4 = vpack.c.bf16 (!%p584_p2), %v773_v1, %v772_v0  ;;  %v775_v5 = vld [vmem:[%s3134_s4 + $0x18] sm:$0xff] (!%p584_p2)  ;;  %2165 = vmatprep.subr.bf16.mxu0 (!%p584_p2), %v2423_v3  ;;  %v776_v7 = vld [vmem:[%s3134_s4 + $0x20] sm:$0xff] (!%p584_p2)  ;;  %v777_v8 = vld [vmem:[%s3134_s4 + $0x28] sm:$0xff] (!%p584_p2)  ;;  %p660_p3 = scmp.lt.s32.totalorder (!%p584_p2), %s2001_s30, 1  ;;  %vm840_vm1 = vcmask (!%p584_p2), 31744  }
   0xb   : > { %2201 = vmatprep.mubr.msk.bf16.mxu1 (!%p584_p2), %vm2424_vm0, %v2423_v3  ;;  %2181 = vmatprep.mubr.msk.bf16.mxu0 (!%p584_p2), %vm2424_vm0, %v2423_v3  ;;  %v789_v6 = vpack.c.bf16 (!%p584_p2), %v775_v5, %v774_v2  ;;  %v790_v14 = vpack.c.bf16 (!%p584_p2), %v777_v8, %v776_v7  ;;  %v778_v15 = vld [vmem:[%s3134_s4 + $0x30] sm:$0xff] (!%p584_p2)  ;;  %v779_v17 = vld [vmem:[%s3134_s4 + $0x38] sm:$0xff] (!%p584_p2)  ;;  %v780_v21 = vld [vmem:[%s3134_s4 + $0x40] sm:$0xff] (!%p584_p2)  ;;  %s3158_s24 = sld [smem:[#allocation5_spill]] (!%p584_p2)  ;;  %s3159_s28 = sld [smem:[#allocation2_spill]] (!%p584_p2)  ;;  %vm865_vm2 = vcmask (!%p584_p2), 1043456  }
   0xc   : > { %2186 = vmatpush3.bf16.msra.mxu1 (!%p584_p2), %v788_v4  ;;  %v791_v20 = vpack.c.bf16 (!%p584_p2), %v779_v17, %v778_v15  ;;  %v781_v23 = vld [vmem:[%s3134_s4 + $0x48] sm:$0xff] (!%p584_p2)  ;;  %v782_v27 = vld [vmem:[%s3134_s4 + $0x50] sm:$0xff] (!%p584_p2)  ;;  %v783_v29 = vld [vmem:[%s3134_s4 + $0x58] sm:$0xff] (!%p584_p2)  ;;  %vm1054_vm3 = vcmask (!%p584_p2), 130048  }
   0xd   : > { %2187 = vmatprep.subr.bf16.mxu1 (!%p584_p2), %v2423_v3  ;;  %v792_v26 = vpack.c.bf16 (!%p584_p2), %v781_v23, %v780_v21  ;;  %v793_v32 = vpack.c.bf16 (!%p584_p2), %v783_v29, %v782_v27  ;;  %v784_v33 = vld [vmem:[%s3134_s4 + $0x60] sm:$0xff] (!%p584_p2)  ;;  %v785_v36 = vld [vmem:[%s3134_s4 + $0x68] sm:$0xff] (!%p584_p2)  ;;  %v786_v41 = vld [vmem:[%s3134_s4 + $0x70] sm:$0xff] (!%p584_p2) }
   0xe   : > { %v794_v40 = vpack.c.bf16 (!%p584_p2), %v785_v36, %v784_v33  ;;  %v787_v44 = vld [vmem:[%s3134_s4 + $0x78] sm:$0xff] (!%p584_p2)  ;;  %v981_v50 = vld [vmem:[%s3136_s6] sm:$0xff] (!%p584_p2)  ;;  %v982_v52 = vld [vmem:[%s3136_s6 + $0x8] sm:$0xff] (!%p584_p2) }
   0xf   : > { %v696_v9 = vld [vmem:[%s3157_s21] sm:$0xff] (!%p584_p2)  ;;  %v697_v10 = vld [vmem:[%s3157_s21 + $0x8] sm:$0xff] (!%p584_p2)  ;;  %v698_v12 = vld [vmem:[%s3157_s21 + $0x10] sm:$0xff] (!%p584_p2)  ;;  %v795_v49 = vpack.c.bf16 (!%p584_p2), %v787_v44, %v786_v41  ;;  %v997_v57 = vpack.c.bf16 (!%p584_p2), %v982_v52, %v981_v50 }
  0x10   : > { %v712_v11 = vpack.c.bf16 (!%p584_p2), %v697_v10, %v696_v9  ;;  %v699_v13 = vld [vmem:[%s3157_s21 + $0x18] sm:$0xff] (!%p584_p2)  ;;  %2188 = vmatpush3.bf16.msra.mxu1 (!%p584_p2), %v789_v6  ;;  %v700_v18 = vld [vmem:[%s3157_s21 + $0x20] sm:$0xff] (!%p584_p2)  ;;  %v701_v19 = vld [vmem:[%s3157_s21 + $0x28] sm:$0xff] (!%p584_p2) }
  0x11   : > { %v713_v16 = vpack.c.bf16 %v699_v13, %v698_v12  ;;  %2189 = vmatprep.subr.bf16.mxu1 %v2423_v3  ;;  %v714_v22 = vpack.c.bf16 %v701_v19, %v700_v18  ;;  %s3163_s30 = smov (!%p660_p3, %s2001_s30), 1  ;;  %v702_v24 = vld [vmem:[%s3157_s21 + $0x30] sm:$0xff]  ;;  %v703_v25 = vld [vmem:[%s3157_s21 + $0x38] sm:$0xff]  ;;  %v704_v30 = vld [vmem:[%s3157_s21 + $0x40] sm:$0xff] }
  0x12   : > { %2166 = vmatpush3.bf16.msra.mxu0 %v712_v11  ;;  %v715_v28 = vpack.c.bf16 %v703_v25, %v702_v24  ;;  %s666_s25 = scalar_lea.vmem %s3158_s24, %s3163_s30  ;;  %v705_v31 = vld [vmem:[%s3157_s21 + $0x48] sm:$0xff]  ;;  %s2006_s29 = sshll.u32 %s3163_s30, 2  ;;  %v706_v37 = vld [vmem:[%s3157_s21 + $0x50] sm:$0xff]  ;;  %v707_v38 = vld [vmem:[%s3157_s21 + $0x58] sm:$0xff] }
  0x13   : > { %2167 = vmatprep.subr.bf16.mxu0 %v2423_v3  ;;  %v768_v34 = vld [vmem:[%s666_s25] sm:$0x1]  ;;  %v716_v35 = vpack.c.bf16 %v705_v31, %v704_v30  ;;  %s663_s20 = scalar_lea.vmem %s3159_s28, %s2006_s29  ;;  %v717_v42 = vpack.c.bf16 %v707_v38, %v706_v37  ;;  %v709_v46 = vld [vmem:[%s3157_s21 + $0x68] sm:$0xff]  ;;  %v710_v53 = vld [vmem:[%s3157_s21 + $0x70] sm:$0xff]  ;;  %s3160_s25 = sld [smem:[#allocation4_spill]] }
  0x14   : > { %2190 = vmatpush3.bf16.msra.mxu1 %v790_v14  ;;  %v769_v39 = vmax.f32 %v768_v34, 0.0  ;;  %v692_v43 = vld [vmem:[%s663_s20] sm:$0xf]  ;;  %v711_v54 = vld [vmem:[%s3157_s21 + $0x78] sm:$0xff]  ;;  %v983_v59 = vld [vmem:[%s3136_s6 + $0x10] sm:$0xff]  ;;  %s3152_s20 = sshll.u32 %s3163_s30, 4  ;;  %s675_s2 = scalar_lea.vmem %s3138_s8, %s2006_s29 }
  0x15   : > { %2191 = vmatprep.subr.bf16.mxu1 %v2423_v3  ;;  %v708_v45 = vld [vmem:[%s3157_s21 + $0x60] sm:$0xff]  ;;  %v693_v48 = vmax.f32 %v692_v43, 0.0  ;;  %v719_v58 = vpack.c.bf16 %v711_v54, %v710_v53  ;;  %v984_v60 = vld [vmem:[%s3136_s6 + $0x18] sm:$0xff]  ;;  %v986_v0 = vld [vmem:[%s3136_s6 + $0x28] sm:$0xff]  ;;  %s671_s26 = scalar_lea.vmem %s3135_s5, %s3152_s20  ;;  %s2055_s23 = sshll.u32 %s3163_s30, 6 }
  0x16   : > { %2168 = vmatpush3.bf16.msra.mxu0 %v713_v16  ;;  %v770_v47 = vmin.f32 %v769_v39, 6.0  ;;  %v718_v51 = vpack.c.bf16 %v709_v46, %v708_v45  ;;  %v998_v62 = vpack.c.bf16 %v984_v60, %v983_v59  ;;  %v985_v63 = vld [vmem:[%s3136_s6 + $0x20] sm:$0xff]  ;;  %v987_v2 = vld [vmem:[%s3136_s6 + $0x30] sm:$0xff]  ;;  %v988_v4 = vld [vmem:[%s3136_s6 + $0x38] sm:$0xff]  ;;  %s3161_s20 = sshll.u32 %s3163_s30, 4 }
  0x17   : > { %2169 = vmatprep.subr.bf16.mxu0 %v2423_v3  ;;  %v694_v56 = vmin.f32 %v693_v48, 6.0  ;;  %v999_v1 = vpack.c.bf16 %v986_v0, %v985_v63  ;;  %v1000_v5 = vpack.c.bf16 %v988_v4, %v987_v2  ;;  %v989_v6 = vld [vmem:[%s3136_s6 + $0x40] sm:$0xff]  ;;  %v990_v7 = vld [vmem:[%s3136_s6 + $0x48] sm:$0xff]  ;;  %v991_v9 = vld [vmem:[%s3136_s6 + $0x50] sm:$0xff] }
  0x18   : > { %2192 = vmatpush3.bf16.msra.mxu1 %v791_v20  ;;  %v771_v55 = vpack.c.bf16 %v770_v47, %v770_v47  ;;  %v1001_v8 = vpack.c.bf16 %v990_v7, %v989_v6  ;;  %v992_v10 = vld [vmem:[%s3136_s6 + $0x58] sm:$0xff]  ;;  %v974_v12 = vld [vmem:[%s671_s26] sm:$0xff]  ;;  %v975_v13 = vld [vmem:[%s671_s26 + $0x8] sm:$0xff]  ;;  %s680_s26 = scalar_lea.vmem %s3141_s11, %s2055_s23 }
  0x19   : > { %2193 = vmatprep.subr.bf16.mxu1 %v2423_v3  ;;  %v695_v61 = vpack.c.bf16 %v694_v56, %v694_v56  ;;  %v1002_v11 = vpack.c.bf16 %v992_v10, %v991_v9  ;;  %v993_v14 = vld [vmem:[%s3136_s6 + $0x60] sm:$0xff]  ;;  %v994_v15 = vld [vmem:[%s3136_s6 + $0x68] sm:$0xff]  ;;  %v976_v16 = vmax.f32 %v974_v12, 0.0  ;;  %v977_v17 = vmax.f32 %v975_v13, 0.0  ;;  %v995_v19 = vld [vmem:[%s3136_s6 + $0x70] sm:$0xff] }
  0x1a   : > { %2170 = vmatpush3.bf16.msra.mxu0 %v714_v22  ;;  %v1003_v18 = vpack.c.bf16 %v994_v15, %v993_v14  ;;  %v996_v20 = vld [vmem:[%s3136_s6 + $0x78] sm:$0xff]  ;;  %v760_v25 = vld [vmem:[%s3160_s25] sm:$0xff]  ;;  %v1437_v27 = vld [vmem:[%s3142_s12 + $0x8] sm:$0xff] }
  0x1b   : > { %2171 = vmatprep.subr.bf16.mxu0 %v2423_v3  ;;  %v978_v21 = vmin.f32 %v976_v16, 6.0  ;;  %v979_v22 = vmin.f32 %v977_v17, 6.0  ;;  %v1004_v23 = vpack.c.bf16 %v996_v20, %v995_v19  ;;  %v1439_v30 = vld [vmem:[%s3142_s12 + $0x18] sm:$0xff]  ;;  %v1441_v33 = vld [vmem:[%s3142_s12 + $0x28] sm:$0xff]  ;;  %v1444_v38 = vld [vmem:[%s3142_s12 + $0x40] sm:$0xff] }
  0x1c   : > { %2194 = vmatpush3.bf16.msra.mxu1 %v792_v26  ;;  %v1436_v26 = vld [vmem:[%s3142_s12] sm:$0xff]  ;;  %v1443_v36 = vld [vmem:[%s3142_s12 + $0x38] sm:$0xff]  ;;  %v1445_v39 = vld [vmem:[%s3142_s12 + $0x48] sm:$0xff] }
  0x1d   : > { %2195 = vmatprep.subr.bf16.mxu1 %v2423_v3  ;;  %v980_v24 = vpack.c.bf16 %v979_v22, %v978_v21  ;;  %v1452_v29 = vpack.c.bf16 %v1437_v27, %v1436_v26  ;;  %v1446_v41 = vld [vmem:[%s3142_s12 + $0x50] sm:$0xff]  ;;  %v1448_v44 = vld [vmem:[%s3142_s12 + $0x60] sm:$0xff]  ;;  %v1449_v45 = vld [vmem:[%s3142_s12 + $0x68] sm:$0xff] }
  0x1e   : > { %2172 = vmatpush3.bf16.msra.mxu0 %v715_v28  ;;  %v1438_v28 = vld [vmem:[%s3142_s12 + $0x10] sm:$0xff]  ;;  %v1458_v46 = vpack.c.bf16 %v1449_v45, %v1448_v44  ;;  %v1451_v48 = vld [vmem:[%s3142_s12 + $0x78] sm:$0xff]  ;;  %v1197_v9 = vld [vmem:[%s3139_s9 + $0x8] sm:$0xff] }
  0x1f   : > { %2173 = vmatprep.subr.bf16.mxu0 %v2423_v3  ;;  %v1453_v31 = vpack.c.bf16 %v1439_v30, %v1438_v28  ;;  %v1450_v47 = vld [vmem:[%s3142_s12 + $0x70] sm:$0xff]  ;;  %v763_v60 = vld [vmem:[%s3160_s25 + $0x18] sm:$0xff]  ;;  %v1047_v10 = vld [vmem:[%s3137_s7 + $0x8] sm:$0xff] }
  0x20   : > { %2196 = vmatpush3.bf16.msra.mxu1 %v793_v32  ;;  %v1440_v32 = vld [vmem:[%s3142_s12 + $0x20] sm:$0xff]  ;;  %v766_v63 = vld [vmem:[%s3160_s25 + $0x30] sm:$0xff]  ;;  %v767_v0 = vld [vmem:[%s3160_s25 + $0x38] sm:$0xff] }
  0x21   : > { %2197 = vmatprep.subr.bf16.mxu1 %v2423_v3  ;;  %v1454_v34 = vpack.c.bf16 %v1441_v33, %v1440_v32  ;;  %v1198_v12 = vld [vmem:[%s3139_s9 + $0x10] sm:$0xff]  ;;  %v1199_v13 = vld [vmem:[%s3139_s9 + $0x18] sm:$0xff]  ;;  %v1200_v17 = vld [vmem:[%s3139_s9 + $0x20] sm:$0xff] }
  0x22   : > { %2174 = vmatpush3.bf16.msra.mxu0 %v716_v35  ;;  %v1442_v35 = vld [vmem:[%s3142_s12 + $0x30] sm:$0xff]  ;;  %v1213_v15 = vpack.c.bf16 %v1199_v13, %v1198_v12  ;;  %v1049_v16 = vld [vmem:[%s3137_s7 + $0x18] sm:$0xff]  ;;  %v1050_v19 = vld [vmem:[%s3137_s7 + $0x20] sm:$0xff] }
  0x23   : > { %2175 = vmatprep.subr.bf16.mxu0 %v2423_v3  ;;  %v1455_v37 = vpack.c.bf16 %v1443_v36, %v1442_v35  ;;  %v1048_v14 = vld [vmem:[%s3137_s7 + $0x10] sm:$0xff]  ;;  %v1051_v21 = vld [vmem:[%s3137_s7 + $0x28] sm:$0xff]  ;;  %v1053_v26 = vld [vmem:[%s3137_s7 + $0x38] sm:$0xff] }
  0x24   : > { %2198 = vmatpush3.bf16.msra.mxu1 %v794_v40  ;;  %v1456_v40 = vpack.c.bf16 %v1445_v39, %v1444_v38  ;;  %v1202_v22 = vld [vmem:[%s3139_s9 + $0x30] sm:$0xff]  ;;  %v1204_v27 = vld [vmem:[%s3139_s9 + $0x40] sm:$0xff]  ;;  %v1205_v28 = vld [vmem:[%s3139_s9 + $0x48] sm:$0xff] }
  0x25   : > { %2199 = vmatprep.subr.bf16.mxu1 %v2423_v3  ;;  %v1206_v30 = vld [vmem:[%s3139_s9 + $0x50] sm:$0xff]  ;;  %v1192_v32 = vld [vmem:[%s675_s2] sm:$0xf]  ;;  %v1209_v35 = vld [vmem:[%s3139_s9 + $0x68] sm:$0xff] }
  0x26   : > { %2176 = vmatpush3.bf16.msra.mxu0 %v717_v42  ;;  %v1447_v42 = vld [vmem:[%s3142_s12 + $0x58] sm:$0xff]  ;;  %v1193_v36 = vmax.f32 %v1192_v32, 0.0  ;;  %v1210_v38 = vld [vmem:[%s3139_s9 + $0x70] sm:$0xff]  ;;  %v1409_v44 = vld [vmem:[%s680_s26 + $0x8] sm:$0xff] }
  0x27   : > { %2177 = vmatprep.subr.bf16.mxu0 %v2423_v3  ;;  %v1457_v43 = vpack.c.bf16 %v1447_v42, %v1446_v41  ;;  %v1211_v39 = vld [vmem:[%s3139_s9 + $0x78] sm:$0xff]  ;;  %v1261_v13 = vld [vmem:[%s3140_s10 + $0x8] sm:$0xff] }
  0x28   : > { %2200 = vmatpush3.bf16.msra.mxu1 %v795_v49  ;;  %v1459_v49 = vpack.c.bf16 %v1451_v48, %v1450_v47  ;;  %v1219_v41 = vpack.c.bf16 %v1211_v39, %v1210_v38  ;;  %v1410_v47 = vld [vmem:[%s680_s26 + $0x10] sm:$0xff]  ;;  %v1411_v48 = vld [vmem:[%s680_s26 + $0x18] sm:$0xff] }
  0x29   : > { %2219 = vmatprep.subr.bf16.mxu1 %v2423_v3 }
  0x2a   : > { %2178 = vmatpush3.bf16.msra.mxu0 %v718_v51 }
  0x2b   : > { %2179 = vmatprep.subr.bf16.mxu0 %v2423_v3  ;;  %2202 = vmatmul.mubr.bf16.vlgmr.msra.gmra.mrb[0].mxu1 %v771_v55  ;;  %v761_v55 = vld [vmem:[%s3160_s25 + $0x8] sm:$0xff] }
  0x2c   : > { %2220 = vmatpush3.bf16.msra.mxu1 %v997_v57  ;;  %2235 = vmatprep.mubr.msk.bf16.mxu1 %vm2424_vm0, %v2423_v3  ;;  %v762_v57 = vld [vmem:[%s3160_s25 + $0x10] sm:$0xff] }
  0x2d   : > { %2221 = vmatprep.subr.bf16.mxu1 %v2423_v3 }
  0x2e   : > { %2180 = vmatpush3.bf16.msra.mxu0 %v719_v58 }
  0x30   : > { %2222 = vmatpush3.bf16.msra.mxu1 %v998_v62  ;;  %v765_v62 = vld [vmem:[%s3160_s25 + $0x28] sm:$0xff] }
  0x31   : > { %2182 = vmatmul.mubr.bf16.vlgmr.msra.gmra.mrb[0].mxu0 %v695_v61  ;;  %2223 = vmatprep.subr.bf16.mxu1 %v2423_v3  ;;  %v764_v61 = vld [vmem:[%s3160_s25 + $0x20] sm:$0xff] }
  0x32   : > { %2207 = vmatprep.mubr.msk.f32.mxu0 %vm840_vm1, %v760_v25 }
  0x34   : > { %2224 = vmatpush3.bf16.msra.mxu1 %v999_v1  ;;  %v1046_v1 = vld [vmem:[%s3137_s7] sm:$0xff] }
  0x35   : > { %2225 = vmatprep.subr.bf16.mxu1 %v2423_v3 }
  0x38   : > { %2226 = vmatpush3.bf16.msra.mxu1 %v1000_v5 }
  0x39   : > { %2227 = vmatprep.subr.bf16.mxu1 %v2423_v3 }
  0x3c   : > { %2228 = vmatpush3.bf16.msra.mxu1 %v1001_v8  ;;  %v1196_v8 = vld [vmem:[%s3139_s9] sm:$0xff] }
  0x3d   : > { %2229 = vmatprep.subr.bf16.mxu1 %v2423_v3 }
  0x40   : > { %2230 = vmatpush3.bf16.msra.mxu1 %v1002_v11  ;;  %v1212_v11 = vpack.c.bf16 %v1197_v9, %v1196_v8 }
  0x41   : > { %2231 = vmatprep.subr.bf16.mxu1 %v2423_v3 }
  0x44   : > { %2232 = vmatpush3.bf16.msra.mxu1 %v1003_v18  ;;  %v1201_v18 = vld [vmem:[%s3139_s9 + $0x28] sm:$0xff] }
  0x45   : > { %2233 = vmatprep.subr.bf16.mxu1 %v2423_v3  ;;  %v1214_v20 = vpack.c.bf16 %v1201_v18, %v1200_v17  ;;  %v1542_v17 = vld [vmem:[%s3144_s14 + $0x10] sm:$0xff]  ;;  %v1543_v18 = vld [vmem:[%s3144_s14 + $0x18] sm:$0xff] }
  0x48   : > { %2234 = vmatpush3.bf16.msra.mxu1 %v1004_v23  ;;  %v1203_v23 = vld [vmem:[%s3139_s9 + $0x38] sm:$0xff] }
  0x49   : > { %2289 = vmatprep.subr.bf16.mxu1 %v1452_v29  ;;  %v1215_v25 = vpack.c.bf16 %v1203_v23, %v1202_v22  ;;  %v1557_v22 = vpack.c.bf16 %v1543_v18, %v1542_v17  ;;  %v1264_v23 = vld [vmem:[%s3140_s10 + $0x20] sm:$0xff] }
  0x4b   : > { %2236 = vmatmul.mubr.bf16.vlgmr.msra.gmra.mrb[4].mxu1 %v980_v24  ;;  %v1052_v24 = vld [vmem:[%s3137_s7 + $0x30] sm:$0xff] }
  0x4c   : > { %2290 = vmatpush3.bf16.msra.mxu1 %v1452_v29  ;;  %v1216_v29 = vpack.c.bf16 %v1205_v28, %v1204_v27  ;;  %v1266_v28 = vld [vmem:[%s3140_s10 + $0x30] sm:$0xff] }
  0x4d   : > { %2291 = vmatprep.subr.bf16.mxu1 %v1453_v31 }
  0x50   : > { %2292 = vmatpush3.bf16.msra.mxu1 %v1453_v31  ;;  %v1207_v31 = vld [vmem:[%s3139_s9 + $0x58] sm:$0xff] }
  0x51   : > { %2293 = vmatprep.subr.bf16.mxu1 %v1454_v34  ;;  %v1217_v33 = vpack.c.bf16 %v1207_v31, %v1206_v30  ;;  %v1547_v30 = vld [vmem:[%s3144_s14 + $0x38] sm:$0xff] }
  0x52   : > { %v1267_v31 = vld [vmem:[%s3140_s10 + $0x38] sm:$0xff] }
  0x54   : > { %2294 = vmatpush3.bf16.msra.mxu1 %v1454_v34  ;;  %v1208_v34 = vld [vmem:[%s3139_s9 + $0x60] sm:$0xff] }
  0x55   : > { %2295 = vmatprep.subr.bf16.mxu1 %v1455_v37 }
  0x58   : > { %2296 = vmatpush3.bf16.msra.mxu1 %v1455_v37  ;;  %v1218_v37 = vpack.c.bf16 %v1209_v35, %v1208_v34  ;;  %v1549_v34 = vld [vmem:[%s3144_s14 + $0x48] sm:$0xff] }
  0x59   : > { %2297 = vmatprep.subr.bf16.mxu1 %v1456_v40 }
  0x5c   : > { %2298 = vmatpush3.bf16.msra.mxu1 %v1456_v40  ;;  %v1194_v40 = vmin.f32 %v1193_v36, 6.0  ;;  %v1550_v36 = vld [vmem:[%s3144_s14 + $0x50] sm:$0xff] }
  0x5d   : > { %2299 = vmatprep.subr.bf16.mxu1 %v1457_v43 }
  0x5e   : > { %v1195_v42 = vpack.c.bf16 %v1194_v40, %v1194_v40 }
  0x60   : > { %2300 = vmatpush3.bf16.msra.mxu1 %v1457_v43  ;;  %v1408_v43 = vld [vmem:[%s680_s26] sm:$0xff] }
  0x61   : > { %2301 = vmatprep.subr.bf16.mxu1 %v1458_v46  ;;  %v1416_v45 = vmax.f32 %v1408_v43, 0.0 }
  0x64   : > { %2302 = vmatpush3.bf16.msra.mxu1 %v1458_v46  ;;  %v1417_v46 = vmax.f32 %v1409_v44, 0.0 }
  0x65   : > { %2303 = vmatprep.subr.bf16.mxu1 %v1459_v49 }
  0x68   : > { %2304 = vmatpush3.bf16.msra.mxu1 %v1459_v49  ;;  %v1418_v49 = vmax.f32 %v1410_v47, 0.0  ;;  %v1555_v47 = vld [vmem:[%s3144_s14 + $0x78] sm:$0xff] }
  0xfe   : > { %v2781_v50 = vpop.f32.mrb[0].mxu1 }
  0xff   : > { %v2203_v51 = vpop.f32.mrb[1].mxu1 }
 0x100   : > { %v833_v52 = vpop.f32.mrb[2].mxu1  ;;  %v1419_v51 = vmax.f32 %v1411_v48, 0.0 }
 0x101   : > { %v2204_v53 = vpop.f32.mrb[3].mxu1  ;;  %v1424_v52 = vmin.f32 %v1416_v45, 6.0 }
 0x102   : > { %v1425_v53 = vmin.f32 %v1417_v46, 6.0  ;;  %v1554_v46 = vld [vmem:[%s3144_s14 + $0x70] sm:$0xff] }
 0x104   : > { %v754_v54 = vpop.f32.mrb[0].mxu0 }
 0x105   : > { %2205 = vmatprep.subr.msk.mxu0 %vm865_vm2, %v754_v54  ;;  %v2183_v56 = vpop.f32.mrb[1].mxu0 }
 0x106   : > { %2206 = vmatpush3.msk.msra.mxu0 %vm865_vm2, %v754_v54  ;;  %v757_v58 = vpop.f32.mrb[2].mxu0  ;;  %v1426_v54 = vmin.f32 %v1418_v49, 6.0  ;;  %v1432_v56 = vpack.c.bf16 %v1425_v53, %v1424_v52 }
 0x107   : > { %2208 = vmatmul.mubr.msk.f32.vlgmr.msra.gmra.mrb[4].mxu0 %vm840_vm1, %v761_v55  ;;  %v2184_v59 = vpop.f32.mrb[3].mxu0  ;;  %v1427_v55 = vmin.f32 %v1419_v51, 6.0  ;;  %v1260_v58 = vld [vmem:[%s3140_s10] sm:$0xff]  ;;  %v1563_v51 = vpack.c.bf16 %v1555_v47, %v1554_v46  ;;  %v1610_v46 = vld [vmem:[%s3145_s15 + $0x28] sm:$0xff]  ;;  %v1611_v47 = vld [vmem:[%s3145_s15 + $0x30] sm:$0xff] }
 0x108   : > { %2210 = vmatprep.mubr.msk.f32.mxu0 %vm840_vm1, %v762_v57  ;;  %2305 = vmatprep.mubr.bf16.mxu1 %v1432_v56  ;;  %v1412_v59 = vld [vmem:[%s680_s26 + $0x20] sm:$0xff] }
 0x109   : > { %v1433_v57 = vpack.c.bf16 %v1427_v55, %v1426_v54 }
 0x10b   : > { %2211 = vmatmul.mubr.msk.f32.gmra.mrb[6].mxu0 %vm840_vm1, %v763_v60  ;;  %2306 = vmatmul.mubr.bf16.vlgmr.msra.gmra.mrb[8].mxu1 %v1433_v57  ;;  %v1413_v60 = vld [vmem:[%s680_s26 + $0x28] sm:$0xff] }
 0x10c   : > { %2213 = vmatprep.mubr.msk.f32.mxu0 %vm840_vm1, %v764_v61  ;;  %v1420_v61 = vmax.f32 %v1412_v59, 0.0 }
 0x10f   : > { %2214 = vmatmul.mubr.msk.f32.gmra.mrb[8].mxu0 %vm840_vm1, %v765_v62  ;;  %v1421_v62 = vmax.f32 %v1413_v60, 0.0 }
 0x110   : > { %2216 = vmatprep.mubr.msk.f32.mxu0 %vm840_vm1, %v766_v63  ;;  %v1414_v63 = vld [vmem:[%s680_s26 + $0x30] sm:$0xff] }
 0x113   : > { %2217 = vmatmul.mubr.msk.f32.gmra.mrb[10].mxu0 %vm840_vm1, %v767_v0  ;;  %v1415_v0 = vld [vmem:[%s680_s26 + $0x38] sm:$0xff]  ;;  %s685_s26 = scalar_lea.vmem %s3143_s13, %s3161_s20  ;;  %s690_s20 = scalar_lea.vmem %s3149_s19, %s2055_s23 }
 0x114   : > { %2243 = vmatprep.mubr.msk.f32.mxu0 %vm1054_vm3, %v1046_v1  ;;  %v1422_v1 = vmax.f32 %v1414_v63, 0.0  ;;  %v1533_v38 = vld [vmem:[%s685_s26] sm:$0xff]  ;;  %v1534_v39 = vld [vmem:[%s685_s26 + $0x8] sm:$0xff]  ;;  %v1787_v63 = vld [vmem:[%s3147_s17 + $0x10] sm:$0xff] }
 0x115   : > { %v1535_v43 = vmax.f32 %v1533_v38, 0.0  ;;  %v1536_v44 = vmax.f32 %v1534_v39, 0.0 }
 0x117   : > { %v1537_v48 = vmin.f32 %v1535_v43, 6.0  ;;  %v1538_v49 = vmin.f32 %v1536_v44, 6.0  ;;  %v1607_v43 = vld [vmem:[%s3145_s15 + $0x10] sm:$0xff]  ;;  %v1608_v44 = vld [vmem:[%s3145_s15 + $0x18] sm:$0xff] }
 0x119   : > { %v1539_v52 = vpack.c.bf16 %v1538_v49, %v1537_v48  ;;  %v1612_v48 = vld [vmem:[%s3145_s15 + $0x38] sm:$0xff]  ;;  %v1793_v49 = vld [vmem:[%s3147_s17 + $0x40] sm:$0xff] }
 0x11e   : > { %v1039_v2 = vpop.f32.mrb[4].mxu1 }
 0x11f   : > { %v2237_v4 = vpop.f32.mrb[5].mxu1 }
 0x120   : > { %v1042_v5 = vpop.f32.mrb[6].mxu1  ;;  %v1428_v4 = vmin.f32 %v1420_v61, 6.0  ;;  %v1605_v61 = vld [vmem:[%s3145_s15] sm:$0xff] }
 0x121   : > { %v2373_v6 = vpack.c.bf16 %v1042_v5, %v1039_v2  ;;  %v2238_v7 = vpop.f32.mrb[7].mxu1  ;;  %v1423_v2 = vmax.f32 %v1415_v0, 0.0  ;;  %v1429_v5 = vmin.f32 %v1421_v62, 6.0  ;;  %v1786_v62 = vld [vmem:[%s3147_s17 + $0x8] sm:$0xff] }
 0x123   : > { %2374 = vmatprep.subr.bf16.mxu0 %v2373_v6  ;;  %v1431_v7 = vmin.f32 %v1423_v2, 6.0  ;;  %v1434_v8 = vpack.c.bf16 %v1429_v5, %v1428_v4  ;;  %v1789_v4 = vld [vmem:[%s3147_s17 + $0x20] sm:$0xff]  ;;  %v1790_v5 = vld [vmem:[%s3147_s17 + $0x28] sm:$0xff] }
 0x124   : > { %2376 = vmatpush3.bf16.msra.mxu0 %v2373_v6  ;;  %v1430_v6 = vmin.f32 %v1422_v1, 6.0  ;;  %v1788_v1 = vld [vmem:[%s3147_s17 + $0x18] sm:$0xff] }
 0x125   : > { %2255 = vmatprep.subr.bf16.mxu0 %v2423_v3  ;;  %2309 = vmatprep.mubr.bf16.mxu1 %v1434_v8  ;;  %v1802_v2 = vpack.c.bf16 %v1788_v1, %v1787_v63  ;;  %v1792_v8 = vld [vmem:[%s3147_s17 + $0x38] sm:$0xff] }
 0x126   : > { %v1435_v9 = vpack.c.bf16 %v1431_v7, %v1430_v6  ;;  %v1803_v6 = vpack.c.bf16 %v1790_v5, %v1789_v4  ;;  %v1791_v7 = vld [vmem:[%s3147_s17 + $0x30] sm:$0xff] }
 0x127   : > { %2244 = vmatmul.mubr.msk.f32.vlgmr.msra.gmra.mrb[4].mxu0 %vm1054_vm3, %v1047_v10  ;;  %v1540_v10 = vld [vmem:[%s3144_s14] sm:$0xff] }
 0x128   : > { %2256 = vmatpush3.bf16.msra.mxu0 %v1212_v11  ;;  %2246 = vmatprep.mubr.msk.f32.mxu0 %vm1054_vm3, %v1048_v14  ;;  %v1541_v11 = vld [vmem:[%s3144_s14 + $0x8] sm:$0xff] }
 0x129   : > { %2257 = vmatprep.subr.bf16.mxu0 %v2423_v3  ;;  %2310 = vmatmul.mubr.bf16.gmra.mrb[12].mxu1 %v1435_v9  ;;  %v1556_v14 = vpack.c.bf16 %v1541_v11, %v1540_v10  ;;  %v1804_v9 = vpack.c.bf16 %v1792_v8, %v1791_v7  ;;  %v836_v10 = vlaneseq }
 0x12b   : > { %2247 = vmatmul.mubr.msk.f32.gmra.mrb[6].mxu0 %vm1054_vm3, %v1049_v16  ;;  %v1262_v16 = vld [vmem:[%s3140_s10 + $0x10] sm:$0xff]  ;;  %v837_v11 = vshrl.u32 %v836_v10, 7 }
 0x12c   : > { %2258 = vmatpush3.bf16.msra.mxu0 %v1213_v15  ;;  %2249 = vmatprep.mubr.msk.f32.mxu0 %vm1054_vm3, %v1050_v19 }
 0x12d   : > { %2259 = vmatprep.subr.bf16.mxu0 %v2423_v3 }
 0x12f   : > { %2250 = vmatmul.mubr.msk.f32.gmra.mrb[8].mxu0 %vm1054_vm3, %v1051_v21  ;;  %v1263_v21 = vld [vmem:[%s3140_s10 + $0x18] sm:$0xff] }
 0x130   : > { %2260 = vmatpush3.bf16.msra.mxu0 %v1214_v20  ;;  %2252 = vmatprep.mubr.msk.f32.mxu0 %vm1054_vm3, %v1052_v24  ;;  %v1544_v24 = vld [vmem:[%s3144_s14 + $0x20] sm:$0xff] }
 0x131   : > { %2261 = vmatprep.subr.bf16.mxu0 %v2423_v3 }
 0x133   : > { %2253 = vmatmul.mubr.msk.f32.gmra.mrb[10].mxu0 %vm1054_vm3, %v1053_v26  ;;  %v1265_v26 = vld [vmem:[%s3140_s10 + $0x28] sm:$0xff] }
 0x134   : > { %2262 = vmatpush3.bf16.msra.mxu0 %v1215_v25  ;;  %2271 = vmatprep.mubr.msk.bf16.mxu0 %vm2424_vm0, %v2423_v3  ;;  %v1545_v25 = vld [vmem:[%s3144_s14 + $0x28] sm:$0xff] }
 0x135   : > { %2263 = vmatprep.subr.bf16.mxu0 %v2423_v3  ;;  %v1558_v27 = vpack.c.bf16 %v1545_v25, %v1544_v24 }
 0x138   : > { %2264 = vmatpush3.bf16.msra.mxu0 %v1216_v29  ;;  %v1546_v29 = vld [vmem:[%s3144_s14 + $0x30] sm:$0xff] }
 0x139   : > { %2265 = vmatprep.subr.bf16.mxu0 %v2423_v3  ;;  %v1559_v32 = vpack.c.bf16 %v1547_v30, %v1546_v29 }
 0x13c   : > { %2266 = vmatpush3.bf16.msra.mxu0 %v1217_v33  ;;  %v1548_v33 = vld [vmem:[%s3144_s14 + $0x40] sm:$0xff] }
 0x13d   : > { %2267 = vmatprep.subr.bf16.mxu0 %v2423_v3  ;;  %v1560_v35 = vpack.c.bf16 %v1549_v34, %v1548_v33 }
 0x140   : > { %2268 = vmatpush3.bf16.msra.mxu0 %v1218_v37  ;;  %v1551_v37 = vld [vmem:[%s3144_s14 + $0x58] sm:$0xff] }
 0x141   : > { %2269 = vmatprep.subr.bf16.mxu0 %v2423_v3  ;;  %v1561_v40 = vpack.c.bf16 %v1551_v37, %v1550_v36 }
 0x144   : > { %2270 = vmatpush3.bf16.msra.mxu0 %v1219_v41  ;;  %v1552_v41 = vld [vmem:[%s3144_s14 + $0x60] sm:$0xff] }
 0x147   : > { %2272 = vmatmul.mubr.bf16.vlgmr.msra.gmra.mrb[12].mxu0 %v1195_v42  ;;  %v1553_v42 = vld [vmem:[%s3144_s14 + $0x68] sm:$0xff] }
 0x148   : > { %2277 = vmatprep.mubr.msk.f32.mxu0 %vm840_vm1, %v1260_v58  ;;  %v1562_v45 = vpack.c.bf16 %v1553_v42, %v1552_v41  ;;  %v1606_v42 = vld [vmem:[%s3145_s15 + $0x8] sm:$0xff] }
 0x1de   : > { %v2307_v53 = vpop.f32.mrb[8].mxu1 }
 0x1df   : > { %v1494_v54 = vpop.f32.mrb[9].mxu1 }
 0x1e0   : > { %v2308_v55 = vpop.f32.mrb[10].mxu1 }
 0x1e1   : > { %v1497_v56 = vpop.f32.mrb[11].mxu1 }
 0x1fc   : > { %v2311_v57 = vpop.f32.mrb[12].mxu1 }
 0x1fd   : > { %v1510_v58 = vpop.f32.mrb[13].mxu1 }
 0x1fe   : > { %v2312_v59 = vpop.f32.mrb[14].mxu1 }
 0x1ff   : > { %v1513_v60 = vpop.f32.mrb[15].mxu1 }
 0x21a   : > { %v1254_v12 = vpop.f32.mrb[12].mxu0 }
 0x21b   : > { %2275 = vmatprep.subr.msk.mxu0 %vm865_vm2, %v1254_v12  ;;  %v2273_v15 = vpop.f32.mrb[13].mxu0 }
 0x21c   : > { %2276 = vmatpush3.msk.msra.mxu0 %vm865_vm2, %v1254_v12  ;;  %v1257_v19 = vpop.f32.mrb[14].mxu0  ;;  %v838_v12 = vsub.s32 0, %v837_v11 }
 0x21d   : > { %2278 = vmatmul.mubr.msk.f32.vlgmr.msra.gmra.mrb[4].mxu0 %vm840_vm1, %v1261_v13  ;;  %2313 = vmatprep.subr.bf16.mxu0 %v2423_v3  ;;  %v2274_v20 = vpop.f32.mrb[15].mxu0 }
 0x21e   : > { %2314 = vmatpush3.bf16.msra.mxu0 %v1556_v14  ;;  %2280 = vmatprep.mubr.msk.f32.mxu0 %vm840_vm1, %v1262_v16  ;;  %v839_v13 = vrot.slane %v2781_v50, %v838_v12 }
 0x21f   : > { %2315 = vmatprep.subr.bf16.mxu0 %v2423_v3 }
 0x221   : > { %2281 = vmatmul.mubr.msk.f32.gmra.mrb[6].mxu0 %vm840_vm1, %v1263_v21 }
 0x222   : > { %2316 = vmatpush3.bf16.msra.mxu0 %v1557_v22  ;;  %2283 = vmatprep.mubr.msk.f32.mxu0 %vm840_vm1, %v1264_v23 }
 0x223   : > { %2317 = vmatprep.subr.bf16.mxu0 %v2423_v3 }
 0x225   : > { %2284 = vmatmul.mubr.msk.f32.gmra.mrb[8].mxu0 %vm840_vm1, %v1265_v26 }
 0x226   : > { %2318 = vmatpush3.bf16.msra.mxu0 %v1558_v27  ;;  %2286 = vmatprep.mubr.msk.f32.mxu0 %vm840_vm1, %v1266_v28 }
 0x227   : > { %2319 = vmatprep.subr.bf16.mxu0 %v2423_v3 }
 0x229   : > { %2287 = vmatmul.mubr.msk.f32.gmra.mrb[10].mxu0 %vm840_vm1, %v1267_v31 }
 0x22a   : > { %2320 = vmatpush3.bf16.msra.mxu0 %v1559_v32  ;;  %2329 = vmatprep.mubr.msk.bf16.mxu0 %vm2424_vm0, %v2423_v3 }
 0x22b   : > { %2321 = vmatprep.subr.bf16.mxu0 %v2423_v3 }
 0x22e   : > { %2322 = vmatpush3.bf16.msra.mxu0 %v1560_v35 }
 0x22f   : > { %2323 = vmatprep.subr.bf16.mxu0 %v2423_v3 }
 0x232   : > { %2324 = vmatpush3.bf16.msra.mxu0 %v1561_v40 }
 0x233   : > { %2325 = vmatprep.subr.bf16.mxu0 %v2423_v3 }
 0x236   : > { %2326 = vmatpush3.bf16.msra.mxu0 %v1562_v45  ;;  %v1609_v45 = vld [vmem:[%s3145_s15 + $0x20] sm:$0xff] }
 0x237   : > { %2327 = vmatprep.subr.bf16.mxu0 %v2423_v3  ;;  %v1785_v3 = vld [vmem:[%s3147_s17] sm:$0xff] }
 0x238   : > { %v1801_v0 = vpack.c.bf16 %v1786_v62, %v1785_v3  ;;  %v2050_v62 = vld [vmem:[%s3146_s16] ss:$0 sm:$0xff] }
 0x23a   : > { %2328 = vmatpush3.bf16.msra.mxu0 %v1563_v51  ;;  %2349 = vmatprep.subr.bf16.mxu1 %v1801_v0  ;;  %v1794_v51 = vld [vmem:[%s3147_s17 + $0x48] sm:$0xff] }
 0x23b   : > { %2350 = vmatpush3.bf16.msra.mxu1 %v1801_v0 }
 0x23c   : > { %2351 = vmatprep.subr.bf16.mxu1 %v1802_v2 }
 0x23d   : > { %2330 = vmatmul.mubr.bf16.vlgmr.msra.gmra.mrb[16].mxu0 %v1539_v52  ;;  %v1805_v52 = vpack.c.bf16 %v1794_v51, %v1793_v49 }
 0x23e   : > { %2337 = vmatprep.mubr.msk.f32.mxu0 %vm1054_vm3, %v1605_v61 }
 0x23f   : > { %2352 = vmatpush3.bf16.msra.mxu1 %v1802_v2 }
 0x240   : > { %2353 = vmatprep.subr.bf16.mxu1 %v1803_v6 }
 0x243   : > { %2354 = vmatpush3.bf16.msra.mxu1 %v1803_v6 }
 0x244   : > { %2355 = vmatprep.subr.bf16.mxu1 %v1804_v9 }
 0x247   : > { %2356 = vmatpush3.bf16.msra.mxu1 %v1804_v9 }
 0x248   : > { %2357 = vmatprep.subr.bf16.mxu1 %v1805_v52 }
 0x24b   : > { %2358 = vmatpush3.bf16.msra.mxu1 %v1805_v52 }
 0x2f0   : > { %v2279_v14 = vpop.f32.mrb[4].mxu0 }
 0x2f1   : > { %v2381_v15 = vadd.f32 %v2279_v14, %v839_v13  ;;  %v1361_v16 = vpop.f32.mrb[5].mxu0 }
 0x2f2   : > { %v2382_v17 = vadd.f32 %v1361_v16, %v839_v13 }
 0x2f3   : > { %v3040_v18 = vadd.f32 %v2381_v15, %v1497_v56  ;;  %v1797_v56 = vld [vmem:[%s3147_s17 + $0x60] sm:$0xff] }
 0x2f4   : > { %v2282_v19 = vpop.f32.mrb[6].mxu0  ;;  %v3042_v20 = vadd.f32 %v2382_v17, %v1494_v54  ;;  %v1796_v54 = vld [vmem:[%s3147_s17 + $0x58] sm:$0xff] }
 0x2f5   : > { %v2383_v21 = vadd.f32 %v2282_v19, %v839_v13  ;;  %v1371_v22 = vpop.f32.mrb[7].mxu0 }
 0x2f6   : > { %v2384_v23 = vadd.f32 %v1371_v22, %v839_v13 }
 0x2f7   : > { %v3044_v24 = vadd.f32 %v2383_v21, %v2308_v55 }
 0x2f8   : > { %v2285_v25 = vpop.f32.mrb[8].mxu0  ;;  %v3046_v26 = vadd.f32 %v2384_v23, %v2307_v53  ;;  %v1795_v53 = vld [vmem:[%s3147_s17 + $0x50] sm:$0xff] }
 0x2f9   : > { %v2385_v27 = vadd.f32 %v2285_v25, %v839_v13  ;;  %v1381_v28 = vpop.f32.mrb[9].mxu0  ;;  %v1806_v55 = vpack.c.bf16 %v1796_v54, %v1795_v53 }
 0x2fa   : > { %v2386_v50 = vadd.f32 %v1381_v28, %v839_v13 }
 0x2fb   : > { %v3048_v29 = vadd.f32 %v2385_v27, %v1513_v60  ;;  %2359 = vmatprep.subr.bf16.mxu1 %v1806_v55  ;;  %v1800_v60 = vld [vmem:[%s3147_s17 + $0x78] sm:$0xff] }
 0x2fc   : > { %v2288_v30 = vpop.f32.mrb[10].mxu0  ;;  %v3050_v31 = vadd.f32 %v2386_v50, %v1510_v58  ;;  %2360 = vmatpush3.bf16.msra.mxu1 %v1806_v55 }
 0x2fd   : > { %v2387_v32 = vadd.f32 %v2288_v30, %v839_v13  ;;  %v1391_v33 = vpop.f32.mrb[11].mxu0 }
 0x2fe   : > { %v2388_v34 = vadd.f32 %v1391_v33, %v839_v13 }
 0x2ff   : > { %v3052_v35 = vadd.f32 %v2387_v32, %v2312_v59  ;;  %v1799_v59 = vld [vmem:[%s3147_s17 + $0x70] sm:$0xff] }
 0x300   : > { %v3054_v36 = vadd.f32 %v2388_v34, %v2311_v57  ;;  %v1798_v57 = vld [vmem:[%s3147_s17 + $0x68] sm:$0xff]  ;;  %v1808_v61 = vpack.c.bf16 %v1800_v60, %v1799_v59 }
 0x301   : > { %v1807_v58 = vpack.c.bf16 %v1798_v57, %v1797_v56 }
 0x303   : > { %2361 = vmatprep.subr.bf16.mxu1 %v1807_v58 }
 0x304   : > { %2362 = vmatpush3.bf16.msra.mxu1 %v1807_v58 }
 0x305   : > { %2363 = vmatprep.subr.bf16.mxu1 %v1808_v61 }
 0x308   : > { %2364 = vmatpush3.bf16.msra.mxu1 %v1808_v61 }
 0x310   : > { %v1598_v37 = vpop.f32.mrb[16].mxu0 }
 0x311   : > { %v2331_v38 = vpop.f32.mrb[17].mxu0 }
 0x312   : > { %v1601_v39 = vpop.f32.mrb[18].mxu0 }
 0x313   : > { %v2377_v40 = vpack.c.bf16 %v1601_v39, %v1598_v37  ;;  %v2332_v41 = vpop.f32.mrb[19].mxu0 }
 0x315   : > { %2378 = vmatprep.subr.bf16.mxu0 %v2377_v40 }
 0x316   : > { %2380 = vmatpush3.bf16.msra.mxu0 %v2377_v40 }
 0x319   : > { %2338 = vmatmul.mubr.msk.f32.vlgmr.msra.gmra.mrb[20].mxu0 %vm1054_vm3, %v1606_v42 }
 0x31a   : > { %2340 = vmatprep.mubr.msk.f32.mxu0 %vm1054_vm3, %v1607_v43 }
 0x31d   : > { %2341 = vmatmul.mubr.msk.f32.gmra.mrb[22].mxu0 %vm1054_vm3, %v1608_v44 }
 0x31e   : > { %2343 = vmatprep.mubr.msk.f32.mxu0 %vm1054_vm3, %v1609_v45 }
 0x321   : > { %2344 = vmatmul.mubr.msk.f32.gmra.mrb[24].mxu0 %vm1054_vm3, %v1610_v46 }
 0x322   : > { %2346 = vmatprep.mubr.msk.f32.mxu0 %vm1054_vm3, %v1611_v47 }
 0x325   : > { %2347 = vmatmul.mubr.msk.f32.gmra.mrb[26].mxu0 %vm1054_vm3, %v1612_v48 }
 0x3ec   : > { %v2339_v3 = vpop.f32.mrb[20].mxu0 }
 0x3ed   : > { %v1743_v63 = vadd.f32 %v2339_v3, %v3040_v18  ;;  %v1703_v0 = vpop.f32.mrb[21].mxu0 }
 0x3ee   : > { %v1742_v1 = vadd.f32 %v1703_v0, %v3042_v20 }
 0x3ef   : > { %v1758_v2 = vadd.f32 %v2050_v62, %v1743_v63 }
 0x3f0   : > { %v1757_v4 = vadd.f32 %v2050_v62, %v1742_v1  ;;  %v2342_v5 = vpop.f32.mrb[22].mxu0 }
 0x3f1   : > { %v1766_v6 = vmax.f32 %v1758_v2, 0.0  ;;  %v1745_v7 = vadd.f32 %v2342_v5, %v3044_v24  ;;  %v1713_v8 = vpop.f32.mrb[23].mxu0 }
 0x3f2   : > { %v1765_v9 = vmax.f32 %v1757_v4, 0.0  ;;  %v1744_v10 = vadd.f32 %v1713_v8, %v3046_v26 }
 0x3f3   : > { %v1774_v11 = vmin.f32 %v1766_v6, 6.0  ;;  %v1760_v12 = vadd.f32 %v2050_v62, %v1745_v7 }
 0x3f4   : > { %v1773_v13 = vmin.f32 %v1765_v9, 6.0  ;;  %v1759_v14 = vadd.f32 %v2050_v62, %v1744_v10  ;;  %v2345_v15 = vpop.f32.mrb[24].mxu0 }
 0x3f5   : > { %v1768_v16 = vmax.f32 %v1760_v12, 0.0  ;;  %v1747_v17 = vadd.f32 %v2345_v15, %v3048_v29  ;;  %v1723_v18 = vpop.f32.mrb[25].mxu0 }
 0x3f6   : > { %v1767_v19 = vmax.f32 %v1759_v14, 0.0  ;;  %v1746_v20 = vadd.f32 %v1723_v18, %v3050_v31  ;;  %v1781_v21 = vpack.c.bf16 %v1774_v11, %v1773_v13 }
 0x3f7   : > { %v1776_v22 = vmin.f32 %v1768_v16, 6.0  ;;  %v1762_v23 = vadd.f32 %v2050_v62, %v1747_v17 }
 0x3f8   : > { %v1775_v24 = vmin.f32 %v1767_v19, 6.0  ;;  %v1761_v25 = vadd.f32 %v2050_v62, %v1746_v20  ;;  %v2348_v27 = vpop.f32.mrb[26].mxu0  ;;  %2365 = vmatprep.mubr.bf16.mxu1 %v1781_v21 }
 0x3f9   : > { %v1770_v26 = vmax.f32 %v1762_v23, 0.0  ;;  %v1749_v28 = vadd.f32 %v2348_v27, %v3052_v35  ;;  %v1733_v50 = vpop.f32.mrb[27].mxu0  ;;  %v2051_v35 = vld [vmem:[%s3148_s18] ss:$0 sm:$0xff] }
 0x3fa   : > { %v1782_v30 = vpack.c.bf16 %v1776_v22, %v1775_v24  ;;  %v1769_v32 = vmax.f32 %v1761_v25, 0.0  ;;  %v1748_v29 = vadd.f32 %v1733_v50, %v3054_v36 }
 0x3fb   : > { %v1778_v33 = vmin.f32 %v1770_v26, 6.0  ;;  %v1764_v34 = vadd.f32 %v2050_v62, %v1749_v28 }
 0x3fc   : > { %v1777_v37 = vmin.f32 %v1769_v32, 6.0  ;;  %v1763_v31 = vadd.f32 %v2050_v62, %v1748_v29  ;;  %2366 = vmatmul.mubr.bf16.vlgmr.msra.gmra.mrb[16].mxu1 %v1782_v30 }
 0x3fd   : > { %v1772_v38 = vmax.f32 %v1764_v34, 0.0 }
 0x3fe   : > { %v1771_v39 = vmax.f32 %v1763_v31, 0.0  ;;  %v1783_v40 = vpack.c.bf16 %v1778_v33, %v1777_v37 }
 0x3ff   : > { %v1780_v41 = vmin.f32 %v1772_v38, 6.0 }
 0x400   : > { %v1779_v42 = vmin.f32 %v1771_v39, 6.0  ;;  %2369 = vmatprep.mubr.bf16.mxu1 %v1783_v40 }
 0x402   : > { %v1784_v43 = vpack.c.bf16 %v1780_v41, %v1779_v42 }
 0x404   : > { %2370 = vmatmul.mubr.bf16.gmra.mrb[20].mxu1 %v1784_v43 }
 0x4cf   : > { %v2367_v36 = vpop.f32.mrb[16].mxu1 }
 0x4d0   : > { %v1859_v44 = vadd.f32 %v2367_v36, %v2051_v35  ;;  %v1850_v45 = vpop.f32.mrb[17].mxu1 }
 0x4d1   : > { %v1851_v46 = vadd.f32 %v2051_v35, %v1850_v45  ;;  %v2368_v47 = vpop.f32.mrb[18].mxu1 }
 0x4d2   : > { %1883 = vst [vmem:[%s690_s20 + $0x10] sm:$0xff] %v1859_v44  ;;  %v1862_v48 = vadd.f32 %v2368_v47, %v2051_v35  ;;  %v1853_v49 = vpop.f32.mrb[19].mxu1 }
 0x4d3   : > { %1881 = vst [vmem:[%s690_s20] sm:$0xff] %v1851_v46  ;;  %v1854_v51 = vadd.f32 %v2051_v35, %v1853_v49 }
 0x4d4   : > { %1884 = vst [vmem:[%s690_s20 + $0x18] sm:$0xff] %v1862_v48 }
 0x4d5   : > { %1882 = vst [vmem:[%s690_s20 + $0x8] sm:$0xff] %v1854_v51 }
 0x4d7   : > { %v2371_v52 = vpop.f32.mrb[20].mxu1 }
 0x4d8   : > { %v1875_v53 = vadd.f32 %v2371_v52, %v2051_v35  ;;  %v1866_v54 = vpop.f32.mrb[21].mxu1 }
 0x4d9   : > { %v1867_v55 = vadd.f32 %v2051_v35, %v1866_v54  ;;  %v2372_v56 = vpop.f32.mrb[22].mxu1 }
 0x4da   : > { %1887 = vst [vmem:[%s690_s20 + $0x30] sm:$0xff] %v1875_v53  ;;  %v1878_v57 = vadd.f32 %v2372_v56, %v2051_v35  ;;  %v1869_v58 = vpop.f32.mrb[23].mxu1 }
 0x4db   : > { %1885 = vst [vmem:[%s690_s20 + $0x20] sm:$0xff] %v1867_v55  ;;  %v1870_v59 = vadd.f32 %v2051_v35, %v1869_v58 }
 0x4dc   : > { %1888 = vst [vmem:[%s690_s20 + $0x38] sm:$0xff] %v1878_v57 }
 0x4dd   : > { %1886 = vst [vmem:[%s690_s20 + $0x28] sm:$0xff] %v1870_v59 }
 0x4de PF: > { %s29_s0 = sadd.s32 1, %s2421_s0  }
 0x4df   : > { %p26_p4 = scmp.ge.s32.totalorder %s29_s0, 4  }
 0x4e1   :  { %28 = sbr.rel (!%p26_p4) target bundleno = 5 (0x5), region = 141 }

</bundles_post_ra>
